<compile_context>
chip_gen: v7x
topology: tpu7x:2x2x1
jax: 0.10.0
libtpu: 0.0.40
codegen_flags: <defaults>
</compile_context>

<pallas_src>
import functools

import jax
import jax.numpy as jnp
from jax.experimental import pallas as pl
from jax.experimental.pallas import tpu as pltpu

# ----------------------------- config ---------------------------------------
H = 32                      # config.hidden_size
NUM_HEADS = 4
HEAD_DIM = H // NUM_HEADS
FF = 64                     # BertIntermediate size
EVENT_TYPE_CLASSES = 3      # config.laap_event_type_classes
NUM_SETS = 8                # config.laap_num_generated_sets
NUM_SET_LAYERS = 1          # config.laap_num_set_decoder_layers
NUM_ROLE_LAYERS = 1         # config.laap_num_role_decoder_layers
LN_EPS = 1e-12              # config.laap_layer_norm_eps

EVENT_TYPE2ROLE = [[0, 1, 2], [1, 3]]                 # (a trailing None is appended in __init__)
ROLE_INDEX_NUM = len(set(r for l in EVENT_TYPE2ROLE for r in l))   # 4
NUM_EVENT_TYPE_EMBED = len(EVENT_TYPE2ROLE) + 1                    # includes the None slot


# ----------------------- in-kernel building blocks ---------------------------
# All helpers below operate on *values* (already loaded from VMEM refs) so the
# whole graph stays in vregs / VMEM for the single fused kernel body.

def _ln(x, g, b):
    mu = jnp.mean(x, axis=-1, keepdims=True)
    var = jnp.mean(jnp.square(x - mu), axis=-1, keepdims=True)
    return (x - mu) * jax.lax.rsqrt(var + LN_EPS) * g + b


def _lin(x, w, b):
    # w is stored pre-transposed as (K, N); b as (1, N).
    return jnp.dot(x, w, preferred_element_type=jnp.float32) + b


def _softmax_lastdim(s):
    s = s - jnp.max(s, axis=-1, keepdims=True)
    e = jnp.exp(s)
    # reciprocal on the EUP slot (approx) — otherwise-idle unit at these sizes.
    return e * pl.reciprocal(jnp.sum(e, axis=-1, keepdims=True), approx=True)


def _mha_out(q, k, v, w_o, b_o):
    """Multi-head attention fused with the output projection.

    Heads are static lane slices of width HEAD_DIM; the per-head context is
    immediately projected through the matching sublane slice of w_o, so no
    lane-concat / head-merge relayout is ever materialized.
    """
    scale = 1.0 / float(HEAD_DIM) ** 0.5
    out = None
    for h in range(NUM_HEADS):
        sl = slice(h * HEAD_DIM, (h + 1) * HEAD_DIM)
        qh, kh, vh = q[:, sl], k[:, sl], v[:, sl]
        # (Sq, d) x (Sk, d)^T -> (Sq, Sk)
        s = jax.lax.dot_general(qh, kh, (((1,), (1,)), ((), ())),
                                preferred_element_type=jnp.float32) * scale
        p = _softmax_lastdim(s)
        o_h = jnp.dot(p, vh, preferred_element_type=jnp.float32)                 # (Sq, d)
        contrib = jnp.dot(o_h, w_o[sl, :], preferred_element_type=jnp.float32)   # (Sq, H)
        out = contrib if out is None else out + contrib
    return out + b_o


def _self_attention(x, p):
    # packed QKV: one MXU pass, lane-dense (S, 3H) intermediate.
    qkv = _lin(x, p['sa_wqkv'], p['sa_bqkv'])
    q, k, v = qkv[:, :H], qkv[:, H:2 * H], qkv[:, 2 * H:]
    attn = _mha_out(q, k, v, p['sa_wo'], p['sa_bo'])
    return _ln(attn + x, p['sa_ln_g'], p['sa_ln_b'])


def _cross_attention(x, enc, p):
    q = _lin(x, p['ca_wq'], p['ca_bq'])
    kv = _lin(enc, p['ca_wkv'], p['ca_bkv'])     # packed K|V
    k, v = kv[:, :H], kv[:, H:]
    attn = _mha_out(q, k, v, p['ca_wo'], p['ca_bo'])
    return _ln(attn + x, p['ca_ln_g'], p['ca_ln_b'])


def _decoder_layer(x, enc, p):
    a = _self_attention(x, p)
    a = _cross_attention(a, enc, p)
    # BertIntermediate activation (tanh-approx gelu; exact erf-gelu differs by <1e-3)
    inter = jax.nn.gelu(_lin(a, p['inter_w'], p['inter_b']), approximate=True)
    out = _lin(inter, p['out_w'], p['out_b'])
    return _ln(out + a, p['out_ln_g'], p['out_ln_b'])


# ----------------------------- fused kernel ----------------------------------
def _build_fused_kernel(treedef, n_in, npe):
    def kernel(*refs):
        # load every input block once; the compiler manages vreg/VMEM lifetimes.
        vals = jax.tree_util.tree_unflatten(treedef, [r[...] for r in refs[:n_in]])
        o_event_ref = refs[n_in]
        o_role_ref = refs[n_in + 1]

        ln_g, ln_b = vals['ln_g'], vals['ln_b']

        # query embeddings -> LayerNorm (dropout=identity) -> + event-type embedding
        hidden = _ln(vals['query_embed'], ln_g, ln_b) + vals['etype_row']
        for lp in vals['set_layers']:
            hidden = _decoder_layer(hidden, vals['doc_sent'], lp)
        o_event_ref[...] = _lin(hidden, vals['event_cls_w'], vals['event_cls_b'])

        # role embeddings -> LayerNorm -> role decoder (cross-attends to span_ext)
        role = _ln(vals['role_sel'], ln_g, ln_b)
        for lp in vals['role_layers']:
            role = _decoder_layer(role, vals['span_ext'], lp)

        # laap_use_role_decoder=False branch:
        #   logits[s, r, l] = metric_4( tanh(metric_1(h)[s] + metric_2(ctx)[l]
        #                                    + metric_3(role)[r]) )
        m1 = _lin(hidden, vals['m1_w'], vals['m1_b'])                 # (S, H)
        m2 = _lin(vals['doc_span_sent'], vals['m2_w'], vals['m2_b'])  # (L, H)
        m3 = _lin(role, vals['m3_w'], vals['m3_b'])                   # (R, H)
        w4 = vals['m4_w']                                             # (1, H)
        t = (m1[:, None, None, :]
             + m3[None, :, None, :]
             + m2[None, None, :, :])                                  # (S, R, L, H)
        logits = jnp.sum(jnp.tanh(t) * w4[None, None, :, :], axis=-1)  # (S, R, L)
        o_role_ref[...] = logits[:, :, :npe]
    return kernel


def _full_spec(shape):
    # full-array block, single grid step
    return pl.BlockSpec(shape, lambda i, _z=(0,) * len(shape): _z)


# ----------------------------- model glue ------------------------------------
@functools.partial(jax.jit, static_argnames=("event_type_pred",))
def set_pred4dee_forward(params, doc_sent_context, batch_span_context, event_type_pred):
    # batch_span_context ++ role_embed4None
    span_ext = jnp.concatenate([batch_span_context, params['role_embed4None']], axis=0)
    num_pred_entities = span_ext.shape[0]
    # laap_use_sent_span_encoder=False -> plain concat
    doc_span_sent = jnp.concatenate([span_ext, doc_sent_context], axis=0)

    role_idx = EVENT_TYPE2ROLE[event_type_pred]                 # static python list
    num_roles = len(role_idx)
    role_sel = params['role_embed'][jnp.asarray(role_idx, dtype=jnp.int32)]   # (R, H)
    etype_row = params['event_type_embed'][event_type_pred][None, :]          # (1, H)

    kernel_inputs = {
        'span_ext': span_ext,
        'doc_sent': doc_sent_context,
        'doc_span_sent': doc_span_sent,
        'etype_row': etype_row,
        'role_sel': role_sel,
        'query_embed': params['query_embed'],
        'ln_g': params['ln_g'], 'ln_b': params['ln_b'],
        'event_cls_w': params['event_cls_w'], 'event_cls_b': params['event_cls_b'],
        'm1_w': params['metric_1_w'], 'm1_b': params['metric_1_b'],
        'm2_w': params['metric_2_w'], 'm2_b': params['metric_2_b'],
        'm3_w': params['metric_3_w'], 'm3_b': params['metric_3_b'],
        'm4_w': params['metric_4_w'],
        'set_layers': params['set_layers'],
        'role_layers': params['role_layers'],
    }
    leaves, treedef = jax.tree_util.tree_flatten(kernel_inputs)
    n_in = len(leaves)

    out_shapes = (
        jax.ShapeDtypeStruct((NUM_SETS, EVENT_TYPE_CLASSES), jnp.float32),
        jax.ShapeDtypeStruct((NUM_SETS, num_roles, num_pred_entities), jnp.float32),
    )
    out_specs = (_full_spec((NUM_SETS, EVENT_TYPE_CLASSES)),
                 _full_spec((NUM_SETS, num_roles, num_pred_entities)))
    in_specs = [_full_spec(leaf.shape) for leaf in leaves]

    kernel = _build_fused_kernel(treedef, n_in, num_pred_entities)
    pred_doc_event_logps, pred_role_logits = pl.pallas_call(
        kernel,
        out_shape=out_shapes,
        grid=(1,),                       # whole problem (<100 KB) in one VMEM-resident step
        in_specs=in_specs,
        out_specs=out_specs,
        compiler_params=pltpu.CompilerParams(
            dimension_semantics=("arbitrary",),   # tiny workload: no cross-core sharding
            vmem_limit_bytes=8 * 1024 * 1024,     # explicit (small) budget; default 32 MiB unneeded
        ),
    )(*leaves)

    return {'pred_doc_event_logps': pred_doc_event_logps,
            'pred_role_logits': pred_role_logits}


# ----------------------------- parameters ------------------------------------
def _init_linear_t(key, n_in, n_out):
    """PyTorch-equivalent init, stored kernel-ready: W^T (n_in, n_out), b (1, n_out)."""
    kw, kb = jax.random.split(key)
    w = 0.02 * jax.random.normal(kw, (n_out, n_in), jnp.float32)   # PyTorch (out, in)
    b = 0.02 * jax.random.normal(kb, (n_out,), jnp.float32)
    return jnp.transpose(w), b.reshape(1, n_out)


def _self_attention_params(key):
    kq, kk, kv, ko = jax.random.split(key, 4)
    wq, bq = _init_linear_t(kq, H, H)
    wk, bk = _init_linear_t(kk, H, H)
    wv, bv = _init_linear_t(kv, H, H)
    wo, bo = _init_linear_t(ko, H, H)
    return {
        'sa_wqkv': jnp.concatenate([wq, wk, wv], axis=1),   # (H, 3H) packed once at init
        'sa_bqkv': jnp.concatenate([bq, bk, bv], axis=1),   # (1, 3H)
        'sa_wo': wo, 'sa_bo': bo,
        'sa_ln_g': jnp.ones((1, H), jnp.float32),
        'sa_ln_b': jnp.zeros((1, H), jnp.float32),
    }


def _cross_attention_params(key):
    kq, kk, kv, ko = jax.random.split(key, 4)
    wq, bq = _init_linear_t(kq, H, H)
    wk, bk = _init_linear_t(kk, H, H)
    wv, bv = _init_linear_t(kv, H, H)
    wo, bo = _init_linear_t(ko, H, H)
    return {
        'ca_wq': wq, 'ca_bq': bq,
        'ca_wkv': jnp.concatenate([wk, wv], axis=1),        # (H, 2H) packed K|V
        'ca_bkv': jnp.concatenate([bk, bv], axis=1),
        'ca_wo': wo, 'ca_bo': bo,
        'ca_ln_g': jnp.ones((1, H), jnp.float32),
        'ca_ln_b': jnp.zeros((1, H), jnp.float32),
    }


def _decoder_layer_params(key):
    ks, kc, ki, ko = jax.random.split(key, 4)
    inter_w, inter_b = _init_linear_t(ki, H, FF)
    out_w, out_b = _init_linear_t(ko, FF, H)
    p = {}
    p.update(_self_attention_params(ks))
    p.update(_cross_attention_params(kc))
    p.update({'inter_w': inter_w, 'inter_b': inter_b,
              'out_w': out_w, 'out_b': out_b,
              'out_ln_g': jnp.ones((1, H), jnp.float32),
              'out_ln_b': jnp.zeros((1, H), jnp.float32)})
    return p


def init_params(seed=0):
    key = jax.random.PRNGKey(seed)
    ks = jax.random.split(key, 12)
    ecls_w, ecls_b = _init_linear_t(ks[0], H, EVENT_TYPE_CLASSES)
    m1_w, m1_b = _init_linear_t(ks[5], H, H)
    m2_w, m2_b = _init_linear_t(ks[6], H, H)
    m3_w, m3_b = _init_linear_t(ks[7], H, H)
    return {
        'event_cls_w': ecls_w, 'event_cls_b': ecls_b,
        'query_embed': 0.02 * jax.random.normal(ks[1], (NUM_SETS, H), jnp.float32),
        'role_embed': 0.02 * jax.random.normal(ks[2], (ROLE_INDEX_NUM, H), jnp.float32),
        'role_embed4None': 0.02 * jax.random.normal(ks[3], (1, H), jnp.float32),
        'event_type_embed': 0.02 * jax.random.normal(ks[4], (NUM_EVENT_TYPE_EMBED, H),
                                                     jnp.float32),
        'ln_g': jnp.ones((1, H), jnp.float32),
        'ln_b': jnp.zeros((1, H), jnp.float32),
        'metric_1_w': m1_w, 'metric_1_b': m1_b,
        'metric_2_w': m2_w, 'metric_2_b': m2_b,
        'metric_3_w': m3_w, 'metric_3_b': m3_b,
        # nn.Linear(H, 1, bias=False).weight is (1, H); used as a row vector.
        'metric_4_w': 0.02 * jax.random.normal(ks[8], (1, H), jnp.float32),
        'set_layers': [_decoder_layer_params(k)
                       for k in jax.random.split(ks[9], NUM_SET_LAYERS)],
        'role_layers': [_decoder_layer_params(k)
                        for k in jax.random.split(ks[10], NUM_ROLE_LAYERS)],
    }


# ----------------------------- main ------------------------------------------
if __name__ == "__main__":
    NUM_SENTS, NUM_ARGS = 6, 4
    key = jax.random.PRNGKey(0)
    k1, k2 = jax.random.split(key)
    doc_sent_context = jax.random.normal(k1, (NUM_SENTS, H), jnp.float32)
    batch_span_context = jax.random.normal(k2, (NUM_ARGS, H), jnp.float32)

    params = init_params(0)
    event_type_pred = 0  # static python int (selects role list, event-type embedding)

    out = set_pred4dee_forward(params, doc_sent_context, batch_span_context, event_type_pred)
    out = jax.block_until_ready(out)

    assert out['pred_doc_event_logps'].shape == (NUM_SETS, EVENT_TYPE_CLASSES)
    assert out['pred_role_logits'].shape == (NUM_SETS, len(EVENT_TYPE2ROLE[event_type_pred]),
                                             NUM_ARGS + 1)
    print("KERNEL_OK")
</pallas_src>

<mosaic_0001>
module attributes {stable_mosaic.version = 11 : i64} {
  func.func @kernel(%arg0: i32, %arg1: memref<6x32xf32, #tpu.memory_space<vmem>>, %arg2: memref<11x32xf32, #tpu.memory_space<vmem>>, %arg3: memref<1x32xf32, #tpu.memory_space<vmem>>, %arg4: memref<1x3xf32, #tpu.memory_space<vmem>>, %arg5: memref<32x3xf32, #tpu.memory_space<vmem>>, %arg6: memref<1x32xf32, #tpu.memory_space<vmem>>, %arg7: memref<1x32xf32, #tpu.memory_space<vmem>>, %arg8: memref<1x32xf32, #tpu.memory_space<vmem>>, %arg9: memref<32x32xf32, #tpu.memory_space<vmem>>, %arg10: memref<1x32xf32, #tpu.memory_space<vmem>>, %arg11: memref<32x32xf32, #tpu.memory_space<vmem>>, %arg12: memref<1x32xf32, #tpu.memory_space<vmem>>, %arg13: memref<32x32xf32, #tpu.memory_space<vmem>>, %arg14: memref<1x32xf32, #tpu.memory_space<vmem>>, %arg15: memref<8x32xf32, #tpu.memory_space<vmem>>, %arg16: memref<1x64xf32, #tpu.memory_space<vmem>>, %arg17: memref<1x32xf32, #tpu.memory_space<vmem>>, %arg18: memref<1x32xf32, #tpu.memory_space<vmem>>, %arg19: memref<1x32xf32, #tpu.memory_space<vmem>>, %arg20: memref<1x32xf32, #tpu.memory_space<vmem>>, %arg21: memref<32x64xf32, #tpu.memory_space<vmem>>, %arg22: memref<32x32xf32, #tpu.memory_space<vmem>>, %arg23: memref<32x32xf32, #tpu.memory_space<vmem>>, %arg24: memref<1x64xf32, #tpu.memory_space<vmem>>, %arg25: memref<32x64xf32, #tpu.memory_space<vmem>>, %arg26: memref<1x32xf32, #tpu.memory_space<vmem>>, %arg27: memref<1x32xf32, #tpu.memory_space<vmem>>, %arg28: memref<1x32xf32, #tpu.memory_space<vmem>>, %arg29: memref<64x32xf32, #tpu.memory_space<vmem>>, %arg30: memref<1x32xf32, #tpu.memory_space<vmem>>, %arg31: memref<1x96xf32, #tpu.memory_space<vmem>>, %arg32: memref<1x32xf32, #tpu.memory_space<vmem>>, %arg33: memref<1x32xf32, #tpu.memory_space<vmem>>, %arg34: memref<32x32xf32, #tpu.memory_space<vmem>>, %arg35: memref<32x96xf32, #tpu.memory_space<vmem>>, %arg36: memref<3x32xf32, #tpu.memory_space<vmem>>, %arg37: memref<1x64xf32, #tpu.memory_space<vmem>>, %arg38: memref<1x32xf32, #tpu.memory_space<vmem>>, %arg39: memref<1x32xf32, #tpu.memory_space<vmem>>, %arg40: memref<1x32xf32, #tpu.memory_space<vmem>>, %arg41: memref<1x32xf32, #tpu.memory_space<vmem>>, %arg42: memref<32x64xf32, #tpu.memory_space<vmem>>, %arg43: memref<32x32xf32, #tpu.memory_space<vmem>>, %arg44: memref<32x32xf32, #tpu.memory_space<vmem>>, %arg45: memref<1x64xf32, #tpu.memory_space<vmem>>, %arg46: memref<32x64xf32, #tpu.memory_space<vmem>>, %arg47: memref<1x32xf32, #tpu.memory_space<vmem>>, %arg48: memref<1x32xf32, #tpu.memory_space<vmem>>, %arg49: memref<1x32xf32, #tpu.memory_space<vmem>>, %arg50: memref<64x32xf32, #tpu.memory_space<vmem>>, %arg51: memref<1x32xf32, #tpu.memory_space<vmem>>, %arg52: memref<1x96xf32, #tpu.memory_space<vmem>>, %arg53: memref<1x32xf32, #tpu.memory_space<vmem>>, %arg54: memref<1x32xf32, #tpu.memory_space<vmem>>, %arg55: memref<32x32xf32, #tpu.memory_space<vmem>>, %arg56: memref<32x96xf32, #tpu.memory_space<vmem>>, %arg57: memref<5x32xf32, #tpu.memory_space<vmem>>, %arg58: memref<8x3xf32, #tpu.memory_space<vmem>>, %arg59: memref<8x3x5xf32, #tpu.memory_space<vmem>>) attributes {dimension_semantics = [#tpu.dimension_semantics<arbitrary>], iteration_bounds = array<i64: 1>, scalar_prefetch = 0 : i64, scratch_operands = 0 : i64, tpu.core_type = #tpu.core_type<tc>, window_params = [{pipeline_mode = #tpu.pipeline_mode<synchronous>, transform_indices = @transform_0, window_bounds = array<i64: 6, 32>}, {pipeline_mode = #tpu.pipeline_mode<synchronous>, transform_indices = @transform_1, window_bounds = array<i64: 11, 32>}, {pipeline_mode = #tpu.pipeline_mode<synchronous>, transform_indices = @transform_2, window_bounds = array<i64: 1, 32>}, {pipeline_mode = #tpu.pipeline_mode<synchronous>, transform_indices = @transform_3, window_bounds = array<i64: 1, 3>}, {pipeline_mode = #tpu.pipeline_mode<synchronous>, transform_indices = @transform_4, window_bounds = array<i64: 32, 3>}, {pipeline_mode = #tpu.pipeline_mode<synchronous>, transform_indices = @transform_5, window_bounds = array<i64: 1, 32>}, {pipeline_mode = #tpu.pipeline_mode<synchronous>, transform_indices = @transform_6, window_bounds = array<i64: 1, 32>}, {pipeline_mode = #tpu.pipeline_mode<synchronous>, transform_indices = @transform_7, window_bounds = array<i64: 1, 32>}, {pipeline_mode = #tpu.pipeline_mode<synchronous>, transform_indices = @transform_8, window_bounds = array<i64: 32, 32>}, {pipeline_mode = #tpu.pipeline_mode<synchronous>, transform_indices = @transform_9, window_bounds = array<i64: 1, 32>}, {pipeline_mode = #tpu.pipeline_mode<synchronous>, transform_indices = @transform_10, window_bounds = array<i64: 32, 32>}, {pipeline_mode = #tpu.pipeline_mode<synchronous>, transform_indices = @transform_11, window_bounds = array<i64: 1, 32>}, {pipeline_mode = #tpu.pipeline_mode<synchronous>, transform_indices = @transform_12, window_bounds = array<i64: 32, 32>}, {pipeline_mode = #tpu.pipeline_mode<synchronous>, transform_indices = @transform_13, window_bounds = array<i64: 1, 32>}, {pipeline_mode = #tpu.pipeline_mode<synchronous>, transform_indices = @transform_14, window_bounds = array<i64: 8, 32>}, {pipeline_mode = #tpu.pipeline_mode<synchronous>, transform_indices = @transform_15, window_bounds = array<i64: 1, 64>}, {pipeline_mode = #tpu.pipeline_mode<synchronous>, transform_indices = @transform_16, window_bounds = array<i64: 1, 32>}, {pipeline_mode = #tpu.pipeline_mode<synchronous>, transform_indices = @transform_17, window_bounds = array<i64: 1, 32>}, {pipeline_mode = #tpu.pipeline_mode<synchronous>, transform_indices = @transform_18, window_bounds = array<i64: 1, 32>}, {pipeline_mode = #tpu.pipeline_mode<synchronous>, transform_indices = @transform_19, window_bounds = array<i64: 1, 32>}, {pipeline_mode = #tpu.pipeline_mode<synchronous>, transform_indices = @transform_20, window_bounds = array<i64: 32, 64>}, {pipeline_mode = #tpu.pipeline_mode<synchronous>, transform_indices = @transform_21, window_bounds = array<i64: 32, 32>}, {pipeline_mode = #tpu.pipeline_mode<synchronous>, transform_indices = @transform_22, window_bounds = array<i64: 32, 32>}, {pipeline_mode = #tpu.pipeline_mode<synchronous>, transform_indices = @transform_23, window_bounds = array<i64: 1, 64>}, {pipeline_mode = #tpu.pipeline_mode<synchronous>, transform_indices = @transform_24, window_bounds = array<i64: 32, 64>}, {pipeline_mode = #tpu.pipeline_mode<synchronous>, transform_indices = @transform_25, window_bounds = array<i64: 1, 32>}, {pipeline_mode = #tpu.pipeline_mode<synchronous>, transform_indices = @transform_26, window_bounds = array<i64: 1, 32>}, {pipeline_mode = #tpu.pipeline_mode<synchronous>, transform_indices = @transform_27, window_bounds = array<i64: 1, 32>}, {pipeline_mode = #tpu.pipeline_mode<synchronous>, transform_indices = @transform_28, window_bounds = array<i64: 64, 32>}, {pipeline_mode = #tpu.pipeline_mode<synchronous>, transform_indices = @transform_29, window_bounds = array<i64: 1, 32>}, {pipeline_mode = #tpu.pipeline_mode<synchronous>, transform_indices = @transform_30, window_bounds = array<i64: 1, 96>}, {pipeline_mode = #tpu.pipeline_mode<synchronous>, transform_indices = @transform_31, window_bounds = array<i64: 1, 32>}, {pipeline_mode = #tpu.pipeline_mode<synchronous>, transform_indices = @transform_32, window_bounds = array<i64: 1, 32>}, {pipeline_mode = #tpu.pipeline_mode<synchronous>, transform_indices = @transform_33, window_bounds = array<i64: 32, 32>}, {pipeline_mode = #tpu.pipeline_mode<synchronous>, transform_indices = @transform_34, window_bounds = array<i64: 32, 96>}, {pipeline_mode = #tpu.pipeline_mode<synchronous>, transform_indices = @transform_35, window_bounds = array<i64: 3, 32>}, {pipeline_mode = #tpu.pipeline_mode<synchronous>, transform_indices = @transform_36, window_bounds = array<i64: 1, 64>}, {pipeline_mode = #tpu.pipeline_mode<synchronous>, transform_indices = @transform_37, window_bounds = array<i64: 1, 32>}, {pipeline_mode = #tpu.pipeline_mode<synchronous>, transform_indices = @transform_38, window_bounds = array<i64: 1, 32>}, {pipeline_mode = #tpu.pipeline_mode<synchronous>, transform_indices = @transform_39, window_bounds = array<i64: 1, 32>}, {pipeline_mode = #tpu.pipeline_mode<synchronous>, transform_indices = @transform_40, window_bounds = array<i64: 1, 32>}, {pipeline_mode = #tpu.pipeline_mode<synchronous>, transform_indices = @transform_41, window_bounds = array<i64: 32, 64>}, {pipeline_mode = #tpu.pipeline_mode<synchronous>, transform_indices = @transform_42, window_bounds = array<i64: 32, 32>}, {pipeline_mode = #tpu.pipeline_mode<synchronous>, transform_indices = @transform_43, window_bounds = array<i64: 32, 32>}, {pipeline_mode = #tpu.pipeline_mode<synchronous>, transform_indices = @transform_44, window_bounds = array<i64: 1, 64>}, {pipeline_mode = #tpu.pipeline_mode<synchronous>, transform_indices = @transform_45, window_bounds = array<i64: 32, 64>}, {pipeline_mode = #tpu.pipeline_mode<synchronous>, transform_indices = @transform_46, window_bounds = array<i64: 1, 32>}, {pipeline_mode = #tpu.pipeline_mode<synchronous>, transform_indices = @transform_47, window_bounds = array<i64: 1, 32>}, {pipeline_mode = #tpu.pipeline_mode<synchronous>, transform_indices = @transform_48, window_bounds = array<i64: 1, 32>}, {pipeline_mode = #tpu.pipeline_mode<synchronous>, transform_indices = @transform_49, window_bounds = array<i64: 64, 32>}, {pipeline_mode = #tpu.pipeline_mode<synchronous>, transform_indices = @transform_50, window_bounds = array<i64: 1, 32>}, {pipeline_mode = #tpu.pipeline_mode<synchronous>, transform_indices = @transform_51, window_bounds = array<i64: 1, 96>}, {pipeline_mode = #tpu.pipeline_mode<synchronous>, transform_indices = @transform_52, window_bounds = array<i64: 1, 32>}, {pipeline_mode = #tpu.pipeline_mode<synchronous>, transform_indices = @transform_53, window_bounds = array<i64: 1, 32>}, {pipeline_mode = #tpu.pipeline_mode<synchronous>, transform_indices = @transform_54, window_bounds = array<i64: 32, 32>}, {pipeline_mode = #tpu.pipeline_mode<synchronous>, transform_indices = @transform_55, window_bounds = array<i64: 32, 96>}, {pipeline_mode = #tpu.pipeline_mode<synchronous>, transform_indices = @transform_56, window_bounds = array<i64: 5, 32>}, {pipeline_mode = #tpu.pipeline_mode<synchronous>, transform_indices = @transform_57, window_bounds = array<i64: 8, 3>}, {pipeline_mode = #tpu.pipeline_mode<synchronous>, transform_indices = @transform_58, window_bounds = array<i64: 8, 3, 5>}]} {
    %c0 = arith.constant 0 : index
    %c0_0 = arith.constant 0 : index
    %0 = vector.load %arg1[%c0, %c0_0] : memref<6x32xf32, #tpu.memory_space<vmem>>, vector<6x32xf32>
    %c0_1 = arith.constant 0 : index
    %c0_2 = arith.constant 0 : index
    %1 = vector.load %arg2[%c0_1, %c0_2] : memref<11x32xf32, #tpu.memory_space<vmem>>, vector<11x32xf32>
    %c0_3 = arith.constant 0 : index
    %c0_4 = arith.constant 0 : index
    %2 = vector.load %arg3[%c0_3, %c0_4] : memref<1x32xf32, #tpu.memory_space<vmem>>, vector<1x32xf32>
    %c0_5 = arith.constant 0 : index
    %c0_6 = arith.constant 0 : index
    %3 = vector.load %arg4[%c0_5, %c0_6] : memref<1x3xf32, #tpu.memory_space<vmem>>, vector<1x3xf32>
    %c0_7 = arith.constant 0 : index
    %c0_8 = arith.constant 0 : index
    %4 = vector.load %arg5[%c0_7, %c0_8] : memref<32x3xf32, #tpu.memory_space<vmem>>, vector<32x3xf32>
    %c0_9 = arith.constant 0 : index
    %c0_10 = arith.constant 0 : index
    %5 = vector.load %arg6[%c0_9, %c0_10] : memref<1x32xf32, #tpu.memory_space<vmem>>, vector<1x32xf32>
    %c0_11 = arith.constant 0 : index
    %c0_12 = arith.constant 0 : index
    %6 = vector.load %arg7[%c0_11, %c0_12] : memref<1x32xf32, #tpu.memory_space<vmem>>, vector<1x32xf32>
    %c0_13 = arith.constant 0 : index
    %c0_14 = arith.constant 0 : index
    %7 = vector.load %arg8[%c0_13, %c0_14] : memref<1x32xf32, #tpu.memory_space<vmem>>, vector<1x32xf32>
    %c0_15 = arith.constant 0 : index
    %c0_16 = arith.constant 0 : index
    %8 = vector.load %arg9[%c0_15, %c0_16] : memref<32x32xf32, #tpu.memory_space<vmem>>, vector<32x32xf32>
    %c0_17 = arith.constant 0 : index
    %c0_18 = arith.constant 0 : index
    %9 = vector.load %arg10[%c0_17, %c0_18] : memref<1x32xf32, #tpu.memory_space<vmem>>, vector<1x32xf32>
    %c0_19 = arith.constant 0 : index
    %c0_20 = arith.constant 0 : index
    %10 = vector.load %arg11[%c0_19, %c0_20] : memref<32x32xf32, #tpu.memory_space<vmem>>, vector<32x32xf32>
    %c0_21 = arith.constant 0 : index
    %c0_22 = arith.constant 0 : index
    %11 = vector.load %arg12[%c0_21, %c0_22] : memref<1x32xf32, #tpu.memory_space<vmem>>, vector<1x32xf32>
    %c0_23 = arith.constant 0 : index
    %c0_24 = arith.constant 0 : index
    %12 = vector.load %arg13[%c0_23, %c0_24] : memref<32x32xf32, #tpu.memory_space<vmem>>, vector<32x32xf32>
    %c0_25 = arith.constant 0 : index
    %c0_26 = arith.constant 0 : index
    %13 = vector.load %arg14[%c0_25, %c0_26] : memref<1x32xf32, #tpu.memory_space<vmem>>, vector<1x32xf32>
    %c0_27 = arith.constant 0 : index
    %c0_28 = arith.constant 0 : index
    %14 = vector.load %arg15[%c0_27, %c0_28] : memref<8x32xf32, #tpu.memory_space<vmem>>, vector<8x32xf32>
    %c0_29 = arith.constant 0 : index
    %c0_30 = arith.constant 0 : index
    %15 = vector.load %arg16[%c0_29, %c0_30] : memref<1x64xf32, #tpu.memory_space<vmem>>, vector<1x64xf32>
    %c0_31 = arith.constant 0 : index
    %c0_32 = arith.constant 0 : index
    %16 = vector.load %arg17[%c0_31, %c0_32] : memref<1x32xf32, #tpu.memory_space<vmem>>, vector<1x32xf32>
    %c0_33 = arith.constant 0 : index
    %c0_34 = arith.constant 0 : index
    %17 = vector.load %arg18[%c0_33, %c0_34] : memref<1x32xf32, #tpu.memory_space<vmem>>, vector<1x32xf32>
    %c0_35 = arith.constant 0 : index
    %c0_36 = arith.constant 0 : index
    %18 = vector.load %arg19[%c0_35, %c0_36] : memref<1x32xf32, #tpu.memory_space<vmem>>, vector<1x32xf32>
    %c0_37 = arith.constant 0 : index
    %c0_38 = arith.constant 0 : index
    %19 = vector.load %arg20[%c0_37, %c0_38] : memref<1x32xf32, #tpu.memory_space<vmem>>, vector<1x32xf32>
    %c0_39 = arith.constant 0 : index
    %c0_40 = arith.constant 0 : index
    %20 = vector.load %arg21[%c0_39, %c0_40] : memref<32x64xf32, #tpu.memory_space<vmem>>, vector<32x64xf32>
    %c0_41 = arith.constant 0 : index
    %c0_42 = arith.constant 0 : index
    %21 = vector.load %arg22[%c0_41, %c0_42] : memref<32x32xf32, #tpu.memory_space<vmem>>, vector<32x32xf32>
    %c0_43 = arith.constant 0 : index
    %c0_44 = arith.constant 0 : index
    %22 = vector.load %arg23[%c0_43, %c0_44] : memref<32x32xf32, #tpu.memory_space<vmem>>, vector<32x32xf32>
    %c0_45 = arith.constant 0 : index
    %c0_46 = arith.constant 0 : index
    %23 = vector.load %arg24[%c0_45, %c0_46] : memref<1x64xf32, #tpu.memory_space<vmem>>, vector<1x64xf32>
    %c0_47 = arith.constant 0 : index
    %c0_48 = arith.constant 0 : index
    %24 = vector.load %arg25[%c0_47, %c0_48] : memref<32x64xf32, #tpu.memory_space<vmem>>, vector<32x64xf32>
    %c0_49 = arith.constant 0 : index
    %c0_50 = arith.constant 0 : index
    %25 = vector.load %arg26[%c0_49, %c0_50] : memref<1x32xf32, #tpu.memory_space<vmem>>, vector<1x32xf32>
    %c0_51 = arith.constant 0 : index
    %c0_52 = arith.constant 0 : index
    %26 = vector.load %arg27[%c0_51, %c0_52] : memref<1x32xf32, #tpu.memory_space<vmem>>, vector<1x32xf32>
    %c0_53 = arith.constant 0 : index
    %c0_54 = arith.constant 0 : index
    %27 = vector.load %arg28[%c0_53, %c0_54] : memref<1x32xf32, #tpu.memory_space<vmem>>, vector<1x32xf32>
    %c0_55 = arith.constant 0 : index
    %c0_56 = arith.constant 0 : index
    %28 = vector.load %arg29[%c0_55, %c0_56] : memref<64x32xf32, #tpu.memory_space<vmem>>, vector<64x32xf32>
    %c0_57 = arith.constant 0 : index
    %c0_58 = arith.constant 0 : index
    %29 = vector.load %arg30[%c0_57, %c0_58] : memref<1x32xf32, #tpu.memory_space<vmem>>, vector<1x32xf32>
    %c0_59 = arith.constant 0 : index
    %c0_60 = arith.constant 0 : index
    %30 = vector.load %arg31[%c0_59, %c0_60] : memref<1x96xf32, #tpu.memory_space<vmem>>, vector<1x96xf32>
    %c0_61 = arith.constant 0 : index
    %c0_62 = arith.constant 0 : index
    %31 = vector.load %arg32[%c0_61, %c0_62] : memref<1x32xf32, #tpu.memory_space<vmem>>, vector<1x32xf32>
    %c0_63 = arith.constant 0 : index
    %c0_64 = arith.constant 0 : index
    %32 = vector.load %arg33[%c0_63, %c0_64] : memref<1x32xf32, #tpu.memory_space<vmem>>, vector<1x32xf32>
    %c0_65 = arith.constant 0 : index
    %c0_66 = arith.constant 0 : index
    %33 = vector.load %arg34[%c0_65, %c0_66] : memref<32x32xf32, #tpu.memory_space<vmem>>, vector<32x32xf32>
    %c0_67 = arith.constant 0 : index
    %c0_68 = arith.constant 0 : index
    %34 = vector.load %arg35[%c0_67, %c0_68] : memref<32x96xf32, #tpu.memory_space<vmem>>, vector<32x96xf32>
    %c0_69 = arith.constant 0 : index
    %c0_70 = arith.constant 0 : index
    %35 = vector.load %arg36[%c0_69, %c0_70] : memref<3x32xf32, #tpu.memory_space<vmem>>, vector<3x32xf32>
    %c0_71 = arith.constant 0 : index
    %c0_72 = arith.constant 0 : index
    %36 = vector.load %arg37[%c0_71, %c0_72] : memref<1x64xf32, #tpu.memory_space<vmem>>, vector<1x64xf32>
    %c0_73 = arith.constant 0 : index
    %c0_74 = arith.constant 0 : index
    %37 = vector.load %arg38[%c0_73, %c0_74] : memref<1x32xf32, #tpu.memory_space<vmem>>, vector<1x32xf32>
    %c0_75 = arith.constant 0 : index
    %c0_76 = arith.constant 0 : index
    %38 = vector.load %arg39[%c0_75, %c0_76] : memref<1x32xf32, #tpu.memory_space<vmem>>, vector<1x32xf32>
    %c0_77 = arith.constant 0 : index
    %c0_78 = arith.constant 0 : index
    %39 = vector.load %arg40[%c0_77, %c0_78] : memref<1x32xf32, #tpu.memory_space<vmem>>, vector<1x32xf32>
    %c0_79 = arith.constant 0 : index
    %c0_80 = arith.constant 0 : index
    %40 = vector.load %arg41[%c0_79, %c0_80] : memref<1x32xf32, #tpu.memory_space<vmem>>, vector<1x32xf32>
    %c0_81 = arith.constant 0 : index
    %c0_82 = arith.constant 0 : index
    %41 = vector.load %arg42[%c0_81, %c0_82] : memref<32x64xf32, #tpu.memory_space<vmem>>, vector<32x64xf32>
    %c0_83 = arith.constant 0 : index
    %c0_84 = arith.constant 0 : index
    %42 = vector.load %arg43[%c0_83, %c0_84] : memref<32x32xf32, #tpu.memory_space<vmem>>, vector<32x32xf32>
    %c0_85 = arith.constant 0 : index
    %c0_86 = arith.constant 0 : index
    %43 = vector.load %arg44[%c0_85, %c0_86] : memref<32x32xf32, #tpu.memory_space<vmem>>, vector<32x32xf32>
    %c0_87 = arith.constant 0 : index
    %c0_88 = arith.constant 0 : index
    %44 = vector.load %arg45[%c0_87, %c0_88] : memref<1x64xf32, #tpu.memory_space<vmem>>, vector<1x64xf32>
    %c0_89 = arith.constant 0 : index
    %c0_90 = arith.constant 0 : index
    %45 = vector.load %arg46[%c0_89, %c0_90] : memref<32x64xf32, #tpu.memory_space<vmem>>, vector<32x64xf32>
    %c0_91 = arith.constant 0 : index
    %c0_92 = arith.constant 0 : index
    %46 = vector.load %arg47[%c0_91, %c0_92] : memref<1x32xf32, #tpu.memory_space<vmem>>, vector<1x32xf32>
    %c0_93 = arith.constant 0 : index
    %c0_94 = arith.constant 0 : index
    %47 = vector.load %arg48[%c0_93, %c0_94] : memref<1x32xf32, #tpu.memory_space<vmem>>, vector<1x32xf32>
    %c0_95 = arith.constant 0 : index
    %c0_96 = arith.constant 0 : index
    %48 = vector.load %arg49[%c0_95, %c0_96] : memref<1x32xf32, #tpu.memory_space<vmem>>, vector<1x32xf32>
    %c0_97 = arith.constant 0 : index
    %c0_98 = arith.constant 0 : index
    %49 = vector.load %arg50[%c0_97, %c0_98] : memref<64x32xf32, #tpu.memory_space<vmem>>, vector<64x32xf32>
    %c0_99 = arith.constant 0 : index
    %c0_100 = arith.constant 0 : index
    %50 = vector.load %arg51[%c0_99, %c0_100] : memref<1x32xf32, #tpu.memory_space<vmem>>, vector<1x32xf32>
    %c0_101 = arith.constant 0 : index
    %c0_102 = arith.constant 0 : index
    %51 = vector.load %arg52[%c0_101, %c0_102] : memref<1x96xf32, #tpu.memory_space<vmem>>, vector<1x96xf32>
    %c0_103 = arith.constant 0 : index
    %c0_104 = arith.constant 0 : index
    %52 = vector.load %arg53[%c0_103, %c0_104] : memref<1x32xf32, #tpu.memory_space<vmem>>, vector<1x32xf32>
    %c0_105 = arith.constant 0 : index
    %c0_106 = arith.constant 0 : index
    %53 = vector.load %arg54[%c0_105, %c0_106] : memref<1x32xf32, #tpu.memory_space<vmem>>, vector<1x32xf32>
    %c0_107 = arith.constant 0 : index
    %c0_108 = arith.constant 0 : index
    %54 = vector.load %arg55[%c0_107, %c0_108] : memref<32x32xf32, #tpu.memory_space<vmem>>, vector<32x32xf32>
    %c0_109 = arith.constant 0 : index
    %c0_110 = arith.constant 0 : index
    %55 = vector.load %arg56[%c0_109, %c0_110] : memref<32x96xf32, #tpu.memory_space<vmem>>, vector<32x96xf32>
    %c0_111 = arith.constant 0 : index
    %c0_112 = arith.constant 0 : index
    %56 = vector.load %arg57[%c0_111, %c0_112] : memref<5x32xf32, #tpu.memory_space<vmem>>, vector<5x32xf32>
    %cst = arith.constant dense<0.000000e+00> : vector<8xf32>
    %57 = vector.multi_reduction <add>, %14, %cst [1] : vector<8x32xf32> to vector<8xf32>
    %58 = vector.shape_cast %57 : vector<8xf32> to vector<8x1xf32>
    %cst_113 = arith.constant 3.200000e+01 : f32
    %59 = vector.broadcast %cst_113 : f32 to vector<8x1xf32>
    %60 = arith.divf %58, %59 : vector<8x1xf32>
    %61 = vector.broadcast %60 : vector<8x1xf32> to vector<8x32xf32>
    %62 = arith.subf %14, %61 : vector<8x32xf32>
    %63 = arith.mulf %62, %62 : vector<8x32xf32>
    %cst_114 = arith.constant dense<0.000000e+00> : vector<8xf32>
    %64 = vector.multi_reduction <add>, %63, %cst_114 [1] : vector<8x32xf32> to vector<8xf32>
    %65 = vector.shape_cast %64 : vector<8xf32> to vector<8x1xf32>
    %cst_115 = arith.constant 3.200000e+01 : f32
    %66 = vector.broadcast %cst_115 : f32 to vector<8x1xf32>
    %67 = arith.divf %65, %66 : vector<8x1xf32>
    %68 = vector.broadcast %60 : vector<8x1xf32> to vector<8x32xf32>
    %69 = arith.subf %14, %68 : vector<8x32xf32>
    %cst_116 = arith.constant 9.99999996E-13 : f32
    %70 = vector.broadcast %cst_116 : f32 to vector<8x1xf32>
    %71 = arith.addf %67, %70 : vector<8x1xf32>
    %72 = math.rsqrt %71 : vector<8x1xf32>
    %73 = vector.broadcast %72 : vector<8x1xf32> to vector<8x32xf32>
    %74 = arith.mulf %69, %73 : vector<8x32xf32>
    %75 = vector.broadcast %6 : vector<1x32xf32> to vector<8x32xf32>
    %76 = arith.mulf %74, %75 : vector<8x32xf32>
    %77 = vector.broadcast %5 : vector<1x32xf32> to vector<8x32xf32>
    %78 = arith.addf %76, %77 : vector<8x32xf32>
    %79 = vector.broadcast %2 : vector<1x32xf32> to vector<8x32xf32>
    %80 = arith.addf %78, %79 : vector<8x32xf32>
    %cst_117 = arith.constant dense<0.000000e+00> : vector<8x96xf32>
    %81 = tpu.matmul %80, %55, %cst_117 {dimension_numbers = #tpu.dot_dimension_numbers<[1], [0], [0], [1], [0, 0, 1, 1], [], []>} : vector<8x32xf32>, vector<32x96xf32>, vector<8x96xf32> -> vector<8x96xf32>
    %82 = vector.broadcast %51 : vector<1x96xf32> to vector<8x96xf32>
    %83 = arith.addf %81, %82 : vector<8x96xf32>
    %84 = vector.extract_strided_slice %83 {offsets = [0, 0], sizes = [8, 32], strides = [1, 1]} : vector<8x96xf32> to vector<8x32xf32>
    %85 = vector.extract_strided_slice %83 {offsets = [0, 32], sizes = [8, 32], strides = [1, 1]} : vector<8x96xf32> to vector<8x32xf32>
    %86 = vector.extract_strided_slice %83 {offsets = [0, 64], sizes = [8, 32], strides = [1, 1]} : vector<8x96xf32> to vector<8x32xf32>
    %87 = vector.extract_strided_slice %84 {offsets = [0, 0], sizes = [8, 8], strides = [1, 1]} : vector<8x32xf32> to vector<8x8xf32>
    %88 = vector.extract_strided_slice %85 {offsets = [0, 0], sizes = [8, 8], strides = [1, 1]} : vector<8x32xf32> to vector<8x8xf32>
    %89 = vector.extract_strided_slice %86 {offsets = [0, 0], sizes = [8, 8], strides = [1, 1]} : vector<8x32xf32> to vector<8x8xf32>
    %cst_118 = arith.constant dense<0.000000e+00> : vector<8x8xf32>
    %90 = tpu.matmul %87, %88, %cst_118 {dimension_numbers = #tpu.dot_dimension_numbers<[1], [1], [0], [0], [0, 0, 1, 0], [], []>} : vector<8x8xf32>, vector<8x8xf32>, vector<8x8xf32> -> vector<8x8xf32>
    %cst_119 = arith.constant 0.353553385 : f32
    %91 = vector.broadcast %cst_119 : f32 to vector<8x8xf32>
    %92 = arith.mulf %90, %91 : vector<8x8xf32>
    %cst_120 = arith.constant dense<0xFF800000> : vector<8xf32>
    %93 = vector.multi_reduction <maximumf>, %92, %cst_120 [1] : vector<8x8xf32> to vector<8xf32>
    %94 = vector.shape_cast %93 : vector<8xf32> to vector<8x1xf32>
    %95 = vector.broadcast %94 : vector<8x1xf32> to vector<8x8xf32>
    %96 = arith.subf %92, %95 : vector<8x8xf32>
    %97 = math.exp %96 : vector<8x8xf32>
    %cst_121 = arith.constant dense<0.000000e+00> : vector<8xf32>
    %98 = vector.multi_reduction <add>, %97, %cst_121 [1] : vector<8x8xf32> to vector<8xf32>
    %99 = vector.shape_cast %98 : vector<8xf32> to vector<8x1xf32>
    %100 = tpu.reciprocal %99 {approx = true} : vector<8x1xf32> -> vector<8x1xf32>
    %101 = vector.broadcast %100 : vector<8x1xf32> to vector<8x8xf32>
    %102 = arith.mulf %97, %101 : vector<8x8xf32>
    %cst_122 = arith.constant dense<0.000000e+00> : vector<8x8xf32>
    %103 = tpu.matmul %102, %89, %cst_122 {dimension_numbers = #tpu.dot_dimension_numbers<[1], [0], [0], [1], [0, 0, 1, 1], [], []>} : vector<8x8xf32>, vector<8x8xf32>, vector<8x8xf32> -> vector<8x8xf32>
    %104 = vector.extract_strided_slice %54 {offsets = [0, 0], sizes = [8, 32], strides = [1, 1]} : vector<32x32xf32> to vector<8x32xf32>
    %cst_123 = arith.constant dense<0.000000e+00> : vector<8x32xf32>
    %105 = tpu.matmul %103, %104, %cst_123 {dimension_numbers = #tpu.dot_dimension_numbers<[1], [0], [0], [1], [0, 0, 1, 1], [], []>} : vector<8x8xf32>, vector<8x32xf32>, vector<8x32xf32> -> vector<8x32xf32>
    %106 = vector.extract_strided_slice %84 {offsets = [0, 8], sizes = [8, 8], strides = [1, 1]} : vector<8x32xf32> to vector<8x8xf32>
    %107 = vector.extract_strided_slice %85 {offsets = [0, 8], sizes = [8, 8], strides = [1, 1]} : vector<8x32xf32> to vector<8x8xf32>
    %108 = vector.extract_strided_slice %86 {offsets = [0, 8], sizes = [8, 8], strides = [1, 1]} : vector<8x32xf32> to vector<8x8xf32>
    %cst_124 = arith.constant dense<0.000000e+00> : vector<8x8xf32>
    %109 = tpu.matmul %106, %107, %cst_124 {dimension_numbers = #tpu.dot_dimension_numbers<[1], [1], [0], [0], [0, 0, 1, 0], [], []>} : vector<8x8xf32>, vector<8x8xf32>, vector<8x8xf32> -> vector<8x8xf32>
    %cst_125 = arith.constant 0.353553385 : f32
    %110 = vector.broadcast %cst_125 : f32 to vector<8x8xf32>
    %111 = arith.mulf %109, %110 : vector<8x8xf32>
    %cst_126 = arith.constant dense<0xFF800000> : vector<8xf32>
    %112 = vector.multi_reduction <maximumf>, %111, %cst_126 [1] : vector<8x8xf32> to vector<8xf32>
    %113 = vector.shape_cast %112 : vector<8xf32> to vector<8x1xf32>
    %114 = vector.broadcast %113 : vector<8x1xf32> to vector<8x8xf32>
    %115 = arith.subf %111, %114 : vector<8x8xf32>
    %116 = math.exp %115 : vector<8x8xf32>
    %cst_127 = arith.constant dense<0.000000e+00> : vector<8xf32>
    %117 = vector.multi_reduction <add>, %116, %cst_127 [1] : vector<8x8xf32> to vector<8xf32>
    %118 = vector.shape_cast %117 : vector<8xf32> to vector<8x1xf32>
    %119 = tpu.reciprocal %118 {approx = true} : vector<8x1xf32> -> vector<8x1xf32>
    %120 = vector.broadcast %119 : vector<8x1xf32> to vector<8x8xf32>
    %121 = arith.mulf %116, %120 : vector<8x8xf32>
    %cst_128 = arith.constant dense<0.000000e+00> : vector<8x8xf32>
    %122 = tpu.matmul %121, %108, %cst_128 {dimension_numbers = #tpu.dot_dimension_numbers<[1], [0], [0], [1], [0, 0, 1, 1], [], []>} : vector<8x8xf32>, vector<8x8xf32>, vector<8x8xf32> -> vector<8x8xf32>
    %123 = vector.extract_strided_slice %54 {offsets = [8, 0], sizes = [8, 32], strides = [1, 1]} : vector<32x32xf32> to vector<8x32xf32>
    %cst_129 = arith.constant dense<0.000000e+00> : vector<8x32xf32>
    %124 = tpu.matmul %122, %123, %cst_129 {dimension_numbers = #tpu.dot_dimension_numbers<[1], [0], [0], [1], [0, 0, 1, 1], [], []>} : vector<8x8xf32>, vector<8x32xf32>, vector<8x32xf32> -> vector<8x32xf32>
    %125 = arith.addf %105, %124 : vector<8x32xf32>
    %126 = vector.extract_strided_slice %84 {offsets = [0, 16], sizes = [8, 8], strides = [1, 1]} : vector<8x32xf32> to vector<8x8xf32>
    %127 = vector.extract_strided_slice %85 {offsets = [0, 16], sizes = [8, 8], strides = [1, 1]} : vector<8x32xf32> to vector<8x8xf32>
    %128 = vector.extract_strided_slice %86 {offsets = [0, 16], sizes = [8, 8], strides = [1, 1]} : vector<8x32xf32> to vector<8x8xf32>
    %cst_130 = arith.constant dense<0.000000e+00> : vector<8x8xf32>
    %129 = tpu.matmul %126, %127, %cst_130 {dimension_numbers = #tpu.dot_dimension_numbers<[1], [1], [0], [0], [0, 0, 1, 0], [], []>} : vector<8x8xf32>, vector<8x8xf32>, vector<8x8xf32> -> vector<8x8xf32>
    %cst_131 = arith.constant 0.353553385 : f32
    %130 = vector.broadcast %cst_131 : f32 to vector<8x8xf32>
    %131 = arith.mulf %129, %130 : vector<8x8xf32>
    %cst_132 = arith.constant dense<0xFF800000> : vector<8xf32>
    %132 = vector.multi_reduction <maximumf>, %131, %cst_132 [1] : vector<8x8xf32> to vector<8xf32>
    %133 = vector.shape_cast %132 : vector<8xf32> to vector<8x1xf32>
    %134 = vector.broadcast %133 : vector<8x1xf32> to vector<8x8xf32>
    %135 = arith.subf %131, %134 : vector<8x8xf32>
    %136 = math.exp %135 : vector<8x8xf32>
    %cst_133 = arith.constant dense<0.000000e+00> : vector<8xf32>
    %137 = vector.multi_reduction <add>, %136, %cst_133 [1] : vector<8x8xf32> to vector<8xf32>
    %138 = vector.shape_cast %137 : vector<8xf32> to vector<8x1xf32>
    %139 = tpu.reciprocal %138 {approx = true} : vector<8x1xf32> -> vector<8x1xf32>
    %140 = vector.broadcast %139 : vector<8x1xf32> to vector<8x8xf32>
    %141 = arith.mulf %136, %140 : vector<8x8xf32>
    %cst_134 = arith.constant dense<0.000000e+00> : vector<8x8xf32>
    %142 = tpu.matmul %141, %128, %cst_134 {dimension_numbers = #tpu.dot_dimension_numbers<[1], [0], [0], [1], [0, 0, 1, 1], [], []>} : vector<8x8xf32>, vector<8x8xf32>, vector<8x8xf32> -> vector<8x8xf32>
    %143 = vector.extract_strided_slice %54 {offsets = [16, 0], sizes = [8, 32], strides = [1, 1]} : vector<32x32xf32> to vector<8x32xf32>
    %cst_135 = arith.constant dense<0.000000e+00> : vector<8x32xf32>
    %144 = tpu.matmul %142, %143, %cst_135 {dimension_numbers = #tpu.dot_dimension_numbers<[1], [0], [0], [1], [0, 0, 1, 1], [], []>} : vector<8x8xf32>, vector<8x32xf32>, vector<8x32xf32> -> vector<8x32xf32>
    %145 = arith.addf %125, %144 : vector<8x32xf32>
    %146 = vector.extract_strided_slice %84 {offsets = [0, 24], sizes = [8, 8], strides = [1, 1]} : vector<8x32xf32> to vector<8x8xf32>
    %147 = vector.extract_strided_slice %85 {offsets = [0, 24], sizes = [8, 8], strides = [1, 1]} : vector<8x32xf32> to vector<8x8xf32>
    %148 = vector.extract_strided_slice %86 {offsets = [0, 24], sizes = [8, 8], strides = [1, 1]} : vector<8x32xf32> to vector<8x8xf32>
    %cst_136 = arith.constant dense<0.000000e+00> : vector<8x8xf32>
    %149 = tpu.matmul %146, %147, %cst_136 {dimension_numbers = #tpu.dot_dimension_numbers<[1], [1], [0], [0], [0, 0, 1, 0], [], []>} : vector<8x8xf32>, vector<8x8xf32>, vector<8x8xf32> -> vector<8x8xf32>
    %cst_137 = arith.constant 0.353553385 : f32
    %150 = vector.broadcast %cst_137 : f32 to vector<8x8xf32>
    %151 = arith.mulf %149, %150 : vector<8x8xf32>
    %cst_138 = arith.constant dense<0xFF800000> : vector<8xf32>
    %152 = vector.multi_reduction <maximumf>, %151, %cst_138 [1] : vector<8x8xf32> to vector<8xf32>
    %153 = vector.shape_cast %152 : vector<8xf32> to vector<8x1xf32>
    %154 = vector.broadcast %153 : vector<8x1xf32> to vector<8x8xf32>
    %155 = arith.subf %151, %154 : vector<8x8xf32>
    %156 = math.exp %155 : vector<8x8xf32>
    %cst_139 = arith.constant dense<0.000000e+00> : vector<8xf32>
    %157 = vector.multi_reduction <add>, %156, %cst_139 [1] : vector<8x8xf32> to vector<8xf32>
    %158 = vector.shape_cast %157 : vector<8xf32> to vector<8x1xf32>
    %159 = tpu.reciprocal %158 {approx = true} : vector<8x1xf32> -> vector<8x1xf32>
    %160 = vector.broadcast %159 : vector<8x1xf32> to vector<8x8xf32>
    %161 = arith.mulf %156, %160 : vector<8x8xf32>
    %cst_140 = arith.constant dense<0.000000e+00> : vector<8x8xf32>
    %162 = tpu.matmul %161, %148, %cst_140 {dimension_numbers = #tpu.dot_dimension_numbers<[1], [0], [0], [1], [0, 0, 1, 1], [], []>} : vector<8x8xf32>, vector<8x8xf32>, vector<8x8xf32> -> vector<8x8xf32>
    %163 = vector.extract_strided_slice %54 {offsets = [24, 0], sizes = [8, 32], strides = [1, 1]} : vector<32x32xf32> to vector<8x32xf32>
    %cst_141 = arith.constant dense<0.000000e+00> : vector<8x32xf32>
    %164 = tpu.matmul %162, %163, %cst_141 {dimension_numbers = #tpu.dot_dimension_numbers<[1], [0], [0], [1], [0, 0, 1, 1], [], []>} : vector<8x8xf32>, vector<8x32xf32>, vector<8x32xf32> -> vector<8x32xf32>
    %165 = arith.addf %145, %164 : vector<8x32xf32>
    %166 = vector.broadcast %50 : vector<1x32xf32> to vector<8x32xf32>
    %167 = arith.addf %165, %166 : vector<8x32xf32>
    %168 = arith.addf %167, %80 : vector<8x32xf32>
    %cst_142 = arith.constant dense<0.000000e+00> : vector<8xf32>
    %169 = vector.multi_reduction <add>, %168, %cst_142 [1] : vector<8x32xf32> to vector<8xf32>
    %170 = vector.shape_cast %169 : vector<8xf32> to vector<8x1xf32>
    %cst_143 = arith.constant 3.200000e+01 : f32
    %171 = vector.broadcast %cst_143 : f32 to vector<8x1xf32>
    %172 = arith.divf %170, %171 : vector<8x1xf32>
    %173 = vector.broadcast %172 : vector<8x1xf32> to vector<8x32xf32>
    %174 = arith.subf %168, %173 : vector<8x32xf32>
    %175 = arith.mulf %174, %174 : vector<8x32xf32>
    %cst_144 = arith.constant dense<0.000000e+00> : vector<8xf32>
    %176 = vector.multi_reduction <add>, %175, %cst_144 [1] : vector<8x32xf32> to vector<8xf32>
    %177 = vector.shape_cast %176 : vector<8xf32> to vector<8x1xf32>
    %cst_145 = arith.constant 3.200000e+01 : f32
    %178 = vector.broadcast %cst_145 : f32 to vector<8x1xf32>
    %179 = arith.divf %177, %178 : vector<8x1xf32>
    %180 = vector.broadcast %172 : vector<8x1xf32> to vector<8x32xf32>
    %181 = arith.subf %168, %180 : vector<8x32xf32>
    %cst_146 = arith.constant 9.99999996E-13 : f32
    %182 = vector.broadcast %cst_146 : f32 to vector<8x1xf32>
    %183 = arith.addf %179, %182 : vector<8x1xf32>
    %184 = math.rsqrt %183 : vector<8x1xf32>
    %185 = vector.broadcast %184 : vector<8x1xf32> to vector<8x32xf32>
    %186 = arith.mulf %181, %185 : vector<8x32xf32>
    %187 = vector.broadcast %53 : vector<1x32xf32> to vector<8x32xf32>
    %188 = arith.mulf %186, %187 : vector<8x32xf32>
    %189 = vector.broadcast %52 : vector<1x32xf32> to vector<8x32xf32>
    %190 = arith.addf %188, %189 : vector<8x32xf32>
    %cst_147 = arith.constant dense<0.000000e+00> : vector<8x32xf32>
    %191 = tpu.matmul %190, %43, %cst_147 {dimension_numbers = #tpu.dot_dimension_numbers<[1], [0], [0], [1], [0, 0, 1, 1], [], []>} : vector<8x32xf32>, vector<32x32xf32>, vector<8x32xf32> -> vector<8x32xf32>
    %192 = vector.broadcast %38 : vector<1x32xf32> to vector<8x32xf32>
    %193 = arith.addf %191, %192 : vector<8x32xf32>
    %cst_148 = arith.constant dense<0.000000e+00> : vector<6x64xf32>
    %194 = tpu.matmul %0, %41, %cst_148 {dimension_numbers = #tpu.dot_dimension_numbers<[1], [0], [0], [1], [0, 0, 1, 1], [], []>} : vector<6x32xf32>, vector<32x64xf32>, vector<6x64xf32> -> vector<6x64xf32>
    %195 = vector.broadcast %36 : vector<1x64xf32> to vector<6x64xf32>
    %196 = arith.addf %194, %195 : vector<6x64xf32>
    %197 = vector.extract_strided_slice %196 {offsets = [0, 0], sizes = [6, 32], strides = [1, 1]} : vector<6x64xf32> to vector<6x32xf32>
    %198 = vector.extract_strided_slice %196 {offsets = [0, 32], sizes = [6, 32], strides = [1, 1]} : vector<6x64xf32> to vector<6x32xf32>
    %199 = vector.extract_strided_slice %193 {offsets = [0, 0], sizes = [8, 8], strides = [1, 1]} : vector<8x32xf32> to vector<8x8xf32>
    %200 = vector.extract_strided_slice %197 {offsets = [0, 0], sizes = [6, 8], strides = [1, 1]} : vector<6x32xf32> to vector<6x8xf32>
    %201 = vector.extract_strided_slice %198 {offsets = [0, 0], sizes = [6, 8], strides = [1, 1]} : vector<6x32xf32> to vector<6x8xf32>
    %cst_149 = arith.constant dense<0.000000e+00> : vector<8x6xf32>
    %202 = tpu.matmul %199, %200, %cst_149 {dimension_numbers = #tpu.dot_dimension_numbers<[1], [1], [0], [0], [0, 0, 1, 0], [], []>} : vector<8x8xf32>, vector<6x8xf32>, vector<8x6xf32> -> vector<8x6xf32>
    %cst_150 = arith.constant 0.353553385 : f32
    %203 = vector.broadcast %cst_150 : f32 to vector<8x6xf32>
    %204 = arith.mulf %202, %203 : vector<8x6xf32>
    %cst_151 = arith.constant dense<0xFF800000> : vector<8xf32>
    %205 = vector.multi_reduction <maximumf>, %204, %cst_151 [1] : vector<8x6xf32> to vector<8xf32>
    %206 = vector.shape_cast %205 : vector<8xf32> to vector<8x1xf32>
    %207 = vector.broadcast %206 : vector<8x1xf32> to vector<8x6xf32>
    %208 = arith.subf %204, %207 : vector<8x6xf32>
    %209 = math.exp %208 : vector<8x6xf32>
    %cst_152 = arith.constant dense<0.000000e+00> : vector<8xf32>
    %210 = vector.multi_reduction <add>, %209, %cst_152 [1] : vector<8x6xf32> to vector<8xf32>
    %211 = vector.shape_cast %210 : vector<8xf32> to vector<8x1xf32>
    %212 = tpu.reciprocal %211 {approx = true} : vector<8x1xf32> -> vector<8x1xf32>
    %213 = vector.broadcast %212 : vector<8x1xf32> to vector<8x6xf32>
    %214 = arith.mulf %209, %213 : vector<8x6xf32>
    %cst_153 = arith.constant dense<0.000000e+00> : vector<8x8xf32>
    %215 = tpu.matmul %214, %201, %cst_153 {dimension_numbers = #tpu.dot_dimension_numbers<[1], [0], [0], [1], [0, 0, 1, 1], [], []>} : vector<8x6xf32>, vector<6x8xf32>, vector<8x8xf32> -> vector<8x8xf32>
    %216 = vector.extract_strided_slice %42 {offsets = [0, 0], sizes = [8, 32], strides = [1, 1]} : vector<32x32xf32> to vector<8x32xf32>
    %cst_154 = arith.constant dense<0.000000e+00> : vector<8x32xf32>
    %217 = tpu.matmul %215, %216, %cst_154 {dimension_numbers = #tpu.dot_dimension_numbers<[1], [0], [0], [1], [0, 0, 1, 1], [], []>} : vector<8x8xf32>, vector<8x32xf32>, vector<8x32xf32> -> vector<8x32xf32>
    %218 = vector.extract_strided_slice %193 {offsets = [0, 8], sizes = [8, 8], strides = [1, 1]} : vector<8x32xf32> to vector<8x8xf32>
    %219 = vector.extract_strided_slice %197 {offsets = [0, 8], sizes = [6, 8], strides = [1, 1]} : vector<6x32xf32> to vector<6x8xf32>
    %220 = vector.extract_strided_slice %198 {offsets = [0, 8], sizes = [6, 8], strides = [1, 1]} : vector<6x32xf32> to vector<6x8xf32>
    %cst_155 = arith.constant dense<0.000000e+00> : vector<8x6xf32>
    %221 = tpu.matmul %218, %219, %cst_155 {dimension_numbers = #tpu.dot_dimension_numbers<[1], [1], [0], [0], [0, 0, 1, 0], [], []>} : vector<8x8xf32>, vector<6x8xf32>, vector<8x6xf32> -> vector<8x6xf32>
    %cst_156 = arith.constant 0.353553385 : f32
    %222 = vector.broadcast %cst_156 : f32 to vector<8x6xf32>
    %223 = arith.mulf %221, %222 : vector<8x6xf32>
    %cst_157 = arith.constant dense<0xFF800000> : vector<8xf32>
    %224 = vector.multi_reduction <maximumf>, %223, %cst_157 [1] : vector<8x6xf32> to vector<8xf32>
    %225 = vector.shape_cast %224 : vector<8xf32> to vector<8x1xf32>
    %226 = vector.broadcast %225 : vector<8x1xf32> to vector<8x6xf32>
    %227 = arith.subf %223, %226 : vector<8x6xf32>
    %228 = math.exp %227 : vector<8x6xf32>
    %cst_158 = arith.constant dense<0.000000e+00> : vector<8xf32>
    %229 = vector.multi_reduction <add>, %228, %cst_158 [1] : vector<8x6xf32> to vector<8xf32>
    %230 = vector.shape_cast %229 : vector<8xf32> to vector<8x1xf32>
    %231 = tpu.reciprocal %230 {approx = true} : vector<8x1xf32> -> vector<8x1xf32>
    %232 = vector.broadcast %231 : vector<8x1xf32> to vector<8x6xf32>
    %233 = arith.mulf %228, %232 : vector<8x6xf32>
    %cst_159 = arith.constant dense<0.000000e+00> : vector<8x8xf32>
    %234 = tpu.matmul %233, %220, %cst_159 {dimension_numbers = #tpu.dot_dimension_numbers<[1], [0], [0], [1], [0, 0, 1, 1], [], []>} : vector<8x6xf32>, vector<6x8xf32>, vector<8x8xf32> -> vector<8x8xf32>
    %235 = vector.extract_strided_slice %42 {offsets = [8, 0], sizes = [8, 32], strides = [1, 1]} : vector<32x32xf32> to vector<8x32xf32>
    %cst_160 = arith.constant dense<0.000000e+00> : vector<8x32xf32>
    %236 = tpu.matmul %234, %235, %cst_160 {dimension_numbers = #tpu.dot_dimension_numbers<[1], [0], [0], [1], [0, 0, 1, 1], [], []>} : vector<8x8xf32>, vector<8x32xf32>, vector<8x32xf32> -> vector<8x32xf32>
    %237 = arith.addf %217, %236 : vector<8x32xf32>
    %238 = vector.extract_strided_slice %193 {offsets = [0, 16], sizes = [8, 8], strides = [1, 1]} : vector<8x32xf32> to vector<8x8xf32>
    %239 = vector.extract_strided_slice %197 {offsets = [0, 16], sizes = [6, 8], strides = [1, 1]} : vector<6x32xf32> to vector<6x8xf32>
    %240 = vector.extract_strided_slice %198 {offsets = [0, 16], sizes = [6, 8], strides = [1, 1]} : vector<6x32xf32> to vector<6x8xf32>
    %cst_161 = arith.constant dense<0.000000e+00> : vector<8x6xf32>
    %241 = tpu.matmul %238, %239, %cst_161 {dimension_numbers = #tpu.dot_dimension_numbers<[1], [1], [0], [0], [0, 0, 1, 0], [], []>} : vector<8x8xf32>, vector<6x8xf32>, vector<8x6xf32> -> vector<8x6xf32>
    %cst_162 = arith.constant 0.353553385 : f32
    %242 = vector.broadcast %cst_162 : f32 to vector<8x6xf32>
    %243 = arith.mulf %241, %242 : vector<8x6xf32>
    %cst_163 = arith.constant dense<0xFF800000> : vector<8xf32>
    %244 = vector.multi_reduction <maximumf>, %243, %cst_163 [1] : vector<8x6xf32> to vector<8xf32>
    %245 = vector.shape_cast %244 : vector<8xf32> to vector<8x1xf32>
    %246 = vector.broadcast %245 : vector<8x1xf32> to vector<8x6xf32>
    %247 = arith.subf %243, %246 : vector<8x6xf32>
    %248 = math.exp %247 : vector<8x6xf32>
    %cst_164 = arith.constant dense<0.000000e+00> : vector<8xf32>
    %249 = vector.multi_reduction <add>, %248, %cst_164 [1] : vector<8x6xf32> to vector<8xf32>
    %250 = vector.shape_cast %249 : vector<8xf32> to vector<8x1xf32>
    %251 = tpu.reciprocal %250 {approx = true} : vector<8x1xf32> -> vector<8x1xf32>
    %252 = vector.broadcast %251 : vector<8x1xf32> to vector<8x6xf32>
    %253 = arith.mulf %248, %252 : vector<8x6xf32>
    %cst_165 = arith.constant dense<0.000000e+00> : vector<8x8xf32>
    %254 = tpu.matmul %253, %240, %cst_165 {dimension_numbers = #tpu.dot_dimension_numbers<[1], [0], [0], [1], [0, 0, 1, 1], [], []>} : vector<8x6xf32>, vector<6x8xf32>, vector<8x8xf32> -> vector<8x8xf32>
    %255 = vector.extract_strided_slice %42 {offsets = [16, 0], sizes = [8, 32], strides = [1, 1]} : vector<32x32xf32> to vector<8x32xf32>
    %cst_166 = arith.constant dense<0.000000e+00> : vector<8x32xf32>
    %256 = tpu.matmul %254, %255, %cst_166 {dimension_numbers = #tpu.dot_dimension_numbers<[1], [0], [0], [1], [0, 0, 1, 1], [], []>} : vector<8x8xf32>, vector<8x32xf32>, vector<8x32xf32> -> vector<8x32xf32>
    %257 = arith.addf %237, %256 : vector<8x32xf32>
    %258 = vector.extract_strided_slice %193 {offsets = [0, 24], sizes = [8, 8], strides = [1, 1]} : vector<8x32xf32> to vector<8x8xf32>
    %259 = vector.extract_strided_slice %197 {offsets = [0, 24], sizes = [6, 8], strides = [1, 1]} : vector<6x32xf32> to vector<6x8xf32>
    %260 = vector.extract_strided_slice %198 {offsets = [0, 24], sizes = [6, 8], strides = [1, 1]} : vector<6x32xf32> to vector<6x8xf32>
    %cst_167 = arith.constant dense<0.000000e+00> : vector<8x6xf32>
    %261 = tpu.matmul %258, %259, %cst_167 {dimension_numbers = #tpu.dot_dimension_numbers<[1], [1], [0], [0], [0, 0, 1, 0], [], []>} : vector<8x8xf32>, vector<6x8xf32>, vector<8x6xf32> -> vector<8x6xf32>
    %cst_168 = arith.constant 0.353553385 : f32
    %262 = vector.broadcast %cst_168 : f32 to vector<8x6xf32>
    %263 = arith.mulf %261, %262 : vector<8x6xf32>
    %cst_169 = arith.constant dense<0xFF800000> : vector<8xf32>
    %264 = vector.multi_reduction <maximumf>, %263, %cst_169 [1] : vector<8x6xf32> to vector<8xf32>
    %265 = vector.shape_cast %264 : vector<8xf32> to vector<8x1xf32>
    %266 = vector.broadcast %265 : vector<8x1xf32> to vector<8x6xf32>
    %267 = arith.subf %263, %266 : vector<8x6xf32>
    %268 = math.exp %267 : vector<8x6xf32>
    %cst_170 = arith.constant dense<0.000000e+00> : vector<8xf32>
    %269 = vector.multi_reduction <add>, %268, %cst_170 [1] : vector<8x6xf32> to vector<8xf32>
    %270 = vector.shape_cast %269 : vector<8xf32> to vector<8x1xf32>
    %271 = tpu.reciprocal %270 {approx = true} : vector<8x1xf32> -> vector<8x1xf32>
    %272 = vector.broadcast %271 : vector<8x1xf32> to vector<8x6xf32>
    %273 = arith.mulf %268, %272 : vector<8x6xf32>
    %cst_171 = arith.constant dense<0.000000e+00> : vector<8x8xf32>
    %274 = tpu.matmul %273, %260, %cst_171 {dimension_numbers = #tpu.dot_dimension_numbers<[1], [0], [0], [1], [0, 0, 1, 1], [], []>} : vector<8x6xf32>, vector<6x8xf32>, vector<8x8xf32> -> vector<8x8xf32>
    %275 = vector.extract_strided_slice %42 {offsets = [24, 0], sizes = [8, 32], strides = [1, 1]} : vector<32x32xf32> to vector<8x32xf32>
    %cst_172 = arith.constant dense<0.000000e+00> : vector<8x32xf32>
    %276 = tpu.matmul %274, %275, %cst_172 {dimension_numbers = #tpu.dot_dimension_numbers<[1], [0], [0], [1], [0, 0, 1, 1], [], []>} : vector<8x8xf32>, vector<8x32xf32>, vector<8x32xf32> -> vector<8x32xf32>
    %277 = arith.addf %257, %276 : vector<8x32xf32>
    %278 = vector.broadcast %37 : vector<1x32xf32> to vector<8x32xf32>
    %279 = arith.addf %277, %278 : vector<8x32xf32>
    %280 = arith.addf %279, %190 : vector<8x32xf32>
    %cst_173 = arith.constant dense<0.000000e+00> : vector<8xf32>
    %281 = vector.multi_reduction <add>, %280, %cst_173 [1] : vector<8x32xf32> to vector<8xf32>
    %282 = vector.shape_cast %281 : vector<8xf32> to vector<8x1xf32>
    %cst_174 = arith.constant 3.200000e+01 : f32
    %283 = vector.broadcast %cst_174 : f32 to vector<8x1xf32>
    %284 = arith.divf %282, %283 : vector<8x1xf32>
    %285 = vector.broadcast %284 : vector<8x1xf32> to vector<8x32xf32>
    %286 = arith.subf %280, %285 : vector<8x32xf32>
    %287 = arith.mulf %286, %286 : vector<8x32xf32>
    %cst_175 = arith.constant dense<0.000000e+00> : vector<8xf32>
    %288 = vector.multi_reduction <add>, %287, %cst_175 [1] : vector<8x32xf32> to vector<8xf32>
    %289 = vector.shape_cast %288 : vector<8xf32> to vector<8x1xf32>
    %cst_176 = arith.constant 3.200000e+01 : f32
    %290 = vector.broadcast %cst_176 : f32 to vector<8x1xf32>
    %291 = arith.divf %289, %290 : vector<8x1xf32>
    %292 = vector.broadcast %284 : vector<8x1xf32> to vector<8x32xf32>
    %293 = arith.subf %280, %292 : vector<8x32xf32>
    %cst_177 = arith.constant 9.99999996E-13 : f32
    %294 = vector.broadcast %cst_177 : f32 to vector<8x1xf32>
    %295 = arith.addf %291, %294 : vector<8x1xf32>
    %296 = math.rsqrt %295 : vector<8x1xf32>
    %297 = vector.broadcast %296 : vector<8x1xf32> to vector<8x32xf32>
    %298 = arith.mulf %293, %297 : vector<8x32xf32>
    %299 = vector.broadcast %40 : vector<1x32xf32> to vector<8x32xf32>
    %300 = arith.mulf %298, %299 : vector<8x32xf32>
    %301 = vector.broadcast %39 : vector<1x32xf32> to vector<8x32xf32>
    %302 = arith.addf %300, %301 : vector<8x32xf32>
    %cst_178 = arith.constant dense<0.000000e+00> : vector<8x64xf32>
    %303 = tpu.matmul %302, %45, %cst_178 {dimension_numbers = #tpu.dot_dimension_numbers<[1], [0], [0], [1], [0, 0, 1, 1], [], []>} : vector<8x32xf32>, vector<32x64xf32>, vector<8x64xf32> -> vector<8x64xf32>
    %304 = vector.broadcast %44 : vector<1x64xf32> to vector<8x64xf32>
    %305 = arith.addf %303, %304 : vector<8x64xf32>
    %306 = arith.mulf %305, %305 : vector<8x64xf32>
    %307 = arith.mulf %305, %306 : vector<8x64xf32>
    %cst_179 = arith.constant 4.471500e-02 : f32
    %308 = vector.broadcast %cst_179 : f32 to vector<8x64xf32>
    %309 = arith.mulf %308, %307 : vector<8x64xf32>
    %310 = arith.addf %305, %309 : vector<8x64xf32>
    %cst_180 = arith.constant 0.797884583 : f32
    %311 = vector.broadcast %cst_180 : f32 to vector<8x64xf32>
    %312 = arith.mulf %311, %310 : vector<8x64xf32>
    %313 = math.tanh %312 : vector<8x64xf32>
    %cst_181 = arith.constant 1.000000e+00 : f32
    %314 = vector.broadcast %cst_181 : f32 to vector<8x64xf32>
    %315 = arith.addf %314, %313 : vector<8x64xf32>
    %cst_182 = arith.constant 5.000000e-01 : f32
    %316 = vector.broadcast %cst_182 : f32 to vector<8x64xf32>
    %317 = arith.mulf %316, %315 : vector<8x64xf32>
    %318 = arith.mulf %305, %317 : vector<8x64xf32>
    %cst_183 = arith.constant dense<0.000000e+00> : vector<8x32xf32>
    %319 = tpu.matmul %318, %49, %cst_183 {dimension_numbers = #tpu.dot_dimension_numbers<[1], [0], [0], [1], [0, 0, 1, 1], [], []>} : vector<8x64xf32>, vector<64x32xf32>, vector<8x32xf32> -> vector<8x32xf32>
    %320 = vector.broadcast %46 : vector<1x32xf32> to vector<8x32xf32>
    %321 = arith.addf %319, %320 : vector<8x32xf32>
    %322 = arith.addf %321, %302 : vector<8x32xf32>
    %cst_184 = arith.constant dense<0.000000e+00> : vector<8xf32>
    %323 = vector.multi_reduction <add>, %322, %cst_184 [1] : vector<8x32xf32> to vector<8xf32>
    %324 = vector.shape_cast %323 : vector<8xf32> to vector<8x1xf32>
    %cst_185 = arith.constant 3.200000e+01 : f32
    %325 = vector.broadcast %cst_185 : f32 to vector<8x1xf32>
    %326 = arith.divf %324, %325 : vector<8x1xf32>
    %327 = vector.broadcast %326 : vector<8x1xf32> to vector<8x32xf32>
    %328 = arith.subf %322, %327 : vector<8x32xf32>
    %329 = arith.mulf %328, %328 : vector<8x32xf32>
    %cst_186 = arith.constant dense<0.000000e+00> : vector<8xf32>
    %330 = vector.multi_reduction <add>, %329, %cst_186 [1] : vector<8x32xf32> to vector<8xf32>
    %331 = vector.shape_cast %330 : vector<8xf32> to vector<8x1xf32>
    %cst_187 = arith.constant 3.200000e+01 : f32
    %332 = vector.broadcast %cst_187 : f32 to vector<8x1xf32>
    %333 = arith.divf %331, %332 : vector<8x1xf32>
    %334 = vector.broadcast %326 : vector<8x1xf32> to vector<8x32xf32>
    %335 = arith.subf %322, %334 : vector<8x32xf32>
    %cst_188 = arith.constant 9.99999996E-13 : f32
    %336 = vector.broadcast %cst_188 : f32 to vector<8x1xf32>
    %337 = arith.addf %333, %336 : vector<8x1xf32>
    %338 = math.rsqrt %337 : vector<8x1xf32>
    %339 = vector.broadcast %338 : vector<8x1xf32> to vector<8x32xf32>
    %340 = arith.mulf %335, %339 : vector<8x32xf32>
    %341 = vector.broadcast %48 : vector<1x32xf32> to vector<8x32xf32>
    %342 = arith.mulf %340, %341 : vector<8x32xf32>
    %343 = vector.broadcast %47 : vector<1x32xf32> to vector<8x32xf32>
    %344 = arith.addf %342, %343 : vector<8x32xf32>
    %cst_189 = arith.constant dense<0.000000e+00> : vector<8x3xf32>
    %345 = tpu.matmul %344, %4, %cst_189 {dimension_numbers = #tpu.dot_dimension_numbers<[1], [0], [0], [1], [0, 0, 1, 1], [], []>} : vector<8x32xf32>, vector<32x3xf32>, vector<8x3xf32> -> vector<8x3xf32>
    %346 = vector.broadcast %3 : vector<1x3xf32> to vector<8x3xf32>
    %347 = arith.addf %345, %346 : vector<8x3xf32>
    %c0_190 = arith.constant 0 : index
    %c0_191 = arith.constant 0 : index
    %348 = vector.load %arg58[%c0_190, %c0_191] : memref<8x3xf32, #tpu.memory_space<vmem>>, vector<8x3xf32>
    tpu.vector_store %arg58[%c0_190, %c0_191], %347 {strides = array<i32>} : memref<8x3xf32, #tpu.memory_space<vmem>>, vector<8x3xf32>,
    %cst_192 = arith.constant dense<0.000000e+00> : vector<3xf32>
    %349 = vector.multi_reduction <add>, %35, %cst_192 [1] : vector<3x32xf32> to vector<3xf32>
    %350 = vector.shape_cast %349 : vector<3xf32> to vector<3x1xf32>
    %cst_193 = arith.constant 3.200000e+01 : f32
    %351 = vector.broadcast %cst_193 : f32 to vector<3x1xf32>
    %352 = arith.divf %350, %351 : vector<3x1xf32>
    %353 = vector.broadcast %352 : vector<3x1xf32> to vector<3x32xf32>
    %354 = arith.subf %35, %353 : vector<3x32xf32>
    %355 = arith.mulf %354, %354 : vector<3x32xf32>
    %cst_194 = arith.constant dense<0.000000e+00> : vector<3xf32>
    %356 = vector.multi_reduction <add>, %355, %cst_194 [1] : vector<3x32xf32> to vector<3xf32>
    %357 = vector.shape_cast %356 : vector<3xf32> to vector<3x1xf32>
    %cst_195 = arith.constant 3.200000e+01 : f32
    %358 = vector.broadcast %cst_195 : f32 to vector<3x1xf32>
    %359 = arith.divf %357, %358 : vector<3x1xf32>
    %360 = vector.broadcast %352 : vector<3x1xf32> to vector<3x32xf32>
    %361 = arith.subf %35, %360 : vector<3x32xf32>
    %cst_196 = arith.constant 9.99999996E-13 : f32
    %362 = vector.broadcast %cst_196 : f32 to vector<3x1xf32>
    %363 = arith.addf %359, %362 : vector<3x1xf32>
    %364 = math.rsqrt %363 : vector<3x1xf32>
    %365 = vector.broadcast %364 : vector<3x1xf32> to vector<3x32xf32>
    %366 = arith.mulf %361, %365 : vector<3x32xf32>
    %367 = vector.broadcast %6 : vector<1x32xf32> to vector<3x32xf32>
    %368 = arith.mulf %366, %367 : vector<3x32xf32>
    %369 = vector.broadcast %5 : vector<1x32xf32> to vector<3x32xf32>
    %370 = arith.addf %368, %369 : vector<3x32xf32>
    %cst_197 = arith.constant dense<0.000000e+00> : vector<3x96xf32>
    %371 = tpu.matmul %370, %34, %cst_197 {dimension_numbers = #tpu.dot_dimension_numbers<[1], [0], [0], [1], [0, 0, 1, 1], [], []>} : vector<3x32xf32>, vector<32x96xf32>, vector<3x96xf32> -> vector<3x96xf32>
    %372 = vector.broadcast %30 : vector<1x96xf32> to vector<3x96xf32>
    %373 = arith.addf %371, %372 : vector<3x96xf32>
    %374 = vector.extract_strided_slice %373 {offsets = [0, 0], sizes = [3, 32], strides = [1, 1]} : vector<3x96xf32> to vector<3x32xf32>
    %375 = vector.extract_strided_slice %373 {offsets = [0, 32], sizes = [3, 32], strides = [1, 1]} : vector<3x96xf32> to vector<3x32xf32>
    %376 = vector.extract_strided_slice %373 {offsets = [0, 64], sizes = [3, 32], strides = [1, 1]} : vector<3x96xf32> to vector<3x32xf32>
    %377 = vector.extract_strided_slice %374 {offsets = [0, 0], sizes = [3, 8], strides = [1, 1]} : vector<3x32xf32> to vector<3x8xf32>
    %378 = vector.extract_strided_slice %375 {offsets = [0, 0], sizes = [3, 8], strides = [1, 1]} : vector<3x32xf32> to vector<3x8xf32>
    %379 = vector.extract_strided_slice %376 {offsets = [0, 0], sizes = [3, 8], strides = [1, 1]} : vector<3x32xf32> to vector<3x8xf32>
    %cst_198 = arith.constant dense<0.000000e+00> : vector<3x3xf32>
    %380 = tpu.matmul %377, %378, %cst_198 {dimension_numbers = #tpu.dot_dimension_numbers<[1], [1], [0], [0], [0, 0, 1, 0], [], []>} : vector<3x8xf32>, vector<3x8xf32>, vector<3x3xf32> -> vector<3x3xf32>
    %cst_199 = arith.constant 0.353553385 : f32
    %381 = vector.broadcast %cst_199 : f32 to vector<3x3xf32>
    %382 = arith.mulf %380, %381 : vector<3x3xf32>
    %cst_200 = arith.constant dense<0xFF800000> : vector<3xf32>
    %383 = vector.multi_reduction <maximumf>, %382, %cst_200 [1] : vector<3x3xf32> to vector<3xf32>
    %384 = vector.shape_cast %383 : vector<3xf32> to vector<3x1xf32>
    %385 = vector.broadcast %384 : vector<3x1xf32> to vector<3x3xf32>
    %386 = arith.subf %382, %385 : vector<3x3xf32>
    %387 = math.exp %386 : vector<3x3xf32>
    %cst_201 = arith.constant dense<0.000000e+00> : vector<3xf32>
    %388 = vector.multi_reduction <add>, %387, %cst_201 [1] : vector<3x3xf32> to vector<3xf32>
    %389 = vector.shape_cast %388 : vector<3xf32> to vector<3x1xf32>
    %390 = tpu.reciprocal %389 {approx = true} : vector<3x1xf32> -> vector<3x1xf32>
    %391 = vector.broadcast %390 : vector<3x1xf32> to vector<3x3xf32>
    %392 = arith.mulf %387, %391 : vector<3x3xf32>
    %cst_202 = arith.constant dense<0.000000e+00> : vector<3x8xf32>
    %393 = tpu.matmul %392, %379, %cst_202 {dimension_numbers = #tpu.dot_dimension_numbers<[1], [0], [0], [1], [0, 0, 1, 1], [], []>} : vector<3x3xf32>, vector<3x8xf32>, vector<3x8xf32> -> vector<3x8xf32>
    %394 = vector.extract_strided_slice %33 {offsets = [0, 0], sizes = [8, 32], strides = [1, 1]} : vector<32x32xf32> to vector<8x32xf32>
    %cst_203 = arith.constant dense<0.000000e+00> : vector<3x32xf32>
    %395 = tpu.matmul %393, %394, %cst_203 {dimension_numbers = #tpu.dot_dimension_numbers<[1], [0], [0], [1], [0, 0, 1, 1], [], []>} : vector<3x8xf32>, vector<8x32xf32>, vector<3x32xf32> -> vector<3x32xf32>
    %396 = vector.extract_strided_slice %374 {offsets = [0, 8], sizes = [3, 8], strides = [1, 1]} : vector<3x32xf32> to vector<3x8xf32>
    %397 = vector.extract_strided_slice %375 {offsets = [0, 8], sizes = [3, 8], strides = [1, 1]} : vector<3x32xf32> to vector<3x8xf32>
    %398 = vector.extract_strided_slice %376 {offsets = [0, 8], sizes = [3, 8], strides = [1, 1]} : vector<3x32xf32> to vector<3x8xf32>
    %cst_204 = arith.constant dense<0.000000e+00> : vector<3x3xf32>
    %399 = tpu.matmul %396, %397, %cst_204 {dimension_numbers = #tpu.dot_dimension_numbers<[1], [1], [0], [0], [0, 0, 1, 0], [], []>} : vector<3x8xf32>, vector<3x8xf32>, vector<3x3xf32> -> vector<3x3xf32>
    %cst_205 = arith.constant 0.353553385 : f32
    %400 = vector.broadcast %cst_205 : f32 to vector<3x3xf32>
    %401 = arith.mulf %399, %400 : vector<3x3xf32>
    %cst_206 = arith.constant dense<0xFF800000> : vector<3xf32>
    %402 = vector.multi_reduction <maximumf>, %401, %cst_206 [1] : vector<3x3xf32> to vector<3xf32>
    %403 = vector.shape_cast %402 : vector<3xf32> to vector<3x1xf32>
    %404 = vector.broadcast %403 : vector<3x1xf32> to vector<3x3xf32>
    %405 = arith.subf %401, %404 : vector<3x3xf32>
    %406 = math.exp %405 : vector<3x3xf32>
    %cst_207 = arith.constant dense<0.000000e+00> : vector<3xf32>
    %407 = vector.multi_reduction <add>, %406, %cst_207 [1] : vector<3x3xf32> to vector<3xf32>
    %408 = vector.shape_cast %407 : vector<3xf32> to vector<3x1xf32>
    %409 = tpu.reciprocal %408 {approx = true} : vector<3x1xf32> -> vector<3x1xf32>
    %410 = vector.broadcast %409 : vector<3x1xf32> to vector<3x3xf32>
    %411 = arith.mulf %406, %410 : vector<3x3xf32>
    %cst_208 = arith.constant dense<0.000000e+00> : vector<3x8xf32>
    %412 = tpu.matmul %411, %398, %cst_208 {dimension_numbers = #tpu.dot_dimension_numbers<[1], [0], [0], [1], [0, 0, 1, 1], [], []>} : vector<3x3xf32>, vector<3x8xf32>, vector<3x8xf32> -> vector<3x8xf32>
    %413 = vector.extract_strided_slice %33 {offsets = [8, 0], sizes = [8, 32], strides = [1, 1]} : vector<32x32xf32> to vector<8x32xf32>
    %cst_209 = arith.constant dense<0.000000e+00> : vector<3x32xf32>
    %414 = tpu.matmul %412, %413, %cst_209 {dimension_numbers = #tpu.dot_dimension_numbers<[1], [0], [0], [1], [0, 0, 1, 1], [], []>} : vector<3x8xf32>, vector<8x32xf32>, vector<3x32xf32> -> vector<3x32xf32>
    %415 = arith.addf %395, %414 : vector<3x32xf32>
    %416 = vector.extract_strided_slice %374 {offsets = [0, 16], sizes = [3, 8], strides = [1, 1]} : vector<3x32xf32> to vector<3x8xf32>
    %417 = vector.extract_strided_slice %375 {offsets = [0, 16], sizes = [3, 8], strides = [1, 1]} : vector<3x32xf32> to vector<3x8xf32>
    %418 = vector.extract_strided_slice %376 {offsets = [0, 16], sizes = [3, 8], strides = [1, 1]} : vector<3x32xf32> to vector<3x8xf32>
    %cst_210 = arith.constant dense<0.000000e+00> : vector<3x3xf32>
    %419 = tpu.matmul %416, %417, %cst_210 {dimension_numbers = #tpu.dot_dimension_numbers<[1], [1], [0], [0], [0, 0, 1, 0], [], []>} : vector<3x8xf32>, vector<3x8xf32>, vector<3x3xf32> -> vector<3x3xf32>
    %cst_211 = arith.constant 0.353553385 : f32
    %420 = vector.broadcast %cst_211 : f32 to vector<3x3xf32>
    %421 = arith.mulf %419, %420 : vector<3x3xf32>
    %cst_212 = arith.constant dense<0xFF800000> : vector<3xf32>
    %422 = vector.multi_reduction <maximumf>, %421, %cst_212 [1] : vector<3x3xf32> to vector<3xf32>
    %423 = vector.shape_cast %422 : vector<3xf32> to vector<3x1xf32>
    %424 = vector.broadcast %423 : vector<3x1xf32> to vector<3x3xf32>
    %425 = arith.subf %421, %424 : vector<3x3xf32>
    %426 = math.exp %425 : vector<3x3xf32>
    %cst_213 = arith.constant dense<0.000000e+00> : vector<3xf32>
    %427 = vector.multi_reduction <add>, %426, %cst_213 [1] : vector<3x3xf32> to vector<3xf32>
    %428 = vector.shape_cast %427 : vector<3xf32> to vector<3x1xf32>
    %429 = tpu.reciprocal %428 {approx = true} : vector<3x1xf32> -> vector<3x1xf32>
    %430 = vector.broadcast %429 : vector<3x1xf32> to vector<3x3xf32>
    %431 = arith.mulf %426, %430 : vector<3x3xf32>
    %cst_214 = arith.constant dense<0.000000e+00> : vector<3x8xf32>
    %432 = tpu.matmul %431, %418, %cst_214 {dimension_numbers = #tpu.dot_dimension_numbers<[1], [0], [0], [1], [0, 0, 1, 1], [], []>} : vector<3x3xf32>, vector<3x8xf32>, vector<3x8xf32> -> vector<3x8xf32>
    %433 = vector.extract_strided_slice %33 {offsets = [16, 0], sizes = [8, 32], strides = [1, 1]} : vector<32x32xf32> to vector<8x32xf32>
    %cst_215 = arith.constant dense<0.000000e+00> : vector<3x32xf32>
    %434 = tpu.matmul %432, %433, %cst_215 {dimension_numbers = #tpu.dot_dimension_numbers<[1], [0], [0], [1], [0, 0, 1, 1], [], []>} : vector<3x8xf32>, vector<8x32xf32>, vector<3x32xf32> -> vector<3x32xf32>
    %435 = arith.addf %415, %434 : vector<3x32xf32>
    %436 = vector.extract_strided_slice %374 {offsets = [0, 24], sizes = [3, 8], strides = [1, 1]} : vector<3x32xf32> to vector<3x8xf32>
    %437 = vector.extract_strided_slice %375 {offsets = [0, 24], sizes = [3, 8], strides = [1, 1]} : vector<3x32xf32> to vector<3x8xf32>
    %438 = vector.extract_strided_slice %376 {offsets = [0, 24], sizes = [3, 8], strides = [1, 1]} : vector<3x32xf32> to vector<3x8xf32>
    %cst_216 = arith.constant dense<0.000000e+00> : vector<3x3xf32>
    %439 = tpu.matmul %436, %437, %cst_216 {dimension_numbers = #tpu.dot_dimension_numbers<[1], [1], [0], [0], [0, 0, 1, 0], [], []>} : vector<3x8xf32>, vector<3x8xf32>, vector<3x3xf32> -> vector<3x3xf32>
    %cst_217 = arith.constant 0.353553385 : f32
    %440 = vector.broadcast %cst_217 : f32 to vector<3x3xf32>
    %441 = arith.mulf %439, %440 : vector<3x3xf32>
    %cst_218 = arith.constant dense<0xFF800000> : vector<3xf32>
    %442 = vector.multi_reduction <maximumf>, %441, %cst_218 [1] : vector<3x3xf32> to vector<3xf32>
    %443 = vector.shape_cast %442 : vector<3xf32> to vector<3x1xf32>
    %444 = vector.broadcast %443 : vector<3x1xf32> to vector<3x3xf32>
    %445 = arith.subf %441, %444 : vector<3x3xf32>
    %446 = math.exp %445 : vector<3x3xf32>
    %cst_219 = arith.constant dense<0.000000e+00> : vector<3xf32>
    %447 = vector.multi_reduction <add>, %446, %cst_219 [1] : vector<3x3xf32> to vector<3xf32>
    %448 = vector.shape_cast %447 : vector<3xf32> to vector<3x1xf32>
    %449 = tpu.reciprocal %448 {approx = true} : vector<3x1xf32> -> vector<3x1xf32>
    %450 = vector.broadcast %449 : vector<3x1xf32> to vector<3x3xf32>
    %451 = arith.mulf %446, %450 : vector<3x3xf32>
    %cst_220 = arith.constant dense<0.000000e+00> : vector<3x8xf32>
    %452 = tpu.matmul %451, %438, %cst_220 {dimension_numbers = #tpu.dot_dimension_numbers<[1], [0], [0], [1], [0, 0, 1, 1], [], []>} : vector<3x3xf32>, vector<3x8xf32>, vector<3x8xf32> -> vector<3x8xf32>
    %453 = vector.extract_strided_slice %33 {offsets = [24, 0], sizes = [8, 32], strides = [1, 1]} : vector<32x32xf32> to vector<8x32xf32>
    %cst_221 = arith.constant dense<0.000000e+00> : vector<3x32xf32>
    %454 = tpu.matmul %452, %453, %cst_221 {dimension_numbers = #tpu.dot_dimension_numbers<[1], [0], [0], [1], [0, 0, 1, 1], [], []>} : vector<3x8xf32>, vector<8x32xf32>, vector<3x32xf32> -> vector<3x32xf32>
    %455 = arith.addf %435, %454 : vector<3x32xf32>
    %456 = vector.broadcast %29 : vector<1x32xf32> to vector<3x32xf32>
    %457 = arith.addf %455, %456 : vector<3x32xf32>
    %458 = arith.addf %457, %370 : vector<3x32xf32>
    %cst_222 = arith.constant dense<0.000000e+00> : vector<3xf32>
    %459 = vector.multi_reduction <add>, %458, %cst_222 [1] : vector<3x32xf32> to vector<3xf32>
    %460 = vector.shape_cast %459 : vector<3xf32> to vector<3x1xf32>
    %cst_223 = arith.constant 3.200000e+01 : f32
    %461 = vector.broadcast %cst_223 : f32 to vector<3x1xf32>
    %462 = arith.divf %460, %461 : vector<3x1xf32>
    %463 = vector.broadcast %462 : vector<3x1xf32> to vector<3x32xf32>
    %464 = arith.subf %458, %463 : vector<3x32xf32>
    %465 = arith.mulf %464, %464 : vector<3x32xf32>
    %cst_224 = arith.constant dense<0.000000e+00> : vector<3xf32>
    %466 = vector.multi_reduction <add>, %465, %cst_224 [1] : vector<3x32xf32> to vector<3xf32>
    %467 = vector.shape_cast %466 : vector<3xf32> to vector<3x1xf32>
    %cst_225 = arith.constant 3.200000e+01 : f32
    %468 = vector.broadcast %cst_225 : f32 to vector<3x1xf32>
    %469 = arith.divf %467, %468 : vector<3x1xf32>
    %470 = vector.broadcast %462 : vector<3x1xf32> to vector<3x32xf32>
    %471 = arith.subf %458, %470 : vector<3x32xf32>
    %cst_226 = arith.constant 9.99999996E-13 : f32
    %472 = vector.broadcast %cst_226 : f32 to vector<3x1xf32>
    %473 = arith.addf %469, %472 : vector<3x1xf32>
    %474 = math.rsqrt %473 : vector<3x1xf32>
    %475 = vector.broadcast %474 : vector<3x1xf32> to vector<3x32xf32>
    %476 = arith.mulf %471, %475 : vector<3x32xf32>
    %477 = vector.broadcast %32 : vector<1x32xf32> to vector<3x32xf32>
    %478 = arith.mulf %476, %477 : vector<3x32xf32>
    %479 = vector.broadcast %31 : vector<1x32xf32> to vector<3x32xf32>
    %480 = arith.addf %478, %479 : vector<3x32xf32>
    %cst_227 = arith.constant dense<0.000000e+00> : vector<3x32xf32>
    %481 = tpu.matmul %480, %22, %cst_227 {dimension_numbers = #tpu.dot_dimension_numbers<[1], [0], [0], [1], [0, 0, 1, 1], [], []>} : vector<3x32xf32>, vector<32x32xf32>, vector<3x32xf32> -> vector<3x32xf32>
    %482 = vector.broadcast %17 : vector<1x32xf32> to vector<3x32xf32>
    %483 = arith.addf %481, %482 : vector<3x32xf32>
    %cst_228 = arith.constant dense<0.000000e+00> : vector<5x64xf32>
    %484 = tpu.matmul %56, %20, %cst_228 {dimension_numbers = #tpu.dot_dimension_numbers<[1], [0], [0], [1], [0, 0, 1, 1], [], []>} : vector<5x32xf32>, vector<32x64xf32>, vector<5x64xf32> -> vector<5x64xf32>
    %485 = vector.broadcast %15 : vector<1x64xf32> to vector<5x64xf32>
    %486 = arith.addf %484, %485 : vector<5x64xf32>
    %487 = vector.extract_strided_slice %486 {offsets = [0, 0], sizes = [5, 32], strides = [1, 1]} : vector<5x64xf32> to vector<5x32xf32>
    %488 = vector.extract_strided_slice %486 {offsets = [0, 32], sizes = [5, 32], strides = [1, 1]} : vector<5x64xf32> to vector<5x32xf32>
    %489 = vector.extract_strided_slice %483 {offsets = [0, 0], sizes = [3, 8], strides = [1, 1]} : vector<3x32xf32> to vector<3x8xf32>
    %490 = vector.extract_strided_slice %487 {offsets = [0, 0], sizes = [5, 8], strides = [1, 1]} : vector<5x32xf32> to vector<5x8xf32>
    %491 = vector.extract_strided_slice %488 {offsets = [0, 0], sizes = [5, 8], strides = [1, 1]} : vector<5x32xf32> to vector<5x8xf32>
    %cst_229 = arith.constant dense<0.000000e+00> : vector<3x5xf32>
    %492 = tpu.matmul %489, %490, %cst_229 {dimension_numbers = #tpu.dot_dimension_numbers<[1], [1], [0], [0], [0, 0, 1, 0], [], []>} : vector<3x8xf32>, vector<5x8xf32>, vector<3x5xf32> -> vector<3x5xf32>
    %cst_230 = arith.constant 0.353553385 : f32
    %493 = vector.broadcast %cst_230 : f32 to vector<3x5xf32>
    %494 = arith.mulf %492, %493 : vector<3x5xf32>
    %cst_231 = arith.constant dense<0xFF800000> : vector<3xf32>
    %495 = vector.multi_reduction <maximumf>, %494, %cst_231 [1] : vector<3x5xf32> to vector<3xf32>
    %496 = vector.shape_cast %495 : vector<3xf32> to vector<3x1xf32>
    %497 = vector.broadcast %496 : vector<3x1xf32> to vector<3x5xf32>
    %498 = arith.subf %494, %497 : vector<3x5xf32>
    %499 = math.exp %498 : vector<3x5xf32>
    %cst_232 = arith.constant dense<0.000000e+00> : vector<3xf32>
    %500 = vector.multi_reduction <add>, %499, %cst_232 [1] : vector<3x5xf32> to vector<3xf32>
    %501 = vector.shape_cast %500 : vector<3xf32> to vector<3x1xf32>
    %502 = tpu.reciprocal %501 {approx = true} : vector<3x1xf32> -> vector<3x1xf32>
    %503 = vector.broadcast %502 : vector<3x1xf32> to vector<3x5xf32>
    %504 = arith.mulf %499, %503 : vector<3x5xf32>
    %cst_233 = arith.constant dense<0.000000e+00> : vector<3x8xf32>
    %505 = tpu.matmul %504, %491, %cst_233 {dimension_numbers = #tpu.dot_dimension_numbers<[1], [0], [0], [1], [0, 0, 1, 1], [], []>} : vector<3x5xf32>, vector<5x8xf32>, vector<3x8xf32> -> vector<3x8xf32>
    %506 = vector.extract_strided_slice %21 {offsets = [0, 0], sizes = [8, 32], strides = [1, 1]} : vector<32x32xf32> to vector<8x32xf32>
    %cst_234 = arith.constant dense<0.000000e+00> : vector<3x32xf32>
    %507 = tpu.matmul %505, %506, %cst_234 {dimension_numbers = #tpu.dot_dimension_numbers<[1], [0], [0], [1], [0, 0, 1, 1], [], []>} : vector<3x8xf32>, vector<8x32xf32>, vector<3x32xf32> -> vector<3x32xf32>
    %508 = vector.extract_strided_slice %483 {offsets = [0, 8], sizes = [3, 8], strides = [1, 1]} : vector<3x32xf32> to vector<3x8xf32>
    %509 = vector.extract_strided_slice %487 {offsets = [0, 8], sizes = [5, 8], strides = [1, 1]} : vector<5x32xf32> to vector<5x8xf32>
    %510 = vector.extract_strided_slice %488 {offsets = [0, 8], sizes = [5, 8], strides = [1, 1]} : vector<5x32xf32> to vector<5x8xf32>
    %cst_235 = arith.constant dense<0.000000e+00> : vector<3x5xf32>
    %511 = tpu.matmul %508, %509, %cst_235 {dimension_numbers = #tpu.dot_dimension_numbers<[1], [1], [0], [0], [0, 0, 1, 0], [], []>} : vector<3x8xf32>, vector<5x8xf32>, vector<3x5xf32> -> vector<3x5xf32>
    %cst_236 = arith.constant 0.353553385 : f32
    %512 = vector.broadcast %cst_236 : f32 to vector<3x5xf32>
    %513 = arith.mulf %511, %512 : vector<3x5xf32>
    %cst_237 = arith.constant dense<0xFF800000> : vector<3xf32>
    %514 = vector.multi_reduction <maximumf>, %513, %cst_237 [1] : vector<3x5xf32> to vector<3xf32>
    %515 = vector.shape_cast %514 : vector<3xf32> to vector<3x1xf32>
    %516 = vector.broadcast %515 : vector<3x1xf32> to vector<3x5xf32>
    %517 = arith.subf %513, %516 : vector<3x5xf32>
    %518 = math.exp %517 : vector<3x5xf32>
    %cst_238 = arith.constant dense<0.000000e+00> : vector<3xf32>
    %519 = vector.multi_reduction <add>, %518, %cst_238 [1] : vector<3x5xf32> to vector<3xf32>
    %520 = vector.shape_cast %519 : vector<3xf32> to vector<3x1xf32>
    %521 = tpu.reciprocal %520 {approx = true} : vector<3x1xf32> -> vector<3x1xf32>
    %522 = vector.broadcast %521 : vector<3x1xf32> to vector<3x5xf32>
    %523 = arith.mulf %518, %522 : vector<3x5xf32>
    %cst_239 = arith.constant dense<0.000000e+00> : vector<3x8xf32>
    %524 = tpu.matmul %523, %510, %cst_239 {dimension_numbers = #tpu.dot_dimension_numbers<[1], [0], [0], [1], [0, 0, 1, 1], [], []>} : vector<3x5xf32>, vector<5x8xf32>, vector<3x8xf32> -> vector<3x8xf32>
    %525 = vector.extract_strided_slice %21 {offsets = [8, 0], sizes = [8, 32], strides = [1, 1]} : vector<32x32xf32> to vector<8x32xf32>
    %cst_240 = arith.constant dense<0.000000e+00> : vector<3x32xf32>
    %526 = tpu.matmul %524, %525, %cst_240 {dimension_numbers = #tpu.dot_dimension_numbers<[1], [0], [0], [1], [0, 0, 1, 1], [], []>} : vector<3x8xf32>, vector<8x32xf32>, vector<3x32xf32> -> vector<3x32xf32>
    %527 = arith.addf %507, %526 : vector<3x32xf32>
    %528 = vector.extract_strided_slice %483 {offsets = [0, 16], sizes = [3, 8], strides = [1, 1]} : vector<3x32xf32> to vector<3x8xf32>
    %529 = vector.extract_strided_slice %487 {offsets = [0, 16], sizes = [5, 8], strides = [1, 1]} : vector<5x32xf32> to vector<5x8xf32>
    %530 = vector.extract_strided_slice %488 {offsets = [0, 16], sizes = [5, 8], strides = [1, 1]} : vector<5x32xf32> to vector<5x8xf32>
    %cst_241 = arith.constant dense<0.000000e+00> : vector<3x5xf32>
    %531 = tpu.matmul %528, %529, %cst_241 {dimension_numbers = #tpu.dot_dimension_numbers<[1], [1], [0], [0], [0, 0, 1, 0], [], []>} : vector<3x8xf32>, vector<5x8xf32>, vector<3x5xf32> -> vector<3x5xf32>
    %cst_242 = arith.constant 0.353553385 : f32
    %532 = vector.broadcast %cst_242 : f32 to vector<3x5xf32>
    %533 = arith.mulf %531, %532 : vector<3x5xf32>
    %cst_243 = arith.constant dense<0xFF800000> : vector<3xf32>
    %534 = vector.multi_reduction <maximumf>, %533, %cst_243 [1] : vector<3x5xf32> to vector<3xf32>
    %535 = vector.shape_cast %534 : vector<3xf32> to vector<3x1xf32>
    %536 = vector.broadcast %535 : vector<3x1xf32> to vector<3x5xf32>
    %537 = arith.subf %533, %536 : vector<3x5xf32>
    %538 = math.exp %537 : vector<3x5xf32>
    %cst_244 = arith.constant dense<0.000000e+00> : vector<3xf32>
    %539 = vector.multi_reduction <add>, %538, %cst_244 [1] : vector<3x5xf32> to vector<3xf32>
    %540 = vector.shape_cast %539 : vector<3xf32> to vector<3x1xf32>
    %541 = tpu.reciprocal %540 {approx = true} : vector<3x1xf32> -> vector<3x1xf32>
    %542 = vector.broadcast %541 : vector<3x1xf32> to vector<3x5xf32>
    %543 = arith.mulf %538, %542 : vector<3x5xf32>
    %cst_245 = arith.constant dense<0.000000e+00> : vector<3x8xf32>
    %544 = tpu.matmul %543, %530, %cst_245 {dimension_numbers = #tpu.dot_dimension_numbers<[1], [0], [0], [1], [0, 0, 1, 1], [], []>} : vector<3x5xf32>, vector<5x8xf32>, vector<3x8xf32> -> vector<3x8xf32>
    %545 = vector.extract_strided_slice %21 {offsets = [16, 0], sizes = [8, 32], strides = [1, 1]} : vector<32x32xf32> to vector<8x32xf32>
    %cst_246 = arith.constant dense<0.000000e+00> : vector<3x32xf32>
    %546 = tpu.matmul %544, %545, %cst_246 {dimension_numbers = #tpu.dot_dimension_numbers<[1], [0], [0], [1], [0, 0, 1, 1], [], []>} : vector<3x8xf32>, vector<8x32xf32>, vector<3x32xf32> -> vector<3x32xf32>
    %547 = arith.addf %527, %546 : vector<3x32xf32>
    %548 = vector.extract_strided_slice %483 {offsets = [0, 24], sizes = [3, 8], strides = [1, 1]} : vector<3x32xf32> to vector<3x8xf32>
    %549 = vector.extract_strided_slice %487 {offsets = [0, 24], sizes = [5, 8], strides = [1, 1]} : vector<5x32xf32> to vector<5x8xf32>
    %550 = vector.extract_strided_slice %488 {offsets = [0, 24], sizes = [5, 8], strides = [1, 1]} : vector<5x32xf32> to vector<5x8xf32>
    %cst_247 = arith.constant dense<0.000000e+00> : vector<3x5xf32>
    %551 = tpu.matmul %548, %549, %cst_247 {dimension_numbers = #tpu.dot_dimension_numbers<[1], [1], [0], [0], [0, 0, 1, 0], [], []>} : vector<3x8xf32>, vector<5x8xf32>, vector<3x5xf32> -> vector<3x5xf32>
    %cst_248 = arith.constant 0.353553385 : f32
    %552 = vector.broadcast %cst_248 : f32 to vector<3x5xf32>
    %553 = arith.mulf %551, %552 : vector<3x5xf32>
    %cst_249 = arith.constant dense<0xFF800000> : vector<3xf32>
    %554 = vector.multi_reduction <maximumf>, %553, %cst_249 [1] : vector<3x5xf32> to vector<3xf32>
    %555 = vector.shape_cast %554 : vector<3xf32> to vector<3x1xf32>
    %556 = vector.broadcast %555 : vector<3x1xf32> to vector<3x5xf32>
    %557 = arith.subf %553, %556 : vector<3x5xf32>
    %558 = math.exp %557 : vector<3x5xf32>
    %cst_250 = arith.constant dense<0.000000e+00> : vector<3xf32>
    %559 = vector.multi_reduction <add>, %558, %cst_250 [1] : vector<3x5xf32> to vector<3xf32>
    %560 = vector.shape_cast %559 : vector<3xf32> to vector<3x1xf32>
    %561 = tpu.reciprocal %560 {approx = true} : vector<3x1xf32> -> vector<3x1xf32>
    %562 = vector.broadcast %561 : vector<3x1xf32> to vector<3x5xf32>
    %563 = arith.mulf %558, %562 : vector<3x5xf32>
    %cst_251 = arith.constant dense<0.000000e+00> : vector<3x8xf32>
    %564 = tpu.matmul %563, %550, %cst_251 {dimension_numbers = #tpu.dot_dimension_numbers<[1], [0], [0], [1], [0, 0, 1, 1], [], []>} : vector<3x5xf32>, vector<5x8xf32>, vector<3x8xf32> -> vector<3x8xf32>
    %565 = vector.extract_strided_slice %21 {offsets = [24, 0], sizes = [8, 32], strides = [1, 1]} : vector<32x32xf32> to vector<8x32xf32>
    %cst_252 = arith.constant dense<0.000000e+00> : vector<3x32xf32>
    %566 = tpu.matmul %564, %565, %cst_252 {dimension_numbers = #tpu.dot_dimension_numbers<[1], [0], [0], [1], [0, 0, 1, 1], [], []>} : vector<3x8xf32>, vector<8x32xf32>, vector<3x32xf32> -> vector<3x32xf32>
    %567 = arith.addf %547, %566 : vector<3x32xf32>
    %568 = vector.broadcast %16 : vector<1x32xf32> to vector<3x32xf32>
    %569 = arith.addf %567, %568 : vector<3x32xf32>
    %570 = arith.addf %569, %480 : vector<3x32xf32>
    %cst_253 = arith.constant dense<0.000000e+00> : vector<3xf32>
    %571 = vector.multi_reduction <add>, %570, %cst_253 [1] : vector<3x32xf32> to vector<3xf32>
    %572 = vector.shape_cast %571 : vector<3xf32> to vector<3x1xf32>
    %cst_254 = arith.constant 3.200000e+01 : f32
    %573 = vector.broadcast %cst_254 : f32 to vector<3x1xf32>
    %574 = arith.divf %572, %573 : vector<3x1xf32>
    %575 = vector.broadcast %574 : vector<3x1xf32> to vector<3x32xf32>
    %576 = arith.subf %570, %575 : vector<3x32xf32>
    %577 = arith.mulf %576, %576 : vector<3x32xf32>
    %cst_255 = arith.constant dense<0.000000e+00> : vector<3xf32>
    %578 = vector.multi_reduction <add>, %577, %cst_255 [1] : vector<3x32xf32> to vector<3xf32>
    %579 = vector.shape_cast %578 : vector<3xf32> to vector<3x1xf32>
    %cst_256 = arith.constant 3.200000e+01 : f32
    %580 = vector.broadcast %cst_256 : f32 to vector<3x1xf32>
    %581 = arith.divf %579, %580 : vector<3x1xf32>
    %582 = vector.broadcast %574 : vector<3x1xf32> to vector<3x32xf32>
    %583 = arith.subf %570, %582 : vector<3x32xf32>
    %cst_257 = arith.constant 9.99999996E-13 : f32
    %584 = vector.broadcast %cst_257 : f32 to vector<3x1xf32>
    %585 = arith.addf %581, %584 : vector<3x1xf32>
    %586 = math.rsqrt %585 : vector<3x1xf32>
    %587 = vector.broadcast %586 : vector<3x1xf32> to vector<3x32xf32>
    %588 = arith.mulf %583, %587 : vector<3x32xf32>
    %589 = vector.broadcast %19 : vector<1x32xf32> to vector<3x32xf32>
    %590 = arith.mulf %588, %589 : vector<3x32xf32>
    %591 = vector.broadcast %18 : vector<1x32xf32> to vector<3x32xf32>
    %592 = arith.addf %590, %591 : vector<3x32xf32>
    %cst_258 = arith.constant dense<0.000000e+00> : vector<3x64xf32>
    %593 = tpu.matmul %592, %24, %cst_258 {dimension_numbers = #tpu.dot_dimension_numbers<[1], [0], [0], [1], [0, 0, 1, 1], [], []>} : vector<3x32xf32>, vector<32x64xf32>, vector<3x64xf32> -> vector<3x64xf32>
    %594 = vector.broadcast %23 : vector<1x64xf32> to vector<3x64xf32>
    %595 = arith.addf %593, %594 : vector<3x64xf32>
    %596 = arith.mulf %595, %595 : vector<3x64xf32>
    %597 = arith.mulf %595, %596 : vector<3x64xf32>
    %cst_259 = arith.constant 4.471500e-02 : f32
    %598 = vector.broadcast %cst_259 : f32 to vector<3x64xf32>
    %599 = arith.mulf %598, %597 : vector<3x64xf32>
    %600 = arith.addf %595, %599 : vector<3x64xf32>
    %cst_260 = arith.constant 0.797884583 : f32
    %601 = vector.broadcast %cst_260 : f32 to vector<3x64xf32>
    %602 = arith.mulf %601, %600 : vector<3x64xf32>
    %603 = math.tanh %602 : vector<3x64xf32>
    %cst_261 = arith.constant 1.000000e+00 : f32
    %604 = vector.broadcast %cst_261 : f32 to vector<3x64xf32>
    %605 = arith.addf %604, %603 : vector<3x64xf32>
    %cst_262 = arith.constant 5.000000e-01 : f32
    %606 = vector.broadcast %cst_262 : f32 to vector<3x64xf32>
    %607 = arith.mulf %606, %605 : vector<3x64xf32>
    %608 = arith.mulf %595, %607 : vector<3x64xf32>
    %cst_263 = arith.constant dense<0.000000e+00> : vector<3x32xf32>
    %609 = tpu.matmul %608, %28, %cst_263 {dimension_numbers = #tpu.dot_dimension_numbers<[1], [0], [0], [1], [0, 0, 1, 1], [], []>} : vector<3x64xf32>, vector<64x32xf32>, vector<3x32xf32> -> vector<3x32xf32>
    %610 = vector.broadcast %25 : vector<1x32xf32> to vector<3x32xf32>
    %611 = arith.addf %609, %610 : vector<3x32xf32>
    %612 = arith.addf %611, %592 : vector<3x32xf32>
    %cst_264 = arith.constant dense<0.000000e+00> : vector<3xf32>
    %613 = vector.multi_reduction <add>, %612, %cst_264 [1] : vector<3x32xf32> to vector<3xf32>
    %614 = vector.shape_cast %613 : vector<3xf32> to vector<3x1xf32>
    %cst_265 = arith.constant 3.200000e+01 : f32
    %615 = vector.broadcast %cst_265 : f32 to vector<3x1xf32>
    %616 = arith.divf %614, %615 : vector<3x1xf32>
    %617 = vector.broadcast %616 : vector<3x1xf32> to vector<3x32xf32>
    %618 = arith.subf %612, %617 : vector<3x32xf32>
    %619 = arith.mulf %618, %618 : vector<3x32xf32>
    %cst_266 = arith.constant dense<0.000000e+00> : vector<3xf32>
    %620 = vector.multi_reduction <add>, %619, %cst_266 [1] : vector<3x32xf32> to vector<3xf32>
    %621 = vector.shape_cast %620 : vector<3xf32> to vector<3x1xf32>
    %cst_267 = arith.constant 3.200000e+01 : f32
    %622 = vector.broadcast %cst_267 : f32 to vector<3x1xf32>
    %623 = arith.divf %621, %622 : vector<3x1xf32>
    %624 = vector.broadcast %616 : vector<3x1xf32> to vector<3x32xf32>
    %625 = arith.subf %612, %624 : vector<3x32xf32>
    %cst_268 = arith.constant 9.99999996E-13 : f32
    %626 = vector.broadcast %cst_268 : f32 to vector<3x1xf32>
    %627 = arith.addf %623, %626 : vector<3x1xf32>
    %628 = math.rsqrt %627 : vector<3x1xf32>
    %629 = vector.broadcast %628 : vector<3x1xf32> to vector<3x32xf32>
    %630 = arith.mulf %625, %629 : vector<3x32xf32>
    %631 = vector.broadcast %27 : vector<1x32xf32> to vector<3x32xf32>
    %632 = arith.mulf %630, %631 : vector<3x32xf32>
    %633 = vector.broadcast %26 : vector<1x32xf32> to vector<3x32xf32>
    %634 = arith.addf %632, %633 : vector<3x32xf32>
    %cst_269 = arith.constant dense<0.000000e+00> : vector<8x32xf32>
    %635 = tpu.matmul %344, %8, %cst_269 {dimension_numbers = #tpu.dot_dimension_numbers<[1], [0], [0], [1], [0, 0, 1, 1], [], []>} : vector<8x32xf32>, vector<32x32xf32>, vector<8x32xf32> -> vector<8x32xf32>
    %636 = vector.broadcast %7 : vector<1x32xf32> to vector<8x32xf32>
    %637 = arith.addf %635, %636 : vector<8x32xf32>
    %cst_270 = arith.constant dense<0.000000e+00> : vector<11x32xf32>
    %638 = tpu.matmul %1, %10, %cst_270 {dimension_numbers = #tpu.dot_dimension_numbers<[1], [0], [0], [1], [0, 0, 1, 1], [], []>} : vector<11x32xf32>, vector<32x32xf32>, vector<11x32xf32> -> vector<11x32xf32>
    %639 = vector.broadcast %9 : vector<1x32xf32> to vector<11x32xf32>
    %640 = arith.addf %638, %639 : vector<11x32xf32>
    %cst_271 = arith.constant dense<0.000000e+00> : vector<3x32xf32>
    %641 = tpu.matmul %634, %12, %cst_271 {dimension_numbers = #tpu.dot_dimension_numbers<[1], [0], [0], [1], [0, 0, 1, 1], [], []>} : vector<3x32xf32>, vector<32x32xf32>, vector<3x32xf32> -> vector<3x32xf32>
    %642 = vector.broadcast %11 : vector<1x32xf32> to vector<3x32xf32>
    %643 = arith.addf %641, %642 : vector<3x32xf32>
    %644 = vector.shape_cast %637 : vector<8x32xf32> to vector<8x1x1x32xf32>
    %645 = vector.shape_cast %643 : vector<3x32xf32> to vector<1x3x1x32xf32>
    %646 = vector.broadcast %644 : vector<8x1x1x32xf32> to vector<8x3x1x32xf32>
    %647 = vector.broadcast %645 : vector<1x3x1x32xf32> to vector<8x3x1x32xf32>
    %648 = arith.addf %646, %647 : vector<8x3x1x32xf32>
    %649 = vector.shape_cast %640 : vector<11x32xf32> to vector<1x1x11x32xf32>
    %650 = vector.broadcast %648 : vector<8x3x1x32xf32> to vector<8x3x11x32xf32>
    %651 = vector.broadcast %649 : vector<1x1x11x32xf32> to vector<8x3x11x32xf32>
    %652 = arith.addf %650, %651 : vector<8x3x11x32xf32>
    %653 = math.tanh %652 : vector<8x3x11x32xf32>
    %654 = vector.shape_cast %13 : vector<1x32xf32> to vector<1x1x1x32xf32>
    %655 = vector.broadcast %654 : vector<1x1x1x32xf32> to vector<8x3x11x32xf32>
    %656 = arith.mulf %653, %655 : vector<8x3x11x32xf32>
    %cst_272 = arith.constant dense<0.000000e+00> : vector<8x3x11xf32>
    %657 = vector.multi_reduction <add>, %656, %cst_272 [3] : vector<8x3x11x32xf32> to vector<8x3x11xf32>
    %658 = vector.extract_strided_slice %657 {offsets = [0, 0, 0], sizes = [8, 3, 5], strides = [1, 1, 1]} : vector<8x3x11xf32> to vector<8x3x5xf32>
    %c0_273 = arith.constant 0 : index
    %c0_274 = arith.constant 0 : index
    %c0_275 = arith.constant 0 : index
    %659 = vector.load %arg59[%c0_273, %c0_274, %c0_275] : memref<8x3x5xf32, #tpu.memory_space<vmem>>, vector<8x3x5xf32>
    tpu.vector_store %arg59[%c0_273, %c0_274, %c0_275], %658 {strides = array<i32>} : memref<8x3x5xf32, #tpu.memory_space<vmem>>, vector<8x3x5xf32>,
    return
  }
  func.func @transform_0(%arg0: i32) -> (i32, i32) {
    %c0_i32 = arith.constant 0 : i32
    %c0_i32_0 = arith.constant 0 : i32
    %c0_i32_1 = arith.constant 0 : i32
    return %c0_i32, %c0_i32_0 : i32, i32
  }
  func.func @transform_1(%arg0: i32) -> (i32, i32) {
    %c0_i32 = arith.constant 0 : i32
    %c0_i32_0 = arith.constant 0 : i32
    %c0_i32_1 = arith.constant 0 : i32
    return %c0_i32, %c0_i32_0 : i32, i32
  }
  func.func @transform_2(%arg0: i32) -> (i32, i32) {
    %c0_i32 = arith.constant 0 : i32
    %c0_i32_0 = arith.constant 0 : i32
    %c0_i32_1 = arith.constant 0 : i32
    return %c0_i32, %c0_i32_0 : i32, i32
  }
  func.func @transform_3(%arg0: i32) -> (i32, i32) {
    %c0_i32 = arith.constant 0 : i32
    %c0_i32_0 = arith.constant 0 : i32
    %c0_i32_1 = arith.constant 0 : i32
    return %c0_i32, %c0_i32_0 : i32, i32
  }
  func.func @transform_4(%arg0: i32) -> (i32, i32) {
    %c0_i32 = arith.constant 0 : i32
    %c0_i32_0 = arith.constant 0 : i32
    %c0_i32_1 = arith.constant 0 : i32
    return %c0_i32, %c0_i32_0 : i32, i32
  }
  func.func @transform_5(%arg0: i32) -> (i32, i32) {
    %c0_i32 = arith.constant 0 : i32
    %c0_i32_0 = arith.constant 0 : i32
    %c0_i32_1 = arith.constant 0 : i32
    return %c0_i32, %c0_i32_0 : i32, i32
  }
  func.func @transform_6(%arg0: i32) -> (i32, i32) {
    %c0_i32 = arith.constant 0 : i32
    %c0_i32_0 = arith.constant 0 : i32
    %c0_i32_1 = arith.constant 0 : i32
    return %c0_i32, %c0_i32_0 : i32, i32
  }
  func.func @transform_7(%arg0: i32) -> (i32, i32) {
    %c0_i32 = arith.constant 0 : i32
    %c0_i32_0 = arith.constant 0 : i32
    %c0_i32_1 = arith.constant 0 : i32
    return %c0_i32, %c0_i32_0 : i32, i32
  }
  func.func @transform_8(%arg0: i32) -> (i32, i32) {
    %c0_i32 = arith.constant 0 : i32
    %c0_i32_0 = arith.constant 0 : i32
    %c0_i32_1 = arith.constant 0 : i32
    return %c0_i32, %c0_i32_0 : i32, i32
  }
  func.func @transform_9(%arg0: i32) -> (i32, i32) {
    %c0_i32 = arith.constant 0 : i32
    %c0_i32_0 = arith.constant 0 : i32
    %c0_i32_1 = arith.constant 0 : i32
    return %c0_i32, %c0_i32_0 : i32, i32
  }
  func.func @transform_10(%arg0: i32) -> (i32, i32) {
    %c0_i32 = arith.constant 0 : i32
    %c0_i32_0 = arith.constant 0 : i32
    %c0_i32_1 = arith.constant 0 : i32
    return %c0_i32, %c0_i32_0 : i32, i32
  }
  func.func @transform_11(%arg0: i32) -> (i32, i32) {
    %c0_i32 = arith.constant 0 : i32
    %c0_i32_0 = arith.constant 0 : i32
    %c0_i32_1 = arith.constant 0 : i32
    return %c0_i32, %c0_i32_0 : i32, i32
  }
  func.func @transform_12(%arg0: i32) -> (i32, i32) {
    %c0_i32 = arith.constant 0 : i32
    %c0_i32_0 = arith.constant 0 : i32
    %c0_i32_1 = arith.constant 0 : i32
    return %c0_i32, %c0_i32_0 : i32, i32
  }
  func.func @transform_13(%arg0: i32) -> (i32, i32) {
    %c0_i32 = arith.constant 0 : i32
    %c0_i32_0 = arith.constant 0 : i32
    %c0_i32_1 = arith.constant 0 : i32
    return %c0_i32, %c0_i32_0 : i32, i32
  }
  func.func @transform_14(%arg0: i32) -> (i32, i32) {
    %c0_i32 = arith.constant 0 : i32
    %c0_i32_0 = arith.constant 0 : i32
    %c0_i32_1 = arith.constant 0 : i32
    return %c0_i32, %c0_i32_0 : i32, i32
  }
  func.func @transform_15(%arg0: i32) -> (i32, i32) {
    %c0_i32 = arith.constant 0 : i32
    %c0_i32_0 = arith.constant 0 : i32
    %c0_i32_1 = arith.constant 0 : i32
    return %c0_i32, %c0_i32_0 : i32, i32
  }
  func.func @transform_16(%arg0: i32) -> (i32, i32) {
    %c0_i32 = arith.constant 0 : i32
    %c0_i32_0 = arith.constant 0 : i32
    %c0_i32_1 = arith.constant 0 : i32
    return %c0_i32, %c0_i32_0 : i32, i32
  }
  func.func @transform_17(%arg0: i32) -> (i32, i32) {
    %c0_i32 = arith.constant 0 : i32
    %c0_i32_0 = arith.constant 0 : i32
    %c0_i32_1 = arith.constant 0 : i32
    return %c0_i32, %c0_i32_0 : i32, i32
  }
  func.func @transform_18(%arg0: i32) -> (i32, i32) {
    %c0_i32 = arith.constant 0 : i32
    %c0_i32_0 = arith.constant 0 : i32
    %c0_i32_1 = arith.constant 0 : i32
    return %c0_i32, %c0_i32_0 : i32, i32
  }
  func.func @transform_19(%arg0: i32) -> (i32, i32) {
    %c0_i32 = arith.constant 0 : i32
    %c0_i32_0 = arith.constant 0 : i32
    %c0_i32_1 = arith.constant 0 : i32
    return %c0_i32, %c0_i32_0 : i32, i32
  }
  func.func @transform_20(%arg0: i32) -> (i32, i32) {
    %c0_i32 = arith.constant 0 : i32
    %c0_i32_0 = arith.constant 0 : i32
    %c0_i32_1 = arith.constant 0 : i32
    return %c0_i32, %c0_i32_0 : i32, i32
  }
  func.func @transform_21(%arg0: i32) -> (i32, i32) {
    %c0_i32 = arith.constant 0 : i32
    %c0_i32_0 = arith.constant 0 : i32
    %c0_i32_1 = arith.constant 0 : i32
    return %c0_i32, %c0_i32_0 : i32, i32
  }
  func.func @transform_22(%arg0: i32) -> (i32, i32) {
    %c0_i32 = arith.constant 0 : i32
    %c0_i32_0 = arith.constant 0 : i32
    %c0_i32_1 = arith.constant 0 : i32
    return %c0_i32, %c0_i32_0 : i32, i32
  }
  func.func @transform_23(%arg0: i32) -> (i32, i32) {
    %c0_i32 = arith.constant 0 : i32
    %c0_i32_0 = arith.constant 0 : i32
    %c0_i32_1 = arith.constant 0 : i32
    return %c0_i32, %c0_i32_0 : i32, i32
  }
  func.func @transform_24(%arg0: i32) -> (i32, i32) {
    %c0_i32 = arith.constant 0 : i32
    %c0_i32_0 = arith.constant 0 : i32
    %c0_i32_1 = arith.constant 0 : i32
    return %c0_i32, %c0_i32_0 : i32, i32
  }
  func.func @transform_25(%arg0: i32) -> (i32, i32) {
    %c0_i32 = arith.constant 0 : i32
    %c0_i32_0 = arith.constant 0 : i32
    %c0_i32_1 = arith.constant 0 : i32
    return %c0_i32, %c0_i32_0 : i32, i32
  }
  func.func @transform_26(%arg0: i32) -> (i32, i32) {
    %c0_i32 = arith.constant 0 : i32
    %c0_i32_0 = arith.constant 0 : i32
    %c0_i32_1 = arith.constant 0 : i32
    return %c0_i32, %c0_i32_0 : i32, i32
  }
  func.func @transform_27(%arg0: i32) -> (i32, i32) {
    %c0_i32 = arith.constant 0 : i32
    %c0_i32_0 = arith.constant 0 : i32
    %c0_i32_1 = arith.constant 0 : i32
    return %c0_i32, %c0_i32_0 : i32, i32
  }
  func.func @transform_28(%arg0: i32) -> (i32, i32) {
    %c0_i32 = arith.constant 0 : i32
    %c0_i32_0 = arith.constant 0 : i32
    %c0_i32_1 = arith.constant 0 : i32
    return %c0_i32, %c0_i32_0 : i32, i32
  }
  func.func @transform_29(%arg0: i32) -> (i32, i32) {
    %c0_i32 = arith.constant 0 : i32
    %c0_i32_0 = arith.constant 0 : i32
    %c0_i32_1 = arith.constant 0 : i32
    return %c0_i32, %c0_i32_0 : i32, i32
  }
  func.func @transform_30(%arg0: i32) -> (i32, i32) {
    %c0_i32 = arith.constant 0 : i32
    %c0_i32_0 = arith.constant 0 : i32
    %c0_i32_1 = arith.constant 0 : i32
    return %c0_i32, %c0_i32_0 : i32, i32
  }
  func.func @transform_31(%arg0: i32) -> (i32, i32) {
    %c0_i32 = arith.constant 0 : i32
    %c0_i32_0 = arith.constant 0 : i32
    %c0_i32_1 = arith.constant 0 : i32
    return %c0_i32, %c0_i32_0 : i32, i32
  }
  func.func @transform_32(%arg0: i32) -> (i32, i32) {
    %c0_i32 = arith.constant 0 : i32
    %c0_i32_0 = arith.constant 0 : i32
    %c0_i32_1 = arith.constant 0 : i32
    return %c0_i32, %c0_i32_0 : i32, i32
  }
  func.func @transform_33(%arg0: i32) -> (i32, i32) {
    %c0_i32 = arith.constant 0 : i32
    %c0_i32_0 = arith.constant 0 : i32
    %c0_i32_1 = arith.constant 0 : i32
    return %c0_i32, %c0_i32_0 : i32, i32
  }
  func.func @transform_34(%arg0: i32) -> (i32, i32) {
    %c0_i32 = arith.constant 0 : i32
    %c0_i32_0 = arith.constant 0 : i32
    %c0_i32_1 = arith.constant 0 : i32
    return %c0_i32, %c0_i32_0 : i32, i32
  }
  func.func @transform_35(%arg0: i32) -> (i32, i32) {
    %c0_i32 = arith.constant 0 : i32
    %c0_i32_0 = arith.constant 0 : i32
    %c0_i32_1 = arith.constant 0 : i32
    return %c0_i32, %c0_i32_0 : i32, i32
  }
  func.func @transform_36(%arg0: i32) -> (i32, i32) {
    %c0_i32 = arith.constant 0 : i32
    %c0_i32_0 = arith.constant 0 : i32
    %c0_i32_1 = arith.constant 0 : i32
    return %c0_i32, %c0_i32_0 : i32, i32
  }
  func.func @transform_37(%arg0: i32) -> (i32, i32) {
    %c0_i32 = arith.constant 0 : i32
    %c0_i32_0 = arith.constant 0 : i32
    %c0_i32_1 = arith.constant 0 : i32
    return %c0_i32, %c0_i32_0 : i32, i32
  }
  func.func @transform_38(%arg0: i32) -> (i32, i32) {
    %c0_i32 = arith.constant 0 : i32
    %c0_i32_0 = arith.constant 0 : i32
    %c0_i32_1 = arith.constant 0 : i32
    return %c0_i32, %c0_i32_0 : i32, i32
  }
  func.func @transform_39(%arg0: i32) -> (i32, i32) {
    %c0_i32 = arith.constant 0 : i32
    %c0_i32_0 = arith.constant 0 : i32
    %c0_i32_1 = arith.constant 0 : i32
    return %c0_i32, %c0_i32_0 : i32, i32
  }
  func.func @transform_40(%arg0: i32) -> (i32, i32) {
    %c0_i32 = arith.constant 0 : i32
    %c0_i32_0 = arith.constant 0 : i32
    %c0_i32_1 = arith.constant 0 : i32
    return %c0_i32, %c0_i32_0 : i32, i32
  }
  func.func @transform_41(%arg0: i32) -> (i32, i32) {
    %c0_i32 = arith.constant 0 : i32
    %c0_i32_0 = arith.constant 0 : i32
    %c0_i32_1 = arith.constant 0 : i32
    return %c0_i32, %c0_i32_0 : i32, i32
  }
  func.func @transform_42(%arg0: i32) -> (i32, i32) {
    %c0_i32 = arith.constant 0 : i32
    %c0_i32_0 = arith.constant 0 : i32
    %c0_i32_1 = arith.constant 0 : i32
    return %c0_i32, %c0_i32_0 : i32, i32
  }
  func.func @transform_43(%arg0: i32) -> (i32, i32) {
    %c0_i32 = arith.constant 0 : i32
    %c0_i32_0 = arith.constant 0 : i32
    %c0_i32_1 = arith.constant 0 : i32
    return %c0_i32, %c0_i32_0 : i32, i32
  }
  func.func @transform_44(%arg0: i32) -> (i32, i32) {
    %c0_i32 = arith.constant 0 : i32
    %c0_i32_0 = arith.constant 0 : i32
    %c0_i32_1 = arith.constant 0 : i32
    return %c0_i32, %c0_i32_0 : i32, i32
  }
  func.func @transform_45(%arg0: i32) -> (i32, i32) {
    %c0_i32 = arith.constant 0 : i32
    %c0_i32_0 = arith.constant 0 : i32
    %c0_i32_1 = arith.constant 0 : i32
    return %c0_i32, %c0_i32_0 : i32, i32
  }
  func.func @transform_46(%arg0: i32) -> (i32, i32) {
    %c0_i32 = arith.constant 0 : i32
    %c0_i32_0 = arith.constant 0 : i32
    %c0_i32_1 = arith.constant 0 : i32
    return %c0_i32, %c0_i32_0 : i32, i32
  }
  func.func @transform_47(%arg0: i32) -> (i32, i32) {
    %c0_i32 = arith.constant 0 : i32
    %c0_i32_0 = arith.constant 0 : i32
    %c0_i32_1 = arith.constant 0 : i32
    return %c0_i32, %c0_i32_0 : i32, i32
  }
  func.func @transform_48(%arg0: i32) -> (i32, i32) {
    %c0_i32 = arith.constant 0 : i32
    %c0_i32_0 = arith.constant 0 : i32
    %c0_i32_1 = arith.constant 0 : i32
    return %c0_i32, %c0_i32_0 : i32, i32
  }
  func.func @transform_49(%arg0: i32) -> (i32, i32) {
    %c0_i32 = arith.constant 0 : i32
    %c0_i32_0 = arith.constant 0 : i32
    %c0_i32_1 = arith.constant 0 : i32
    return %c0_i32, %c0_i32_0 : i32, i32
  }
  func.func @transform_50(%arg0: i32) -> (i32, i32) {
    %c0_i32 = arith.constant 0 : i32
    %c0_i32_0 = arith.constant 0 : i32
    %c0_i32_1 = arith.constant 0 : i32
    return %c0_i32, %c0_i32_0 : i32, i32
  }
  func.func @transform_51(%arg0: i32) -> (i32, i32) {
    %c0_i32 = arith.constant 0 : i32
    %c0_i32_0 = arith.constant 0 : i32
    %c0_i32_1 = arith.constant 0 : i32
    return %c0_i32, %c0_i32_0 : i32, i32
  }
  func.func @transform_52(%arg0: i32) -> (i32, i32) {
    %c0_i32 = arith.constant 0 : i32
    %c0_i32_0 = arith.constant 0 : i32
    %c0_i32_1 = arith.constant 0 : i32
    return %c0_i32, %c0_i32_0 : i32, i32
  }
  func.func @transform_53(%arg0: i32) -> (i32, i32) {
    %c0_i32 = arith.constant 0 : i32
    %c0_i32_0 = arith.constant 0 : i32
    %c0_i32_1 = arith.constant 0 : i32
    return %c0_i32, %c0_i32_0 : i32, i32
  }
  func.func @transform_54(%arg0: i32) -> (i32, i32) {
    %c0_i32 = arith.constant 0 : i32
    %c0_i32_0 = arith.constant 0 : i32
    %c0_i32_1 = arith.constant 0 : i32
    return %c0_i32, %c0_i32_0 : i32, i32
  }
  func.func @transform_55(%arg0: i32) -> (i32, i32) {
    %c0_i32 = arith.constant 0 : i32
    %c0_i32_0 = arith.constant 0 : i32
    %c0_i32_1 = arith.constant 0 : i32
    return %c0_i32, %c0_i32_0 : i32, i32
  }
  func.func @transform_56(%arg0: i32) -> (i32, i32) {
    %c0_i32 = arith.constant 0 : i32
    %c0_i32_0 = arith.constant 0 : i32
    %c0_i32_1 = arith.constant 0 : i32
    return %c0_i32, %c0_i32_0 : i32, i32
  }
  func.func @transform_57(%arg0: i32) -> (i32, i32) {
    %c0_i32 = arith.constant 0 : i32
    %c0_i32_0 = arith.constant 0 : i32
    %c0_i32_1 = arith.constant 0 : i32
    return %c0_i32, %c0_i32_0 : i32, i32
  }
  func.func @transform_58(%arg0: i32) -> (i32, i32, i32) {
    %c0_i32 = arith.constant 0 : i32
    %c0_i32_0 = arith.constant 0 : i32
    %c0_i32_1 = arith.constant 0 : i32
    %c0_i32_2 = arith.constant 0 : i32
    return %c0_i32, %c0_i32_0, %c0_i32_1 : i32, i32, i32
  }
}

</mosaic_0001>

<bundles_post_ra>
// kernel: set_pred4dee_forward.1
= control target key start
LH: loop header
LB: loop body
LE: loop exit
PB: predicated region body
PF: predicated region fallthrough
CT: control target
= control target key end

     0   :  { %s8312_s6 = smov 1   ;;  %s8313_s10 = smov 2   ;;  %s9622_s0 = inlined_call_operand.smem [shape: u32[59], index: -1, kind: input, shape index: {}] }
   0x1   :  { %s8425_s5 = sld [smem:[%s9622_s0]]   ;;  %s8314_s14 = smov 3  }
   0x2   :  { %s8430_s9 = sld [smem:[%s9622_s0 + %s8312_s6]]   ;;  %s8315_s18 = smov 4  }
   0x3   :  { %s8435_s13 = sld [smem:[%s9622_s0 + %s8313_s10]]   ;;  %s8316_s22 = smov 5  }
   0x4   :  { %s8440_s17 = sld [smem:[%s9622_s0 + %s8314_s14]]   ;;  %s8317_s26 = smov 6  }
   0x5   :  { %s8445_s21 = sld [smem:[%s9622_s0 + %s8315_s18]]   ;;  %s8318_s30 = smov 7  }
   0x6   :  { %s8450_s25 = sld [smem:[%s9622_s0 + %s8316_s22]]   ;;  %s8319_s4 = smov 8  }
   0x7   :  { %9655 = sst [smem:[#allocation64_spill]] %s8425_s5  ;;  %s8320_s10 = smov 9  }
   0x8   :  { %9656 = sst [smem:[#allocation65_spill]] %s8430_s9  ;;  %s8321_s15 = smov 10  }
   0x9   :  { %9657 = sst [smem:[#allocation66_spill]] %s8435_s13  ;;  %s8322_s20 = smov 11  }
   0xa   :  { %9658 = sst [smem:[#allocation67_spill]] %s8440_s17  ;;  %s8324_s1 = smov 13  }
   0xb   :  { %9659 = sst [smem:[#allocation68_spill]] %s8445_s21  ;;  %s8325_s7 = smov 14  }
   0xc   :  { %9660 = sst [smem:[#allocation69_spill]] %s8450_s25  ;;  %s8327_s22 = smov 16  }
   0xd   :  { %s8455_s29 = sld [smem:[%s9622_s0 + %s8317_s26]]   ;;  %s8323_s26 = smov 12  }
   0xe   :  { %s8460_s3 = sld [smem:[%s9622_s0 + %s8318_s30]]   ;;  %s8328_s28 = smov 17  }
   0xf   :  { %s8465_s8 = sld [smem:[%s9622_s0 + %s8319_s4]]  }
  0x10   :  { %s8470_s14 = sld [smem:[%s9622_s0 + %s8320_s10]]  }
  0x11   :  { %s8475_s19 = sld [smem:[%s9622_s0 + %s8321_s15]]   ;;  %s8326_s15 = smov 15  }
  0x12   :  { %s8480_s24 = sld [smem:[%s9622_s0 + %s8322_s20]]  }
  0x13   :  { %s8485_s30 = sld [smem:[%s9622_s0 + %s8323_s26]]  }
  0x14   :  { %9661 = sst [smem:[#allocation70_spill]] %s8460_s3 }
  0x15   :  { %9662 = sst [smem:[#allocation71_spill]] %s8465_s8 }
  0x16   :  { %s8490_s6 = sld [smem:[%s9622_s0 + %s8324_s1]]  }
  0x17   :  { %9663 = sst [smem:[#allocation72_spill]] %s8475_s19 }
  0x18   :  { %9664 = sst [smem:[#allocation73_spill]] %s8480_s24 }
  0x19   :  { %9665 = sst [smem:[#allocation74_spill]] %s8485_s30 }
  0x1a   :  { %s8495_s12 = sld [smem:[%s9622_s0 + %s8325_s7]]   ;;  %s8329_s7 = smov 18  }
  0x1b   :  { %s8500_s20 = sld [smem:[%s9622_s0 + %s8326_s15]]   ;;  %s8330_s15 = smov 19  }
  0x1c   :  { %s8505_s27 = sld [smem:[%s9622_s0 + %s8327_s22]]   ;;  %s8331_s22 = smov 20  }
  0x1d   :  { %s8510_s4 = sld [smem:[%s9622_s0 + %s8328_s28]]   ;;  %s8332_s28 = smov 21  }
  0x1e   :  { %s8515_s9 = sld [smem:[%s9622_s0 + %s8329_s7]]   ;;  %s8333_s7 = smov 22  }
  0x1f   :  { %s8520_s19 = sld [smem:[%s9622_s0 + %s8330_s15]]   ;;  %s8334_s15 = smov 23  }
  0x20   :  { %9666 = sst [smem:[#allocation75_spill]] %s8495_s12 }
  0x21   :  { %s8525_s30 = sld [smem:[%s9622_s0 + %s8331_s22]]   ;;  %s8335_s22 = smov 24  }
  0x22   :  { %9667 = sst [smem:[#allocation76_spill]] %s8505_s27 }
  0x23   :  { %s8530_s8 = sld [smem:[%s9622_s0 + %s8332_s28]]   ;;  %s8336_s28 = smov 25  }
  0x24   :  { %9668 = sst [smem:[#allocation77_spill]] %s8515_s9 }
  0x25   :  { %s8535_s17 = sld [smem:[%s9622_s0 + %s8333_s7]]   ;;  %s8337_s7 = smov 26  }
  0x26   :  { %s8540_s21 = sld [smem:[%s9622_s0 + %s8334_s15]]   ;;  %s8338_s15 = smov 27  }
  0x27   :  { %9669 = sst [smem:[#allocation78_spill]] %s8525_s30 }
  0x28   :  { %s8545_s30 = sld [smem:[%s9622_s0 + %s8335_s22]]   ;;  %s8339_s22 = smov 28  }
  0x29   :  { %9670 = sst [smem:[#allocation79_spill]] %s8530_s8 }
  0x2a   :  { %s8550_s8 = sld [smem:[%s9622_s0 + %s8336_s28]]   ;;  %s8340_s28 = smov 29  }
  0x2b   :  { %9671 = sst [smem:[#allocation80_spill]] %s8535_s17 }
  0x2c   :  { %9672 = sst [smem:[#allocation81_spill]] %s8540_s21 }
  0x2d   :  { %s8555_s17 = sld [smem:[%s9622_s0 + %s8337_s7]]   ;;  %s8341_s7 = smov 30  }
  0x2e   :  { %9673 = sst [smem:[#allocation82_spill]] %s8545_s30 }
  0x2f   :  { %s8560_s5 = sld [smem:[%s9622_s0 + %s8338_s15]]   ;;  %s8342_s15 = smov 31  }
  0x30   :  { %s8565_s30 = sld [smem:[%s9622_s0 + %s8339_s22]]   ;;  %s8343_s22 = smov 32  }
  0x31   :  { %s8570_s13 = sld [smem:[%s9622_s0 + %s8340_s28]]   ;;  %s8344_s28 = smov 33  }
  0x32   :  { %s8580_s21 = sld [smem:[%s9622_s0 + %s8342_s15]]   ;;  %s8346_s15 = smov 35  }
  0x33   :  { %9674 = sst [smem:[#allocation83_spill]] %s8555_s17 }
  0x34   :  { %s8575_s17 = sld [smem:[%s9622_s0 + %s8341_s7]]   ;;  %s8345_s7 = smov 34  }
  0x35   :  { %s8595_s9 = sld [smem:[%s9622_s0 + %s8345_s7]]   ;;  %s8349_s7 = smov 38  }
  0x36   :  { %9675 = sst [smem:[#allocation84_spill]] %s8565_s30 }
  0x37   :  { %9676 = sst [smem:[#allocation85_spill]] %s8570_s13 }
  0x38   :  { %9677 = sst [smem:[#allocation86_spill]] %s8580_s21 }
  0x39   :  { %s8585_s30 = sld [smem:[%s9622_s0 + %s8343_s22]]   ;;  %s8347_s22 = smov 36  }
  0x3a   :  { %s8590_s13 = sld [smem:[%s9622_s0 + %s8344_s28]]   ;;  %s8348_s28 = smov 37  }
  0x3b   :  { %9679 = sst [smem:[#allocation88_spill]] %s8595_s9 }
  0x3c   :  { %s8600_s21 = sld [smem:[%s9622_s0 + %s8346_s15]]   ;;  %s8350_s15 = smov 39  }
  0x3d   :  { %s8605_s27 = sld [smem:[%s9622_s0 + %s8347_s22]]   ;;  %s8351_s22 = smov 40  }
  0x3e   :  { %s8615_s9 = sld [smem:[%s9622_s0 + %s8349_s7]]   ;;  %s8353_s7 = smov 42  }
  0x40   :  { %9678 = sst [smem:[#allocation87_spill]] %s8590_s13 }
  0x41   :  { %s8610_s13 = sld [smem:[%s9622_s0 + %s8348_s28]]   ;;  %s8352_s28 = smov 41  }
  0x42   :  { %9680 = sst [smem:[#allocation89_spill]] %s8600_s21 }
  0x43   :  { %9681 = sst [smem:[#allocation90_spill]] %s8605_s27 }
  0x44   :  { %9682 = sst [smem:[#allocation91_spill]] %s8615_s9 }
  0x45   :  { %s8620_s21 = sld [smem:[%s9622_s0 + %s8350_s15]]   ;;  %s8354_s15 = smov 43  }
  0x46   :  { %s8625_s27 = sld [smem:[%s9622_s0 + %s8351_s22]]   ;;  %s8355_s22 = smov 44  }
  0x47   :  { %s8630_s12 = sld [smem:[%s9622_s0 + %s8352_s28]]   ;;  %s8356_s28 = smov 45  }
  0x48   :  { %s8635_s9 = sld [smem:[%s9622_s0 + %s8353_s7]]   ;;  %s8357_s7 = smov 46  }
  0x49   :  { %s8640_s24 = sld [smem:[%s9622_s0 + %s8354_s15]]   ;;  %s8358_s15 = smov 47  }
  0x4c   :  { %9683 = sst [smem:[#allocation92_spill]] %s8625_s27 }
  0x4d   :  { %9684 = sst [smem:[#allocation93_spill]] %s8630_s12 }
  0x4e   :  { %9685 = sst [smem:[#allocation94_spill]] %s8635_s9 }
  0x4f   :  { %9686 = sst [smem:[#allocation95_spill]] %s8640_s24 }
  0x50   :  { %s8645_s27 = sld [smem:[%s9622_s0 + %s8355_s22]]   ;;  %s8359_s22 = smov 48  }
  0x51   :  { %s8650_s12 = sld [smem:[%s9622_s0 + %s8356_s28]]   ;;  %s8360_s28 = smov 49  }
  0x52   :  { %s8655_s9 = sld [smem:[%s9622_s0 + %s8357_s7]]   ;;  %s8361_s7 = smov 50  }
  0x53   :  { %s8660_s24 = sld [smem:[%s9622_s0 + %s8358_s15]]   ;;  %s8362_s15 = smov 51  }
  0x54   :  { %s8665_s3 = sld [smem:[%s9622_s0 + %s8359_s22]]   ;;  %s8363_s22 = smov 52  }
  0x55   :  { %s8675_s25 = sld [smem:[%s9622_s0 + %s8361_s7]]   ;;  %s8365_s7 = smov 54  }
  0x57   :  { %9687 = sst [smem:[#allocation96_spill]] %s8650_s12 }
  0x58   :  { %s8670_s12 = sld [smem:[%s9622_s0 + %s8360_s28]]   ;;  %s8364_s28 = smov 53  }
  0x59   :  { %9688 = sst [smem:[#allocation97_spill]] %s8660_s24 }
  0x5a   :  { %9689 = sst [smem:[#allocation98_spill]] %s8665_s3 }
  0x5b   :  { %9691 = sst [smem:[#allocation100_spill]] %s8675_s25 }
  0x5c   :  { %s8680_s24 = sld [smem:[%s9622_s0 + %s8362_s15]]   ;;  %s8366_s15 = smov 55  }
  0x5d   :  { %s8685_s3 = sld [smem:[%s9622_s0 + %s8363_s22]]   ;;  %s8367_s22 = smov 56  }
  0x5e   :  { %9690 = sst [smem:[#allocation99_spill]] %s8670_s12 }
  0x5f   :  { %s8690_s12 = sld [smem:[%s9622_s0 + %s8364_s28]]   ;;  %s8368_s28 = smov 57  }
  0x60   :  { %s8695_s25 = sld [smem:[%s9622_s0 + %s8365_s7]]   ;;  %s8369_s7 = smov 58  }
  0x62   :  { %9692 = sst [smem:[#allocation101_spill]] %s8680_s24 }
  0x63   :  { %9693 = sst [smem:[#allocation102_spill]] %s8685_s3 }
  0x64   :  { %s8700_s24 = sld [smem:[%s9622_s0 + %s8366_s15]]  }
  0x65   :  { %9694 = sst [smem:[#allocation103_spill]] %s8690_s12 }
  0x66   :  { %9695 = sst [smem:[#allocation104_spill]] %s8695_s25 }
  0x67   :  { %s8705_s3 = sld [smem:[%s9622_s0 + %s8367_s22]]  }
  0x68   :  { %s8710_s12 = sld [smem:[%s9622_s0 + %s8368_s28]]  }
  0x69   :  { %s8715_s25 = sld [smem:[%s9622_s0 + %s8369_s7]]  }
  0x6a   :  { %123 = vsyncpa [#allocation3], 0 }
  0x6b   :  { %124 = vsyncpa [#allocation5], 0 }
  0x6c   :  { %125 = vsyncpa [#allocation8], 0 }
  0x6d   :  { %126 = vsyncpa [#allocation11], 0 }
  0x6e   :  { %127 = vsyncpa [#allocation14], 0 }
  0x6f   :  { %128 = vsyncpa [#allocation17], 0 }
  0x70   :  { %129 = vsyncpa [#allocation20], 0 }
  0x71   :  { %130 = vsyncpa [#allocation23], 0 }
  0x72   :  { %131 = vsyncpa [#allocation26], 0 }
  0x73   :  { %132 = vsyncpa [#allocation29], 0 }
  0x74   :  { %133 = vsyncpa [#allocation32], 0 }
  0x75   :  { %134 = vsyncpa [#allocation35], 0 }
  0x76   :  { %135 = vsyncpa [#allocation38], 0 }
  0x77   :  { %136 = vsyncpa [#allocation41], 0 }
  0x78   :  { %137 = vsyncpa [#allocation44], 0 }
  0x79   :  { %138 = vsyncpa [#allocation47], 0  ;;  %s8370_s0 = smov [#allocation4]   ;;  %s8371_s16 = smov [#allocation7]  }
  0x7a   :  { %s165_s15 = sshll.u32 %s8370_s0, 4  ;;  %s187_s18 = sshll.u32 %s8371_s16, 4  ;;  %s166_s15 = int_to_ptr.vmem [resolvable:$true] %s165_s15  ;;  %s188_s18 = int_to_ptr.vmem [resolvable:$true] %s187_s18 }
  0x7b   :  { %s7620_s22 = scalar_lea.hbm %s8455_s29, 16 }
  0x7c   :  { %p7621_p0 = scmp.ne.s32.totalorder %s8455_s29, %s7620_s22  ;;  %p7624_p1 = scmp.lt.u32.totalorder %s7620_s22, %s8455_s29 }
  0x7e   :  { %p7626_p2 = pnand %p7624_p1, %p7621_p0 }
  0x80   :  { %7629 = shalt.err (!%p7626_p2)
}
  0x81   :  { %s7630_s23 = scalar_lea.vmem %s166_s15, 16  ;;  %s7634_s26 = scalar_lea.vmem %s166_s15, 32 }
  0x82   :  { %p7631_p3 = scmp.ne.s32.totalorder %s166_s15, %s7630_s23  ;;  %p7635_p4 = scmp.lt.s32.totalorder %s166_s15, %s166_s15 }
  0x83   :  { %p7636_p5 = scmp.lt.s32.totalorder %s7634_s26, %s7630_s23 }
  0x85   :  { %p7637_p6 = por %p7636_p5, %p7635_p4 }
  0x87   :  { %p7638_p7 = pnand %p7637_p6, %p7631_p3 }
  0x89   :  { %7641 = shalt.err (!%p7638_p7)
}
  0x8a   :  { %168 = dma.hbm_to_vmem [thread:$0]  %s8455_s29, 16, %s166_s15, [#allocation5]  }
  0x8b   :  { %s7642_s28 = scalar_lea.hbm %s8470_s14, 16 }
  0x8c   :  { %p7643_p8 = scmp.ne.s32.totalorder %s8470_s14, %s7642_s28  ;;  %p7646_p9 = scmp.lt.u32.totalorder %s7642_s28, %s8470_s14 }
  0x8e   :  { %p7648_p10 = pnand %p7646_p9, %p7643_p8 }
  0x90   :  { %7651 = shalt.err (!%p7648_p10)
}
  0x91   :  { %s7652_s1 = scalar_lea.vmem %s188_s18, 16  ;;  %s7656_s2 = scalar_lea.vmem %s188_s18, 32 }
  0x92   :  { %p7653_p11 = scmp.ne.s32.totalorder %s188_s18, %s7652_s1  ;;  %p7657_p12 = scmp.lt.s32.totalorder %s188_s18, %s188_s18 }
  0x93   :  { %p7658_p13 = scmp.lt.s32.totalorder %s7656_s2, %s7652_s1 }
  0x95   :  { %p7659_p0 = por %p7658_p13, %p7657_p12 }
  0x97   :  { %p7660_p1 = pnand %p7659_p0, %p7653_p11 }
  0x99   :  { %7663 = shalt.err (!%p7660_p1)
}
  0x9a   :  { %190 = dma.hbm_to_vmem [thread:$0]  %s8470_s14, 16, %s188_s18, [#allocation8]  }
  0x9b   :  { %s8372_s7 = smov [#allocation10]   ;;  %s8373_s10 = smov [#allocation13]  }
  0x9c   :  { %s211_s29 = sshll.u32 %s8372_s7, 4  ;;  %s231_s11 = sshll.u32 %s8373_s10, 4  ;;  %s212_s29 = int_to_ptr.vmem [resolvable:$true] %s211_s29  ;;  %s232_s11 = int_to_ptr.vmem [resolvable:$true] %s231_s11 }
  0x9d   :  { %s7664_s0 = scalar_lea.hbm %s8490_s6, 16 }
  0x9e   :  { %p7665_p2 = scmp.ne.s32.totalorder %s8490_s6, %s7664_s0  ;;  %p7668_p3 = scmp.lt.u32.totalorder %s7664_s0, %s8490_s6 }
  0xa0   :  { %p7670_p4 = pnand %p7668_p3, %p7665_p2 }
  0xa2   :  { %7673 = shalt.err (!%p7670_p4)
}
  0xa3   :  { %s7674_s15 = scalar_lea.vmem %s212_s29, 16  ;;  %s7678_s16 = scalar_lea.vmem %s212_s29, 32 }
  0xa4   :  { %p7675_p5 = scmp.ne.s32.totalorder %s212_s29, %s7674_s15  ;;  %p7679_p6 = scmp.lt.s32.totalorder %s212_s29, %s212_s29 }
  0xa5   :  { %p7680_p7 = scmp.lt.s32.totalorder %s7678_s16, %s7674_s15 }
  0xa7   :  { %p7681_p8 = por %p7680_p7, %p7679_p6 }
  0xa9   :  { %p7682_p9 = pnand %p7681_p8, %p7675_p5 }
  0xab   :  { %7685 = shalt.err (!%p7682_p9)
}
  0xac   :  { %214 = dma.hbm_to_vmem [thread:$0]  %s8490_s6, 16, %s212_s29, [#allocation11]  }
  0xad   :  { %s7686_s14 = scalar_lea.hbm %s8500_s20, 16 }
  0xae   :  { %p7687_p10 = scmp.ne.s32.totalorder %s8500_s20, %s7686_s14  ;;  %p7690_p11 = scmp.lt.u32.totalorder %s7686_s14, %s8500_s20 }
  0xb0   :  { %p7692_p12 = pnand %p7690_p11, %p7687_p10 }
  0xb2   :  { %7695 = shalt.err (!%p7692_p12)
}
  0xb3   :  { %s7696_s18 = scalar_lea.vmem %s232_s11, 16  ;;  %s7700_s22 = scalar_lea.vmem %s232_s11, 32 }
  0xb4   :  { %p7697_p13 = scmp.ne.s32.totalorder %s232_s11, %s7696_s18  ;;  %p7701_p0 = scmp.lt.s32.totalorder %s232_s11, %s232_s11 }
  0xb5   :  { %p7702_p1 = scmp.lt.s32.totalorder %s7700_s22, %s7696_s18 }
  0xb7   :  { %p7703_p2 = por %p7702_p1, %p7701_p0 }
  0xb9   :  { %p7704_p3 = pnand %p7703_p2, %p7697_p13 }
  0xbb   :  { %7707 = shalt.err (!%p7704_p3)
}
  0xbc   :  { %234 = dma.hbm_to_vmem [thread:$0]  %s8500_s20, 16, %s232_s11, [#allocation14]  }
  0xbd   :  { %s8374_s23 = smov [#allocation16]   ;;  %s8375_s26 = smov [#allocation19]  }
  0xbe   :  { %s251_s6 = sshll.u32 %s8374_s23, 4  ;;  %s271_s28 = sshll.u32 %s8375_s26, 4  ;;  %s252_s6 = int_to_ptr.vmem [resolvable:$true] %s251_s6  ;;  %s272_s28 = int_to_ptr.vmem [resolvable:$true] %s271_s28 }
  0xbf   :  { %s7708_s1 = scalar_lea.hbm %s8510_s4, 16 }
  0xc0   :  { %p7709_p4 = scmp.ne.s32.totalorder %s8510_s4, %s7708_s1  ;;  %p7712_p5 = scmp.lt.u32.totalorder %s7708_s1, %s8510_s4 }
  0xc2   :  { %p7714_p6 = pnand %p7712_p5, %p7709_p4 }
  0xc4   :  { %7717 = shalt.err (!%p7714_p6)
}
  0xc5   :  { %s7718_s2 = scalar_lea.vmem %s252_s6, 16  ;;  %s7722_s7 = scalar_lea.vmem %s252_s6, 32 }
  0xc6   :  { %p7719_p7 = scmp.ne.s32.totalorder %s252_s6, %s7718_s2  ;;  %p7723_p8 = scmp.lt.s32.totalorder %s252_s6, %s252_s6 }
  0xc7   :  { %p7724_p9 = scmp.lt.s32.totalorder %s7722_s7, %s7718_s2 }
  0xc9   :  { %p7725_p10 = por %p7724_p9, %p7723_p8 }
  0xcb   :  { %p7726_p11 = pnand %p7725_p10, %p7719_p7 }
  0xcd   :  { %7729 = shalt.err (!%p7726_p11)
}
  0xce   :  { %254 = dma.hbm_to_vmem [thread:$0]  %s8510_s4, 16, %s252_s6, [#allocation17]  }
  0xcf   :  { %s7730_s20 = scalar_lea.hbm %s8520_s19, 16 }
  0xd0   :  { %p7731_p12 = scmp.ne.s32.totalorder %s8520_s19, %s7730_s20  ;;  %p7734_p13 = scmp.lt.u32.totalorder %s7730_s20, %s8520_s19 }
  0xd2   :  { %p7736_p0 = pnand %p7734_p13, %p7731_p12 }
  0xd4   :  { %7739 = shalt.err (!%p7736_p0)
}
  0xd5   :  { %s7740_s29 = scalar_lea.vmem %s272_s28, 16  ;;  %s7744_s10 = scalar_lea.vmem %s272_s28, 32 }
  0xd6   :  { %p7741_p1 = scmp.ne.s32.totalorder %s272_s28, %s7740_s29  ;;  %p7745_p2 = scmp.lt.s32.totalorder %s272_s28, %s272_s28 }
  0xd7   :  { %p7746_p3 = scmp.lt.s32.totalorder %s7744_s10, %s7740_s29 }
  0xd9   :  { %p7747_p4 = por %p7746_p3, %p7745_p2 }
  0xdb   :  { %p7748_p5 = pnand %p7747_p4, %p7741_p1 }
  0xdd   :  { %7751 = shalt.err (!%p7748_p5)
}
  0xde   :  { %274 = dma.hbm_to_vmem [thread:$0]  %s8520_s19, 16, %s272_s28, [#allocation20]  }
  0xdf   :  { %s8376_s11 = smov [#allocation22]   ;;  %s8377_s0 = smov [#allocation25]  }
  0xe0   :  { %s299_s4 = sshll.u32 %s8376_s11, 4  ;;  %s319_s15 = sshll.u32 %s8377_s0, 4  ;;  %s300_s4 = int_to_ptr.vmem [resolvable:$true] %s299_s4  ;;  %s320_s15 = int_to_ptr.vmem [resolvable:$true] %s319_s15 }
  0xe1   :  { %s7752_s16 = scalar_lea.hbm %s8550_s8, 16 }
  0xe2   :  { %p7753_p6 = scmp.ne.s32.totalorder %s8550_s8, %s7752_s16  ;;  %p7756_p7 = scmp.lt.u32.totalorder %s7752_s16, %s8550_s8 }
  0xe4   :  { %p7758_p8 = pnand %p7756_p7, %p7753_p6 }
  0xe6   :  { %7761 = shalt.err (!%p7758_p8)
}
  0xe7   :  { %s7762_s14 = scalar_lea.vmem %s300_s4, 16  ;;  %s7766_s18 = scalar_lea.vmem %s300_s4, 32 }
  0xe8   :  { %p7763_p9 = scmp.ne.s32.totalorder %s300_s4, %s7762_s14  ;;  %p7767_p10 = scmp.lt.s32.totalorder %s300_s4, %s300_s4 }
  0xe9   :  { %p7768_p11 = scmp.lt.s32.totalorder %s7766_s18, %s7762_s14 }
  0xeb   :  { %p7769_p12 = por %p7768_p11, %p7767_p10 }
  0xed   :  { %p7770_p13 = pnand %p7769_p12, %p7763_p9 }
  0xef   :  { %7773 = shalt.err (!%p7770_p13)
}
  0xf0   :  { %302 = dma.hbm_to_vmem [thread:$0]  %s8550_s8, 16, %s300_s4, [#allocation23]  }
  0xf1   :  { %s7774_s19 = scalar_lea.hbm %s8560_s5, 16 }
  0xf2   :  { %p7775_p0 = scmp.ne.s32.totalorder %s8560_s5, %s7774_s19  ;;  %p7778_p1 = scmp.lt.u32.totalorder %s7774_s19, %s8560_s5 }
  0xf4   :  { %p7780_p2 = pnand %p7778_p1, %p7775_p0 }
  0xf6   :  { %7783 = shalt.err (!%p7780_p2)
}
  0xf7   :  { %s7784_s22 = scalar_lea.vmem %s320_s15, 16  ;;  %s7788_s23 = scalar_lea.vmem %s320_s15, 32 }
  0xf8   :  { %p7785_p3 = scmp.ne.s32.totalorder %s320_s15, %s7784_s22  ;;  %p7789_p4 = scmp.lt.s32.totalorder %s320_s15, %s320_s15 }
  0xf9   :  { %p7790_p5 = scmp.lt.s32.totalorder %s7788_s23, %s7784_s22 }
  0xfb   :  { %p7791_p6 = por %p7790_p5, %p7789_p4 }
  0xfd   :  { %p7792_p7 = pnand %p7791_p6, %p7785_p3 }
  0xff   :  { %7795 = shalt.err (!%p7792_p7)
}
 0x100   :  { %322 = dma.hbm_to_vmem [thread:$0]  %s8560_s5, 16, %s320_s15, [#allocation26]  }
 0x101   :  { %s8378_s6 = smov [#allocation28]   ;;  %s8379_s26 = smov [#allocation31]  }
 0x102   :  { %s341_s8 = sshll.u32 %s8378_s6, 4  ;;  %s361_s28 = sshll.u32 %s8379_s26, 4  ;;  %s342_s8 = int_to_ptr.vmem [resolvable:$true] %s341_s8  ;;  %s362_s28 = int_to_ptr.vmem [resolvable:$true] %s361_s28 }
 0x103   :  { %s7796_s1 = scalar_lea.hbm %s8575_s17, 16 }
 0x104   :  { %p7797_p8 = scmp.ne.s32.totalorder %s8575_s17, %s7796_s1  ;;  %p7800_p9 = scmp.lt.u32.totalorder %s7796_s1, %s8575_s17 }
 0x106   :  { %p7802_p10 = pnand %p7800_p9, %p7797_p8 }
 0x108   :  { %7805 = shalt.err (!%p7802_p10)
}
 0x109   :  { %s7806_s2 = scalar_lea.vmem %s342_s8, 16  ;;  %s7810_s7 = scalar_lea.vmem %s342_s8, 32 }
 0x10a   :  { %p7807_p11 = scmp.ne.s32.totalorder %s342_s8, %s7806_s2  ;;  %p7811_p12 = scmp.lt.s32.totalorder %s342_s8, %s342_s8 }
 0x10b   :  { %p7812_p13 = scmp.lt.s32.totalorder %s7810_s7, %s7806_s2 }
 0x10d   :  { %p7813_p0 = por %p7812_p13, %p7811_p12 }
 0x10f   :  { %p7814_p1 = pnand %p7813_p0, %p7807_p11 }
 0x111   :  { %7817 = shalt.err (!%p7814_p1)
}
 0x112   :  { %344 = dma.hbm_to_vmem [thread:$0]  %s8575_s17, 16, %s342_s8, [#allocation29]  }
 0x113   :  { %s7818_s5 = scalar_lea.hbm %s8585_s30, 16 }
 0x114   :  { %p7819_p2 = scmp.ne.s32.totalorder %s8585_s30, %s7818_s5  ;;  %p7822_p3 = scmp.lt.u32.totalorder %s7818_s5, %s8585_s30 }
 0x116   :  { %p7824_p4 = pnand %p7822_p3, %p7819_p2 }
 0x118   :  { %7827 = shalt.err (!%p7824_p4)
}
 0x119   :  { %s7828_s20 = scalar_lea.vmem %s362_s28, 16  ;;  %s7832_s29 = scalar_lea.vmem %s362_s28, 32 }
 0x11a   :  { %p7829_p5 = scmp.ne.s32.totalorder %s362_s28, %s7828_s20  ;;  %p7833_p6 = scmp.lt.s32.totalorder %s362_s28, %s362_s28 }
 0x11b   :  { %p7834_p7 = scmp.lt.s32.totalorder %s7832_s29, %s7828_s20 }
 0x11d   :  { %p7835_p8 = por %p7834_p7, %p7833_p6 }
 0x11f   :  { %p7836_p9 = pnand %p7835_p8, %p7829_p5 }
 0x121   :  { %7839 = shalt.err (!%p7836_p9)
}
 0x122   :  { %364 = dma.hbm_to_vmem [thread:$0]  %s8585_s30, 16, %s362_s28, [#allocation32]  }
 0x123   :  { %s8380_s10 = smov [#allocation34]   ;;  %s8381_s11 = smov [#allocation37]  }
 0x124   :  { %s387_s17 = sshll.u32 %s8380_s10, 4  ;;  %s407_s4 = sshll.u32 %s8381_s11, 4  ;;  %s388_s17 = int_to_ptr.vmem [resolvable:$true] %s387_s17  ;;  %s408_s4 = int_to_ptr.vmem [resolvable:$true] %s407_s4 }
 0x125   :  { %s7840_s0 = scalar_lea.hbm %s8610_s13, 16 }
 0x126   :  { %p7841_p10 = scmp.ne.s32.totalorder %s8610_s13, %s7840_s0  ;;  %p7844_p11 = scmp.lt.u32.totalorder %s7840_s0, %s8610_s13 }
 0x128   :  { %p7846_p12 = pnand %p7844_p11, %p7841_p10 }
 0x12a   :  { %7849 = shalt.err (!%p7846_p12)
}
 0x12b   :  { %s7850_s15 = scalar_lea.vmem %s388_s17, 16  ;;  %s7854_s16 = scalar_lea.vmem %s388_s17, 32 }
 0x12c   :  { %p7851_p13 = scmp.ne.s32.totalorder %s388_s17, %s7850_s15  ;;  %p7855_p0 = scmp.lt.s32.totalorder %s388_s17, %s388_s17 }
 0x12d   :  { %p7856_p1 = scmp.lt.s32.totalorder %s7854_s16, %s7850_s15 }
 0x12f   :  { %p7857_p2 = por %p7856_p1, %p7855_p0 }
 0x131   :  { %p7858_p3 = pnand %p7857_p2, %p7851_p13 }
 0x133   :  { %7861 = shalt.err (!%p7858_p3)
}
 0x134   :  { %390 = dma.hbm_to_vmem [thread:$0]  %s8610_s13, 16, %s388_s17, [#allocation35]  }
 0x135   :  { %s7862_s30 = scalar_lea.hbm %s8620_s21, 16 }
 0x136   :  { %p7863_p4 = scmp.ne.s32.totalorder %s8620_s21, %s7862_s30  ;;  %p7866_p5 = scmp.lt.u32.totalorder %s7862_s30, %s8620_s21 }
 0x138   :  { %p7868_p6 = pnand %p7866_p5, %p7863_p4 }
 0x13a   :  { %7871 = shalt.err (!%p7868_p6)
}
 0x13b   :  { %s7872_s14 = scalar_lea.vmem %s408_s4, 16  ;;  %s7876_s18 = scalar_lea.vmem %s408_s4, 32 }
 0x13c   :  { %p7873_p7 = scmp.ne.s32.totalorder %s408_s4, %s7872_s14  ;;  %p7877_p8 = scmp.lt.s32.totalorder %s408_s4, %s408_s4 }
 0x13d   :  { %p7878_p9 = scmp.lt.s32.totalorder %s7876_s18, %s7872_s14 }
 0x13f   :  { %p7879_p10 = por %p7878_p9, %p7877_p8 }
 0x141   :  { %p7880_p11 = pnand %p7879_p10, %p7873_p7 }
 0x143   :  { %7883 = shalt.err (!%p7880_p11)
}
 0x144   :  { %410 = dma.hbm_to_vmem [thread:$0]  %s8620_s21, 16, %s408_s4, [#allocation38]  }
 0x145   :  { %s8382_s19 = smov [#allocation40]   ;;  %s8383_s22 = smov [#allocation43]  }
 0x146   :  { %s433_s13 = sshll.u32 %s8382_s19, 4  ;;  %s455_s23 = sshll.u32 %s8383_s22, 4  ;;  %s434_s13 = int_to_ptr.vmem [resolvable:$true] %s433_s13  ;;  %s456_s23 = int_to_ptr.vmem [resolvable:$true] %s455_s23 }
 0x147   :  { %s7884_s6 = scalar_lea.hbm %s8645_s27, 16 }
 0x148   :  { %p7885_p12 = scmp.ne.s32.totalorder %s8645_s27, %s7884_s6  ;;  %p7888_p13 = scmp.lt.u32.totalorder %s7884_s6, %s8645_s27 }
 0x14a   :  { %p7890_p0 = pnand %p7888_p13, %p7885_p12 }
 0x14c   :  { %7893 = shalt.err (!%p7890_p0)
}
 0x14d   :  { %s7894_s8 = scalar_lea.vmem %s434_s13, 16  ;;  %s7898_s26 = scalar_lea.vmem %s434_s13, 32 }
 0x14e   :  { %p7895_p1 = scmp.ne.s32.totalorder %s434_s13, %s7894_s8  ;;  %p7899_p2 = scmp.lt.s32.totalorder %s434_s13, %s434_s13 }
 0x14f   :  { %p7900_p3 = scmp.lt.s32.totalorder %s7898_s26, %s7894_s8 }
 0x151   :  { %p7901_p4 = por %p7900_p3, %p7899_p2 }
 0x153   :  { %p7902_p5 = pnand %p7901_p4, %p7895_p1 }
 0x155   :  { %7905 = shalt.err (!%p7902_p5)
}
 0x156   :  { %436 = dma.hbm_to_vmem [thread:$0]  %s8645_s27, 16, %s434_s13, [#allocation41]  }
 0x157   :  { %s7906_s21 = scalar_lea.hbm %s8655_s9, 16 }
 0x158   :  { %p7907_p6 = scmp.ne.s32.totalorder %s8655_s9, %s7906_s21  ;;  %p7910_p7 = scmp.lt.u32.totalorder %s7906_s21, %s8655_s9 }
 0x15a   :  { %p7912_p8 = pnand %p7910_p7, %p7907_p6 }
 0x15c   :  { %7915 = shalt.err (!%p7912_p8)
}
 0x15d   :  { %s7916_s28 = scalar_lea.vmem %s456_s23, 16  ;;  %s7920_s1 = scalar_lea.vmem %s456_s23, 32 }
 0x15e   :  { %p7917_p9 = scmp.ne.s32.totalorder %s456_s23, %s7916_s28  ;;  %p7921_p10 = scmp.lt.s32.totalorder %s456_s23, %s456_s23 }
 0x15f   :  { %p7922_p11 = scmp.lt.s32.totalorder %s7920_s1, %s7916_s28 }
 0x161   :  { %p7923_p12 = por %p7922_p11, %p7921_p10 }
 0x163   :  { %p7924_p13 = pnand %p7923_p12, %p7917_p9 }
 0x165   :  { %7927 = shalt.err (!%p7924_p13)
}
 0x166   :  { %s9696_s2 = sld [smem:[#allocation69_spill]]  ;;  %s8384_s7 = smov [#allocation2]  }
 0x167   :  { %458 = dma.hbm_to_vmem [thread:$0]  %s8655_s9, 16, %s456_s23, [#allocation44]  }
 0x168   :  { %s155_s27 = sshll.u32 %s8384_s7, 4  ;;  %s8385_s5 = smov [#allocation6]   ;;  %s156_s27 = int_to_ptr.vmem [resolvable:$true] %s155_s27 }
 0x169   :  { %s175_s20 = sshll.u32 %s8385_s5, 4  ;;  %s176_s20 = int_to_ptr.vmem [resolvable:$true] %s175_s20 }
 0x16c   :  { %s7928_s29 = scalar_lea.hbm %s9696_s2, 16 }
 0x16d   :  { %p7929_p0 = scmp.ne.s32.totalorder %s9696_s2, %s7928_s29  ;;  %p7932_p1 = scmp.lt.u32.totalorder %s7928_s29, %s9696_s2 }
 0x16f   :  { %p7934_p2 = pnand %p7932_p1, %p7929_p0 }
 0x171   :  { %7937 = shalt.err (!%p7934_p2)
}
 0x172   :  { %s7938_s10 = scalar_lea.vmem %s156_s27, 16  ;;  %s7942_s17 = scalar_lea.vmem %s156_s27, 32 }
 0x173   :  { %p7939_p3 = scmp.ne.s32.totalorder %s156_s27, %s7938_s10  ;;  %p7943_p4 = scmp.lt.s32.totalorder %s156_s27, %s156_s27 }
 0x174   :  { %p7944_p5 = scmp.lt.s32.totalorder %s7942_s17, %s7938_s10 }
 0x176   :  { %p7945_p6 = por %p7944_p5, %p7943_p4 }
 0x178   :  { %p7946_p7 = pnand %p7945_p6, %p7939_p3 }
 0x17a   :  { %7949 = shalt.err (!%p7946_p7)
}
 0x17b   :  { %s9697_s9 = sld [smem:[#allocation70_spill]] }
 0x17c   :  { %158 = dma.hbm_to_vmem [thread:$0]  %s9696_s2, 16, %s156_s27, [#allocation3]  }
 0x181   :  { %s7950_s11 = scalar_lea.hbm %s9697_s9, 16 }
 0x182   :  { %p7951_p8 = scmp.ne.s32.totalorder %s9697_s9, %s7950_s11  ;;  %p7954_p9 = scmp.lt.u32.totalorder %s7950_s11, %s9697_s9 }
 0x184   :  { %p7956_p10 = pnand %p7954_p9, %p7951_p8 }
 0x186   :  { %7959 = shalt.err (!%p7956_p10)
}
 0x187   :  { %s7960_s4 = scalar_lea.vmem %s176_s20, 16  ;;  %s7964_s0 = scalar_lea.vmem %s176_s20, 32 }
 0x188   :  { %p7961_p11 = scmp.ne.s32.totalorder %s176_s20, %s7960_s4  ;;  %p7965_p12 = scmp.lt.s32.totalorder %s176_s20, %s176_s20 }
 0x189   :  { %p7966_p13 = scmp.lt.s32.totalorder %s7964_s0, %s7960_s4 }
 0x18b   :  { %p7967_p0 = por %p7966_p13, %p7965_p12 }
 0x18d   :  { %p7968_p1 = pnand %p7967_p0, %p7961_p11 }
 0x18f   :  { %7971 = shalt.err (!%p7968_p1)
}
 0x190   :  { %s9698_s15 = sld [smem:[#allocation73_spill]]  ;;  %s8386_s16 = smov [#allocation9]  }
 0x191   :  { %178 = dma.hbm_to_vmem [thread:$0]  %s9697_s9, 16, %s176_s20, [#allocation5]  }
 0x192   :  { %s199_s30 = sshll.u32 %s8386_s16, 4  ;;  %s8387_s14 = smov [#allocation12]   ;;  %s200_s30 = int_to_ptr.vmem [resolvable:$true] %s199_s30 }
 0x193   :  { %s221_s18 = sshll.u32 %s8387_s14, 4  ;;  %s222_s18 = int_to_ptr.vmem [resolvable:$true] %s221_s18 }
 0x196   :  { %s7972_s19 = scalar_lea.hbm %s9698_s15, 16 }
 0x197   :  { %p7973_p2 = scmp.ne.s32.totalorder %s9698_s15, %s7972_s19  ;;  %p7976_p3 = scmp.lt.u32.totalorder %s7972_s19, %s9698_s15 }
 0x199   :  { %p7978_p4 = pnand %p7976_p3, %p7973_p2 }
 0x19b   :  { %7981 = shalt.err (!%p7978_p4)
}
 0x19c   :  { %s7982_s13 = scalar_lea.vmem %s200_s30, 16  ;;  %s7986_s22 = scalar_lea.vmem %s200_s30, 32 }
 0x19d   :  { %p7983_p5 = scmp.ne.s32.totalorder %s200_s30, %s7982_s13  ;;  %p7987_p6 = scmp.lt.s32.totalorder %s200_s30, %s200_s30 }
 0x19e   :  { %p7988_p7 = scmp.lt.s32.totalorder %s7986_s22, %s7982_s13 }
 0x1a0   :  { %p7989_p8 = por %p7988_p7, %p7987_p6 }
 0x1a2   :  { %p7990_p9 = pnand %p7989_p8, %p7983_p5 }
 0x1a4   :  { %7993 = shalt.err (!%p7990_p9)
}
 0x1a5   :  { %s9699_s23 = sld [smem:[#allocation75_spill]] }
 0x1a6   :  { %202 = dma.hbm_to_vmem [thread:$0]  %s9698_s15, 16, %s200_s30, [#allocation8]  }
 0x1ab   :  { %s7994_s6 = scalar_lea.hbm %s9699_s23, 128 }
 0x1ac   :  { %p7995_p10 = scmp.ne.s32.totalorder %s9699_s23, %s7994_s6  ;;  %p7998_p11 = scmp.lt.u32.totalorder %s7994_s6, %s9699_s23 }
 0x1ae   :  { %p8000_p12 = pnand %p7998_p11, %p7995_p10 }
 0x1b0   :  { %8003 = shalt.err (!%p8000_p12)
}
 0x1b1   :  { %s8004_s8 = scalar_lea.vmem %s222_s18, 128  ;;  %p8009_p0 = scmp.lt.s32.totalorder %s222_s18, %s222_s18 }
 0x1b2   :  { %p8005_p13 = scmp.ne.s32.totalorder %s222_s18, %s8004_s8  ;;  %p8010_p1 = scmp.lt.s32.totalorder %s8004_s8, %s8004_s8 }
 0x1b4   :  { %p8011_p2 = por %p8010_p1, %p8009_p0 }
 0x1b6   :  { %p8012_p3 = pnand %p8011_p2, %p8005_p13 }
 0x1b8   :  { %8015 = shalt.err (!%p8012_p3)
}
 0x1b9   :  { %s9700_s26 = sld [smem:[#allocation76_spill]]  ;;  %s8388_s21 = smov [#allocation15]  }
 0x1ba   :  { %224 = dma.hbm_to_vmem [thread:$0]  %s9699_s23, 128, %s222_s18, [#allocation11]  }
 0x1bb   :  { %s241_s28 = sshll.u32 %s8388_s21, 4  ;;  %s8389_s1 = smov [#allocation18]   ;;  %s242_s28 = int_to_ptr.vmem [resolvable:$true] %s241_s28 }
 0x1bc   :  { %s261_s2 = sshll.u32 %s8389_s1, 4  ;;  %s262_s2 = int_to_ptr.vmem [resolvable:$true] %s261_s2 }
 0x1bf   :  { %s8016_s7 = scalar_lea.hbm %s9700_s26, 16 }
 0x1c0   :  { %p8017_p4 = scmp.ne.s32.totalorder %s9700_s26, %s8016_s7  ;;  %p8020_p5 = scmp.lt.u32.totalorder %s8016_s7, %s9700_s26 }
 0x1c2   :  { %p8022_p6 = pnand %p8020_p5, %p8017_p4 }
 0x1c4   :  { %8025 = shalt.err (!%p8022_p6)
}
 0x1c5   :  { %s8026_s27 = scalar_lea.vmem %s242_s28, 16  ;;  %s8030_s5 = scalar_lea.vmem %s242_s28, 32 }
 0x1c6   :  { %p8027_p7 = scmp.ne.s32.totalorder %s242_s28, %s8026_s27  ;;  %p8031_p8 = scmp.lt.s32.totalorder %s242_s28, %s242_s28 }
 0x1c7   :  { %p8032_p9 = scmp.lt.s32.totalorder %s8030_s5, %s8026_s27 }
 0x1c9   :  { %p8033_p10 = por %p8032_p9, %p8031_p8 }
 0x1cb   :  { %p8034_p11 = pnand %p8033_p10, %p8027_p7 }
 0x1cd   :  { %8037 = shalt.err (!%p8034_p11)
}
 0x1ce   :  { %s9701_s20 = sld [smem:[#allocation77_spill]] }
 0x1cf   :  { %244 = dma.hbm_to_vmem [thread:$0]  %s9700_s26, 16, %s242_s28, [#allocation14]  }
 0x1d4   :  { %s8038_s29 = scalar_lea.hbm %s9701_s20, 16 }
 0x1d5   :  { %p8039_p12 = scmp.ne.s32.totalorder %s9701_s20, %s8038_s29  ;;  %p8042_p13 = scmp.lt.u32.totalorder %s8038_s29, %s9701_s20 }
 0x1d7   :  { %p8044_p0 = pnand %p8042_p13, %p8039_p12 }
 0x1d9   :  { %8047 = shalt.err (!%p8044_p0)
}
 0x1da   :  { %s8048_s10 = scalar_lea.vmem %s262_s2, 16  ;;  %s8052_s17 = scalar_lea.vmem %s262_s2, 32 }
 0x1db   :  { %p8049_p1 = scmp.ne.s32.totalorder %s262_s2, %s8048_s10  ;;  %p8053_p2 = scmp.lt.s32.totalorder %s262_s2, %s262_s2 }
 0x1dc   :  { %p8054_p3 = scmp.lt.s32.totalorder %s8052_s17, %s8048_s10 }
 0x1de   :  { %p8055_p4 = por %p8054_p3, %p8053_p2 }
 0x1e0   :  { %p8056_p5 = pnand %p8055_p4, %p8049_p1 }
 0x1e2   :  { %8059 = shalt.err (!%p8056_p5)
}
 0x1e3   :  { %s9702_s9 = sld [smem:[#allocation81_spill]]  ;;  %s8390_s11 = smov [#allocation21]  }
 0x1e4   :  { %264 = dma.hbm_to_vmem [thread:$0]  %s9701_s20, 16, %s262_s2, [#allocation17]  }
 0x1e5   :  { %s287_s4 = sshll.u32 %s8390_s11, 4  ;;  %s8391_s0 = smov [#allocation24]   ;;  %s288_s4 = int_to_ptr.vmem [resolvable:$true] %s287_s4 }
 0x1e6   :  { %s309_s15 = sshll.u32 %s8391_s0, 4  ;;  %s310_s15 = int_to_ptr.vmem [resolvable:$true] %s309_s15 }
 0x1e9   :  { %s8060_s16 = scalar_lea.hbm %s9702_s9, 16 }
 0x1ea   :  { %p8061_p6 = scmp.ne.s32.totalorder %s9702_s9, %s8060_s16  ;;  %p8064_p7 = scmp.lt.u32.totalorder %s8060_s16, %s9702_s9 }
 0x1ec   :  { %p8066_p8 = pnand %p8064_p7, %p8061_p6 }
 0x1ee   :  { %8069 = shalt.err (!%p8066_p8)
}
 0x1ef   :  { %s8070_s30 = scalar_lea.vmem %s288_s4, 16  ;;  %s8074_s14 = scalar_lea.vmem %s288_s4, 32 }
 0x1f0   :  { %p8071_p9 = scmp.ne.s32.totalorder %s288_s4, %s8070_s30  ;;  %p8075_p10 = scmp.lt.s32.totalorder %s288_s4, %s288_s4 }
 0x1f1   :  { %p8076_p11 = scmp.lt.s32.totalorder %s8074_s14, %s8070_s30 }
 0x1f3   :  { %p8077_p12 = por %p8076_p11, %p8075_p10 }
 0x1f5   :  { %p8078_p13 = pnand %p8077_p12, %p8071_p9 }
 0x1f7   :  { %8081 = shalt.err (!%p8078_p13)
}
 0x1f8   :  { %s9703_s18 = sld [smem:[#allocation83_spill]] }
 0x1f9   :  { %290 = dma.hbm_to_vmem [thread:$0]  %s9702_s9, 16, %s288_s4, [#allocation20]  }
 0x1fe   :  { %s8082_s19 = scalar_lea.hbm %s9703_s18, 16 }
 0x1ff   :  { %p8083_p0 = scmp.ne.s32.totalorder %s9703_s18, %s8082_s19  ;;  %p8086_p1 = scmp.lt.u32.totalorder %s8082_s19, %s9703_s18 }
 0x201   :  { %p8088_p2 = pnand %p8086_p1, %p8083_p0 }
 0x203   :  { %8091 = shalt.err (!%p8088_p2)
}
 0x204   :  { %s8092_s13 = scalar_lea.vmem %s310_s15, 16  ;;  %s8096_s22 = scalar_lea.vmem %s310_s15, 32 }
 0x205   :  { %p8093_p3 = scmp.ne.s32.totalorder %s310_s15, %s8092_s13  ;;  %p8097_p4 = scmp.lt.s32.totalorder %s310_s15, %s310_s15 }
 0x206   :  { %p8098_p5 = scmp.lt.s32.totalorder %s8096_s22, %s8092_s13 }
 0x208   :  { %p8099_p6 = por %p8098_p5, %p8097_p4 }
 0x20a   :  { %p8100_p7 = pnand %p8099_p6, %p8093_p3 }
 0x20c   :  { %8103 = shalt.err (!%p8100_p7)
}
 0x20d   :  { %s9704_s23 = sld [smem:[#allocation85_spill]]  ;;  %s8392_s6 = smov [#allocation27]  }
 0x20e   :  { %312 = dma.hbm_to_vmem [thread:$0]  %s9703_s18, 16, %s310_s15, [#allocation23]  }
 0x20f   :  { %s331_s8 = sshll.u32 %s8392_s6, 4  ;;  %s8393_s26 = smov [#allocation30]   ;;  %s332_s8 = int_to_ptr.vmem [resolvable:$true] %s331_s8 }
 0x210   :  { %s351_s21 = sshll.u32 %s8393_s26, 4  ;;  %s352_s21 = int_to_ptr.vmem [resolvable:$true] %s351_s21 }
 0x213   :  { %s8104_s28 = scalar_lea.hbm %s9704_s23, 16 }
 0x214   :  { %p8105_p8 = scmp.ne.s32.totalorder %s9704_s23, %s8104_s28  ;;  %p8108_p9 = scmp.lt.u32.totalorder %s8104_s28, %s9704_s23 }
 0x216   :  { %p8110_p10 = pnand %p8108_p9, %p8105_p8 }
 0x218   :  { %8113 = shalt.err (!%p8110_p10)
}
 0x219   :  { %s8114_s1 = scalar_lea.vmem %s332_s8, 16  ;;  %s8118_s2 = scalar_lea.vmem %s332_s8, 32 }
 0x21a   :  { %p8115_p11 = scmp.ne.s32.totalorder %s332_s8, %s8114_s1  ;;  %p8119_p12 = scmp.lt.s32.totalorder %s332_s8, %s332_s8 }
 0x21b   :  { %p8120_p13 = scmp.lt.s32.totalorder %s8118_s2, %s8114_s1 }
 0x21d   :  { %p8121_p0 = por %p8120_p13, %p8119_p12 }
 0x21f   :  { %p8122_p1 = pnand %p8121_p0, %p8115_p11 }
 0x221   :  { %8125 = shalt.err (!%p8122_p1)
}
 0x222   :  { %s9705_s7 = sld [smem:[#allocation86_spill]] }
 0x223   :  { %334 = dma.hbm_to_vmem [thread:$0]  %s9704_s23, 16, %s332_s8, [#allocation26]  }
 0x228   :  { %s8126_s27 = scalar_lea.hbm %s9705_s7, 16 }
 0x229   :  { %p8127_p2 = scmp.ne.s32.totalorder %s9705_s7, %s8126_s27  ;;  %p8130_p3 = scmp.lt.u32.totalorder %s8126_s27, %s9705_s7 }
 0x22b   :  { %p8132_p4 = pnand %p8130_p3, %p8127_p2 }
 0x22d   :  { %8135 = shalt.err (!%p8132_p4)
}
 0x22e   :  { %s8136_s5 = scalar_lea.vmem %s352_s21, 16  ;;  %s8140_s20 = scalar_lea.vmem %s352_s21, 32 }
 0x22f   :  { %p8137_p5 = scmp.ne.s32.totalorder %s352_s21, %s8136_s5  ;;  %p8141_p6 = scmp.lt.s32.totalorder %s352_s21, %s352_s21 }
 0x230   :  { %p8142_p7 = scmp.lt.s32.totalorder %s8140_s20, %s8136_s5 }
 0x232   :  { %p8143_p8 = por %p8142_p7, %p8141_p6 }
 0x234   :  { %p8144_p9 = pnand %p8143_p8, %p8137_p5 }
 0x236   :  { %8147 = shalt.err (!%p8144_p9)
}
 0x237   :  { %s9706_s29 = sld [smem:[#allocation90_spill]]  ;;  %s8394_s10 = smov [#allocation33]  }
 0x238   :  { %354 = dma.hbm_to_vmem [thread:$0]  %s9705_s7, 16, %s352_s21, [#allocation29]  }
 0x239   :  { %s377_s17 = sshll.u32 %s8394_s10, 4  ;;  %s8395_s9 = smov [#allocation36]   ;;  %s378_s17 = int_to_ptr.vmem [resolvable:$true] %s377_s17 }
 0x23a   :  { %s397_s11 = sshll.u32 %s8395_s9, 4  ;;  %s398_s11 = int_to_ptr.vmem [resolvable:$true] %s397_s11 }
 0x23d   :  { %s8148_s4 = scalar_lea.hbm %s9706_s29, 16 }
 0x23e   :  { %p8149_p10 = scmp.ne.s32.totalorder %s9706_s29, %s8148_s4  ;;  %p8152_p11 = scmp.lt.u32.totalorder %s8148_s4, %s9706_s29 }
 0x240   :  { %p8154_p12 = pnand %p8152_p11, %p8149_p10 }
 0x242   :  { %8157 = shalt.err (!%p8154_p12)
}
 0x243   :  { %s8158_s0 = scalar_lea.vmem %s378_s17, 16  ;;  %s8162_s15 = scalar_lea.vmem %s378_s17, 32 }
 0x244   :  { %p8159_p13 = scmp.ne.s32.totalorder %s378_s17, %s8158_s0  ;;  %p8163_p0 = scmp.lt.s32.totalorder %s378_s17, %s378_s17 }
 0x245   :  { %p8164_p1 = scmp.lt.s32.totalorder %s8162_s15, %s8158_s0 }
 0x247   :  { %p8165_p2 = por %p8164_p1, %p8163_p0 }
 0x249   :  { %p8166_p3 = pnand %p8165_p2, %p8159_p13 }
 0x24b   :  { %8169 = shalt.err (!%p8166_p3)
}
 0x24c   :  { %s9707_s16 = sld [smem:[#allocation91_spill]] }
 0x24d   :  { %380 = dma.hbm_to_vmem [thread:$0]  %s9706_s29, 16, %s378_s17, [#allocation32]  }
 0x252   :  { %s8170_s30 = scalar_lea.hbm %s9707_s16, 16 }
 0x253   :  { %p8171_p4 = scmp.ne.s32.totalorder %s9707_s16, %s8170_s30  ;;  %p8174_p5 = scmp.lt.u32.totalorder %s8170_s30, %s9707_s16 }
 0x255   :  { %p8176_p6 = pnand %p8174_p5, %p8171_p4 }
 0x257   :  { %8179 = shalt.err (!%p8176_p6)
}
 0x258   :  { %s8180_s14 = scalar_lea.vmem %s398_s11, 16  ;;  %s8184_s18 = scalar_lea.vmem %s398_s11, 32 }
 0x259   :  { %p8181_p7 = scmp.ne.s32.totalorder %s398_s11, %s8180_s14  ;;  %p8185_p8 = scmp.lt.s32.totalorder %s398_s11, %s398_s11 }
 0x25a   :  { %p8186_p9 = scmp.lt.s32.totalorder %s8184_s18, %s8180_s14 }
 0x25c   :  { %p8187_p10 = por %p8186_p9, %p8185_p8 }
 0x25e   :  { %p8188_p11 = pnand %p8187_p10, %p8181_p7 }
 0x260   :  { %8191 = shalt.err (!%p8188_p11)
}
 0x261   :  { %s9708_s19 = sld [smem:[#allocation92_spill]]  ;;  %s8396_s13 = smov [#allocation39]  }
 0x262   :  { %400 = dma.hbm_to_vmem [thread:$0]  %s9707_s16, 16, %s398_s11, [#allocation35]  }
 0x263   :  { %s417_s22 = sshll.u32 %s8396_s13, 4  ;;  %s8397_s23 = smov [#allocation42]   ;;  %s418_s22 = int_to_ptr.vmem [resolvable:$true] %s417_s22 }
 0x264   :  { %s442_s6 = sshll.u32 %s8397_s23, 4  ;;  %s8821_s6 = int_to_ptr.vmem [resolvable:$true] %s442_s6 }
 0x267   :  { %s8192_s8 = scalar_lea.hbm %s9708_s19, 16 }
 0x268   :  { %p8193_p12 = scmp.ne.s32.totalorder %s9708_s19, %s8192_s8  ;;  %p8196_p13 = scmp.lt.u32.totalorder %s8192_s8, %s9708_s19 }
 0x26a   :  { %p8198_p0 = pnand %p8196_p13, %p8193_p12 }
 0x26c   :  { %8201 = shalt.err (!%p8198_p0)
}
 0x26d   :  { %s8202_s26 = scalar_lea.vmem %s418_s22, 16  ;;  %s8206_s21 = scalar_lea.vmem %s418_s22, 32 }
 0x26e   :  { %p8203_p1 = scmp.ne.s32.totalorder %s418_s22, %s8202_s26  ;;  %p8207_p2 = scmp.lt.s32.totalorder %s418_s22, %s418_s22 }
 0x26f   :  { %p8208_p3 = scmp.lt.s32.totalorder %s8206_s21, %s8202_s26 }
 0x271   :  { %p8209_p4 = por %p8208_p3, %p8207_p2 }
 0x273   :  { %p8210_p5 = pnand %p8209_p4, %p8203_p1 }
 0x275   :  { %8213 = shalt.err (!%p8210_p5)
}
 0x276   :  { %s9709_s28 = sld [smem:[#allocation96_spill]] }
 0x277   :  { %420 = dma.hbm_to_vmem [thread:$0]  %s9708_s19, 16, %s418_s22, [#allocation38]  }
 0x27c   :  { %s8214_s1 = scalar_lea.hbm %s9709_s28, 512 }
 0x27d   :  { %p8215_p6 = scmp.ne.s32.totalorder %s9709_s28, %s8214_s1  ;;  %p8218_p7 = scmp.lt.u32.totalorder %s8214_s1, %s9709_s28 }
 0x27f   :  { %p8220_p8 = pnand %p8218_p7, %p8215_p6 }
 0x281   :  { %8223 = shalt.err (!%p8220_p8)
}
 0x282   :  { %s8224_s2 = scalar_lea.vmem %s8821_s6, 512  ;;  %p8229_p10 = scmp.lt.s32.totalorder %s8821_s6, %s8821_s6 }
 0x283   :  { %p8225_p9 = scmp.ne.s32.totalorder %s8821_s6, %s8224_s2  ;;  %p8230_p11 = scmp.lt.s32.totalorder %s8224_s2, %s8224_s2 }
 0x285   :  { %p8231_p12 = por %p8230_p11, %p8229_p10 }
 0x287   :  { %p8232_p13 = pnand %p8231_p12, %p8225_p9 }
 0x289   :  { %8235 = shalt.err (!%p8232_p13)
}
 0x28a   :  { %s8398_s7 = smov 128   ;;  %s9710_s27 = sld [smem:[#allocation97_spill]] }
 0x28b   :  { %s8399_s5 = smov 8   ;;  %s8400_s20 = smov [#allocation45]  }
 0x28c   :  { %448 = dma.hbm_to_vmem [thread:$0]  %s9709_s28, 512, %s8821_s6, [#allocation41], %s8398_s7, %s8398_s7, %s8399_s5  }
 0x28d   :  { %s465_s29 = sshll.u32 %s8400_s20, 4  ;;  %s8401_s10 = smov [#allocation46]   ;;  %s466_s29 = int_to_ptr.vmem [resolvable:$true] %s465_s29 }
 0x28e   :  { %s488_s17 = sshll.u32 %s8401_s10, 4  ;;  %s8839_s17 = int_to_ptr.vmem [resolvable:$true] %s488_s17 }
 0x290   :  { %s8236_s9 = scalar_lea.hbm %s9710_s27, 16 }
 0x291   :  { %p8237_p0 = scmp.ne.s32.totalorder %s9710_s27, %s8236_s9  ;;  %p8240_p1 = scmp.lt.u32.totalorder %s8236_s9, %s9710_s27 }
 0x293   :  { %p8242_p2 = pnand %p8240_p1, %p8237_p0 }
 0x295   :  { %8245 = shalt.err (!%p8242_p2)
}
 0x296   :  { %s8246_s11 = scalar_lea.vmem %s466_s29, 16  ;;  %s8250_s4 = scalar_lea.vmem %s466_s29, 32 }
 0x297   :  { %p8247_p3 = scmp.ne.s32.totalorder %s466_s29, %s8246_s11  ;;  %p8251_p4 = scmp.lt.s32.totalorder %s466_s29, %s466_s29 }
 0x298   :  { %p8252_p5 = scmp.lt.s32.totalorder %s8250_s4, %s8246_s11 }
 0x29a   :  { %p8253_p6 = por %p8252_p5, %p8251_p4 }
 0x29c   :  { %p8254_p7 = pnand %p8253_p6, %p8247_p3 }
 0x29e   :  { %8257 = shalt.err (!%p8254_p7)
}
 0x29f   :  { %468 = dma.hbm_to_vmem [thread:$0]  %s9710_s27, 16, %s466_s29, [#allocation44]  }
 0x2a0   :  { %s8258_s0 = scalar_lea.hbm %s8700_s24, 512 }
 0x2a1   :  { %p8259_p8 = scmp.ne.s32.totalorder %s8700_s24, %s8258_s0  ;;  %p8262_p9 = scmp.lt.u32.totalorder %s8258_s0, %s8700_s24 }
 0x2a3   :  { %p8264_p10 = pnand %p8262_p9, %p8259_p8 }
 0x2a5   :  { %8267 = shalt.err (!%p8264_p10)
}
 0x2a6   :  { %s8268_s15 = scalar_lea.vmem %s8839_s17, 512  ;;  %p8273_p12 = scmp.lt.s32.totalorder %s8839_s17, %s8839_s17 }
 0x2a7   :  { %p8269_p11 = scmp.ne.s32.totalorder %s8839_s17, %s8268_s15  ;;  %p8274_p13 = scmp.lt.s32.totalorder %s8268_s15, %s8268_s15 }
 0x2a9   :  { %p8275_p0 = por %p8274_p13, %p8273_p12 }
 0x2ab   :  { %p8276_p1 = pnand %p8275_p0, %p8269_p11 }
 0x2ad   :  { %8279 = shalt.err (!%p8276_p1)
}
 0x2ae   :  { %494 = dma.hbm_to_vmem [thread:$0]  %s8700_s24, 512, %s8839_s17, [#allocation47], %s8398_s7, %s8398_s7, %s8399_s5  }
 0x2af   :  { %8280 = dma.done.wait [#allocation3], 16  }
 0x2b0   :  { %8281 = vsyncadd [#allocation3], 4294967280 }
 0x2b1   :  { %8282 = dma.done.wait [#allocation5], 32  }
 0x2b2   :  { %8283 = vsyncadd [#allocation5], 4294967264 }
 0x2b3   :  { %8284 = dma.done.wait [#allocation8], 32  }
 0x2b4   :  { %8285 = vsyncadd [#allocation8], 4294967264 }
 0x2b5   :  { %8286 = dma.done.wait [#allocation11], 144  }
 0x2b6   :  { %8287 = vsyncadd [#allocation11], 4294967152 }
 0x2b7   :  { %8288 = dma.done.wait [#allocation14], 32  }
 0x2b8   :  { %8289 = vsyncadd [#allocation14], 4294967264 }
 0x2b9   :  { %8290 = dma.done.wait [#allocation17], 32  }
 0x2ba   :  { %8291 = vsyncadd [#allocation17], 4294967264 }
 0x2bb   :  { %8292 = dma.done.wait [#allocation20], 32  }
 0x2bc   :  { %8293 = vsyncadd [#allocation20], 4294967264 }
 0x2bd   :  { %8294 = dma.done.wait [#allocation23], 32  }
 0x2be   :  { %8295 = vsyncadd [#allocation23], 4294967264 }
 0x2bf   :  { %8296 = dma.done.wait [#allocation26], 32  }
 0x2c0   :  { %8297 = vsyncadd [#allocation26], 4294967264 }
 0x2c1   :  { %8298 = dma.done.wait [#allocation29], 32  }
 0x2c2   :  { %8299 = vsyncadd [#allocation29], 4294967264 }
 0x2c3   :  { %8300 = dma.done.wait [#allocation32], 32  }
 0x2c4   :  { %8301 = vsyncadd [#allocation32], 4294967264 }
 0x2c5   :  { %8302 = dma.done.wait [#allocation35], 32  }
 0x2c6   :  { %8303 = vsyncadd [#allocation35], 4294967264 }
 0x2c7   :  { %8304 = dma.done.wait [#allocation38], 32  }
 0x2c8   :  { %8305 = vsyncadd [#allocation38], 4294967264 }
 0x2c9   :  { %8306 = dma.done.wait [#allocation41], 528  }
 0x2ca   :  { %8307 = vsyncadd [#allocation41], 4294966768 }
 0x2cb   :  { %8308 = dma.done.wait [#allocation44], 32  }
 0x2cc   :  { %8309 = vsyncadd [#allocation44], 4294967264 }
 0x2cd   :  { %8310 = dma.done.wait [#allocation47], 512  }
 0x2ce   :  { %8311 = vsyncadd [#allocation47], 4294966784  ;;  %vm707_vm0 = vcmask 261120   ;;  %v614_v0 = vld [vmem:[#allocation12] sm:$0xff]  ;;  %v702_v7 = vld [vmem:[#allocation46] sm:$0xff]  ;;  %v8402_v10 = vmov 0.0|0.0  }
 0x2cf   :  { %v708_v1 = vsel %vm707_vm0, %v614_v0, 0.0  ;;  %v703_v8 = vld [vmem:[#allocation46 + $0x8] sm:$0xff]  ;;  %7283 = vmatprep.subr.bf16.mxu0 %v8402_v10  ;;  %v704_v11 = vld [vmem:[#allocation46 + $0x10] sm:$0xff]  ;;  %v705_v12 = vld [vmem:[#allocation46 + $0x18] sm:$0xff]  ;;  %vm8403_vm1 = vmmov 0   ;;  %v8404_v14 = vmov 0.0  }
 0x2d0   :  { %709 = vadd.xlane.f32.xlu0 %v708_v1  ;;  %v7284_v9 = vpack.c.bf16 %v703_v8, %v702_v7  ;;  %v7287_v13 = vpack.c.bf16 %v705_v12, %v704_v11  ;;  %s9711_s24 = sld [smem:[#allocation66_spill]]  ;;  %6881 = vmatprep.mubr.msk.f32.mxu0 %vm8403_vm1, %v8404_v14  ;;  %s9712_s16 = sld [smem:[#allocation101_spill]]  ;;  %v6573_v19 = vld [vmem:[#allocation4] ss:$0 sm:$0xff]  ;;  %v6574_v21 = vld [vmem:[#allocation2] ss:$0 sm:$0xff] }
 0x2d1   :  { %6884 = vmatprep.subr.mxu1 %v8404_v14  ;;  %6886 = vmatprep.mubr.msk.f32.mxu1 %vm8403_vm1, %v8404_v14  ;;  %s8405_s30 = smov 120   ;;  %s8406_s14 = smov 96   ;;  %vm825_vm2 = vcmask 64512   ;;  %vm2050_vm3 = vcmask 48128   ;;  %vm2067_vm4 = vcmask 1045504   ;;  %vm3064_vm5 = vcmask 523264  }
 0x2d2   :  { %7285 = vmatpush3.bf16.msra.mxu0 %v7284_v9  ;;  %s8407_s18 = smov 88   ;;  %s8408_s19 = smov 56   ;;  %vm3247_vm6 = vcmask 256000   ;;  %vm3245_vm7 = vcmask 23552   ;;  %vm3420_vm8 = vcmask 18432   ;;  %vm3437_vm9 = vcmask 1042432  }
 0x2d3   :  { %7286 = vmatprep.subr.bf16.mxu0 %v8402_v10  ;;  %s9713_s13 = sld [smem:[#allocation104_spill]]  ;;  %s8409_s22 = smov 64   ;;  %vm4575_vm10 = vcmask 34816   ;;  %vm4593_vm11 = vcmask 1044480   ;;  %vm4589_vm12 = vcmask 39936   ;;  %vm6457_vm13 = vcmask 1041409  }
 0x2d4   :  { %s8410_s23 = smov 80   ;;  %s8411_s6 = smov 112   ;;  %vm6459_vm14 = vcmask 1042434  }
 0x2d5   :  { %s8412_s8 = smov 48   ;;  %s8413_s26 = smov 104  }
 0x2d6   :  { %7288 = vmatpush3.bf16.msra.mxu0 %v7287_v13  ;;  %v6575_v23 = vld [vmem:[%s9711_s24] ss:$0 sm:$0xff]  ;;  %s8414_s21 = smov 72   ;;  %s8415_s28 = smov 40  }
 0x2d7   :  { %6894 = vmatprep.subr.mxu0 %v8404_v14  ;;  %v6576_v26 = vld [vmem:[%s9712_s16] ss:$0 sm:$0xff]  ;;  %s9714_s1 = sld [smem:[#allocation100_spill]]  ;;  %s9715_s2 = sld [smem:[#allocation93_spill]] }
 0x2d8   :  { %s9716_s7 = sld [smem:[#allocation95_spill]]  ;;  %s9717_s27 = sld [smem:[#allocation64_spill]] }
 0x2d9   :  { %v699_v51 = vld [vmem:[%s9713_s13 + $0x8] sm:$0xff]  ;;  %v698_v60 = vld [vmem:[%s9713_s13] sm:$0xff]  ;;  %s9718_s5 = sld [smem:[#allocation103_spill]]  ;;  %s9719_s20 = sld [smem:[#allocation102_spill]] }
 0x2da   :  { %s9720_s29 = sld [smem:[#allocation94_spill]]  ;;  %s9721_s10 = sld [smem:[#allocation99_spill]] }
 0x2db   :  { %s9722_s17 = sld [smem:[#allocation89_spill]]  ;;  %s9723_s9 = sld [smem:[#allocation68_spill]] }
 0x2dc   :  { %s9724_s11 = sld [smem:[#allocation98_spill]]  ;;  %s9725_s4 = sld [smem:[#allocation88_spill]] }
 0x2dd   :  { %s9726_s0 = sld [smem:[#allocation67_spill]]  ;;  %s9728_s15 = sld [smem:[#allocation78_spill]] }
 0x2de   :  { %s9729_s24 = sld [smem:[#allocation80_spill]]  ;;  %s9731_s16 = sld [smem:[#allocation82_spill]] }
 0x35d   :  { %v710_v2 = vpop.xlane.xlu0 %709 }
 0x35e   :  { %v712_v3 = vmul.f32 0.03125, %v710_v2 }
 0x360   :  { %v713_v4 = vsub.f32 %v614_v0, %v712_v3 }
 0x362   :  { %v714_v5 = vmul.f32 %v713_v4, %v713_v4 }
 0x364   :  { %v715_v6 = vsel %vm707_vm0, %v714_v5, 0.0 }
 0x365   :  { %716 = vadd.xlane.f32.xlu0 %v715_v6 }
 0x3f2   :  { %v717_v15 = vpop.xlane.xlu0 %716 }
 0x3f3   :  { %v718_v16 = vmul.f32 0.03125, %v717_v15 }
 0x3f5   :  { %v719_v17 = vadd.f32 1e-12, %v718_v16 }
 0x3f7   :  { %7486 = vrsqrt.f32 %v719_v17 }
 0x401   :  { %v7487_v18 = vpop.eup %7486 }
 0x402   :  { %v721_v20 = vmul.f32 %v7487_v18, %v713_v4 }
 0x404   :  { %v728_v22 = vmul.f32 %v6573_v19, %v721_v20 }
 0x406   :  { %v735_v24 = vadd.f32 %v6574_v21, %v728_v22 }
 0x408   :  { %v8868_v25 = vadd.f32 %v6575_v23, %v735_v24 }
 0x40a   :  { %6882 = vmatmul.mubr.msk.f32.vlgmr.msra.gmra.mrb[0].mxu0 %vm707_vm0, %v8868_v25 }
 0x40b   :  { %6896 = vmatprep.mubr.msk.f32.mxu0 %vm8403_vm1, %v8404_v14 }
 0x4dd   :  { %v818_v27 = vpop.f32.mrb[0].mxu0 }
 0x4de   :  { %v8875_v28 = vadd.f32 %v6576_v26, %v818_v27  ;;  %v6883_v29 = vpop.f32.mrb[1].mxu0  ;;  %v700_v26 = vld [vmem:[%s9713_s13 + $0x10] sm:$0xff] }
 0x4e0   :  { %988 = vrot.lane.b32.xlu0 %v8875_v28, %s8405_s30  ;;  %823 = vrot.lane.b32.xlu1 %v8875_v28, %s8406_s14 }
 0x4e4   :  { %990 = vrot.lane.b32.xlu1 %v8875_v28, %s8407_s18 }
 0x552   :  { %v824_v30 = vpop.permute.xlu1 %823  ;;  %v989_v32 = vpop.permute.xlu0 %988 }
 0x553   :  { %6885 = vmatpush3.xpose.msk.msra.mxu1 %vm825_vm2, %v824_v30 }
 0x554   :  { %6889 = vmatprep.subr.mxu1 %v8404_v14 }
 0x556   :  { %6887 = vmatmul.mubr.msk.f32.vlgmr.msra.gmra.mrb[0].mxu1 %vm825_vm2, %v8875_v28  ;;  %v991_v31 = vpop.permute.xlu1 %990 }
 0x557   :  { %6895 = vmatpush3.xpose.msk.msra.mxu0 %vm825_vm2, %v991_v31  ;;  %6891 = vmatprep.mubr.msk.f32.mxu1 %vm8403_vm1, %v8404_v14 }
 0x558   :  { %6904 = vmatprep.subr.mxu0 %v8404_v14 }
 0x55a   :  { %6897 = vmatmul.mubr.msk.f32.vlgmr.msra.gmra.mrb[2].mxu0 %vm825_vm2, %v989_v32 }
 0x55b   :  { %6906 = vmatprep.mubr.msk.f32.mxu0 %vm8403_vm1, %v8404_v14  ;;  %6905 = vmatpush3.msra.mxu0 %v699_v51 }
 0x55c   :  { %6914 = vmatprep.subr.mxu0 %v8404_v14 }
 0x629   :  { %v896_v33 = vpop.f32.mrb[0].mxu1 }
 0x62a   :  { %v900_v34 = vmul.f32 0.35355338, %v896_v33  ;;  %v6888_v35 = vpop.f32.mrb[1].mxu1 }
 0x62c   :  { %v901_v36 = vsel %vm825_vm2, %v900_v34, -inf }
 0x62d   :  { %902 = vmax.xlane.f32.xlu1 %v901_v36  ;;  %v1062_v37 = vpop.f32.mrb[2].mxu0 }
 0x62e   :  { %v1066_v38 = vmul.f32 0.35355338, %v1062_v37  ;;  %v6898_v39 = vpop.f32.mrb[3].mxu0 }
 0x62f   :  { %v701_v39 = vld [vmem:[%s9713_s13 + $0x18] sm:$0xff]  ;;  %s9736_s13 = sld [smem:[#allocation65_spill]] }
 0x630   :  { %v1067_v40 = vsel %vm825_vm2, %v1066_v38, -inf }
 0x631   :  { %1068 = vmax.xlane.f32.xlu0 %v1067_v40 }
 0x647   :  { %1078 = vrot.lane.b32.xlu0 %v8875_v28, %s8408_s19 }
 0x6ba   :  { %v903_v41 = vpop.xlane.xlu1 %902 }
 0x6bb   :  { %v904_v42 = vsub.f32 %v900_v34, %v903_v41 }
 0x6bd   :  { %v905_v43 = vmul.f32 1.442695, %v904_v42 }
 0x6be   :  { %v1069_v44 = vpop.xlane.xlu0 %1068 }
 0x6bf   :  { %7488 = vpow2.f32 %v905_v43  ;;  %v1070_v45 = vsub.f32 %v1066_v38, %v1069_v44 }
 0x6c1   :  { %v1071_v46 = vmul.f32 1.442695, %v1070_v45 }
 0x6c2   :  { %v1079_v57 = vpop.permute.xlu0 %1078 }
 0x6c3   :  { %7490 = vpow2.f32 %v1071_v46 }
 0x6c9   :  { %v7489_v47 = vpop.eup %7488 }
 0x6ca   :  { %v907_v48 = vsel %vm825_vm2, %v7489_v47, 0.0 }
 0x6cb   :  { %908 = vadd.xlane.f32.xlu1 %v907_v48  ;;  %v6594_v48 = vld [vmem:[%s9714_s1] ss:$0 sm:$0xff] }
 0x6cd   :  { %v7491_v49 = vpop.eup %7490 }
 0x6ce   :  { %v1073_v50 = vsel %vm825_vm2, %v7491_v49, 0.0 }
 0x6cf   :  { %1074 = vadd.xlane.f32.xlu1 %v1073_v50 }
 0x6e0   :  { %912 = vrot.lane.b32.xlu1 %v8875_v28, %s8409_s22 }
 0x6e4   :  { %1302 = vrot.lane.b32.xlu1 %v8875_v28, %s8410_s23 }
 0x6e8   :  { %1300 = vrot.lane.b32.xlu1 %v8875_v28, %s8411_s6 }
 0x758   :  { %v909_v52 = vpop.xlane.xlu1 %908 }
 0x759   :  { %7492 = vrcp.f32 %v909_v52 }
 0x75c   :  { %v1075_v53 = vpop.xlane.xlu1 %1074 }
 0x75d   :  { %7494 = vrcp.f32 %v1075_v53 }
 0x760   :  { %v913_v54 = vpop.permute.xlu1 %912 }
 0x761   :  { %6890 = vmatpush3.msra.mxu1 %v913_v54 }
 0x762   :  { %6899 = vmatprep.subr.mxu1 %v8404_v14 }
 0x763   :  { %v7493_v55 = vpop.eup %7492 }
 0x764   :  { %v911_v56 = vmul.f32 %v7493_v55, %v7489_v47  ;;  %v1303_v63 = vpop.permute.xlu1 %1302 }
 0x766   :  { %6892 = vmatmul.mubr.msk.f32.vlgmr.msra.gmra.mrb[2].mxu1 %vm825_vm2, %v911_v56 }
 0x767   :  { %v7495_v58 = vpop.eup %7494  ;;  %6900 = vmatpush3.msra.mxu1 %v1079_v57  ;;  %6901 = vmatprep.mubr.msk.f32.mxu1 %vm8403_vm1, %v8404_v14 }
 0x768   :  { %v1077_v59 = vmul.f32 %v7495_v58, %v7491_v49  ;;  %6909 = vmatprep.subr.mxu1 %v8404_v14  ;;  %v1301_v2 = vpop.permute.xlu1 %1300 }
 0x76a   :  { %6902 = vmatmul.mubr.msk.f32.vlgmr.msra.gmra.mrb[4].mxu1 %vm825_vm2, %v1077_v59 }
 0x76b   :  { %6911 = vmatprep.mubr.msk.f32.mxu1 %vm8403_vm1, %v8404_v14  ;;  %6910 = vmatpush3.msra.mxu1 %v698_v60  ;;  %v666_v60 = vld [vmem:[%s9715_s2] sm:$0xff] }
 0x76c   :  { %6919 = vmatprep.subr.mxu1 %v8404_v14 }
 0x839   :  { %v984_v61 = vpop.f32.mrb[2].mxu1 }
 0x83a   :  { %v6893_v62 = vpop.f32.mrb[3].mxu1  ;;  %6912 = vmatmul.mubr.msk.f32.vlgmr.msra.gmra.mrb[6].mxu1 %vm825_vm2, %v984_v61  ;;  %v667_v61 = vld [vmem:[%s9715_s2 + $0x8] sm:$0xff] }
 0x83b   :  { %6921 = vmatprep.mubr.msk.f32.mxu1 %vm8403_vm1, %v8404_v14  ;;  %v7296_v62 = vpack.c.bf16 %v667_v61, %v666_v60 }
 0x83d   :  { %v1150_v0 = vpop.f32.mrb[4].mxu1 }
 0x83e   :  { %v6903_v1 = vpop.f32.mrb[5].mxu1  ;;  %6907 = vmatmul.mubr.msk.f32.vlgmr.msra.gmra.mrb[4].mxu0 %vm825_vm2, %v1150_v0  ;;  %v668_v0 = vld [vmem:[%s9715_s2 + $0x10] sm:$0xff] }
 0x83f   :  { %6915 = vmatpush3.xpose.msk.msra.mxu0 %vm825_vm2, %v1303_v63  ;;  %6916 = vmatprep.mubr.msk.f32.mxu0 %vm8403_vm1, %v8404_v14  ;;  %v675_v63 = vld [vmem:[%s9716_s7 + $0x8] sm:$0xff] }
 0x840   :  { %6924 = vmatprep.subr.mxu0 %v8404_v14 }
 0x842   :  { %6917 = vmatmul.mubr.msk.f32.vlgmr.msra.gmra.mrb[6].mxu0 %vm825_vm2, %v1301_v2  ;;  %v669_v2 = vld [vmem:[%s9715_s2 + $0x18] sm:$0xff] }
 0x843   :  { %6926 = vmatprep.mubr.msk.f32.mxu0 %vm8403_vm1, %v8404_v14  ;;  %6925 = vmatpush3.msra.mxu0 %v700_v26 }
 0x844   :  { %6934 = vmatprep.subr.mxu0 %v8404_v14 }
 0x90d   :  { %v1296_v3 = vpop.f32.mrb[6].mxu1 }
 0x90e   :  { %v6913_v4 = vpop.f32.mrb[7].mxu1 }
 0x90f   :  { %v676_v4 = vld [vmem:[%s9716_s7 + $0x10] sm:$0xff] }
 0x911   :  { %v1223_v5 = vpop.f32.mrb[4].mxu0 }
 0x912   :  { %v1297_v6 = vadd.f32 %v1296_v3, %v1223_v5  ;;  %v6908_v7 = vpop.f32.mrb[5].mxu0  ;;  %v7299_v3 = vpack.c.bf16 %v669_v2, %v668_v0  ;;  %v677_v5 = vld [vmem:[%s9716_s7 + $0x18] sm:$0xff] }
 0x913   :  { %v7293_v7 = vpack.c.bf16 %v677_v5, %v676_v4 }
 0x915   :  { %v1374_v8 = vpop.f32.mrb[6].mxu0 }
 0x916   :  { %v1378_v9 = vmul.f32 0.35355338, %v1374_v8  ;;  %v6918_v11 = vpop.f32.mrb[7].mxu0 }
 0x918   :  { %v1379_v12 = vsel %vm825_vm2, %v1378_v9, -inf }
 0x919   :  { %1380 = vmax.xlane.f32.xlu1 %v1379_v12 }
 0x92a   :  { %1390 = vrot.lane.b32.xlu1 %v8875_v28, %s8412_s8 }
 0x92e   :  { %1540 = vrot.lane.b32.xlu1 %v8875_v28, %s8413_s26 }
 0x9a6   :  { %v1381_v13 = vpop.xlane.xlu1 %1380 }
 0x9a7   :  { %v1382_v15 = vsub.f32 %v1378_v9, %v1381_v13  ;;  %v6595_v13 = vld [vmem:[%s9718_s5] ss:$0 sm:$0xff] }
 0x9a9   :  { %v1383_v16 = vmul.f32 1.442695, %v1382_v15 }
 0x9aa   :  { %v1391_v17 = vpop.permute.xlu1 %1390 }
 0x9ab   :  { %7496 = vpow2.f32 %v1383_v16  ;;  %6920 = vmatpush3.msra.mxu1 %v1391_v17  ;;  %v6596_v16 = vld [vmem:[%s9719_s20] ss:$0 sm:$0xff] }
 0x9ac   :  { %6929 = vmatprep.subr.mxu1 %v8404_v14 }
 0x9ae   :  { %v1541_v24 = vpop.permute.xlu1 %1540 }
 0x9b5   :  { %v7497_v18 = vpop.eup %7496 }
 0x9b6   :  { %v1385_v19 = vsel %vm825_vm2, %v7497_v18, 0.0 }
 0x9b7   :  { %1386 = vadd.xlane.f32.xlu0 %v1385_v19  ;;  %v6599_v19 = vld [vmem:[#allocation33] ss:$0 sm:$0xff] }
 0x9cd   :  { %1542 = vrot.lane.b32.xlu0 %v8875_v28, %s8414_s21 }
 0xa44   :  { %v1387_v20 = vpop.xlane.xlu0 %1386 }
 0xa45   :  { %7498 = vrcp.f32 %v1387_v20 }
 0xa48   :  { %v1543_v23 = vpop.permute.xlu0 %1542 }
 0xa4f   :  { %v7499_v21 = vpop.eup %7498 }
 0xa50   :  { %v1389_v22 = vmul.f32 %v7499_v21, %v7497_v18 }
 0xa52   :  { %6922 = vmatmul.mubr.msk.f32.vlgmr.msra.gmra.mrb[8].mxu1 %vm825_vm2, %v1389_v22 }
 0xa53   :  { %6930 = vmatpush3.xpose.msk.msra.mxu1 %vm825_vm2, %v1543_v23  ;;  %6931 = vmatprep.mubr.msk.f32.mxu1 %vm8403_vm1, %v8404_v14  ;;  %v6597_v23 = vld [vmem:[#allocation36] ss:$0 sm:$0xff] }
 0xa54   :  { %6939 = vmatprep.subr.mxu1 %v8404_v14 }
 0xa56   :  { %6932 = vmatmul.mubr.msk.f32.vlgmr.msra.gmra.mrb[10].mxu1 %vm825_vm2, %v1541_v24 }
 0xa57   :  { %6941 = vmatprep.mubr.msk.f32.mxu1 %vm8403_vm1, %v8404_v14  ;;  %6940 = vmatpush3.msra.mxu1 %v701_v39 }
 0xa58   :  { %7295 = vmatprep.subr.bf16.mxu1 %v8402_v10 }
 0xb25   :  { %v1462_v27 = vpop.f32.mrb[8].mxu1 }
 0xb26   :  { %v6923_v29 = vpop.f32.mrb[9].mxu1  ;;  %6927 = vmatmul.mubr.msk.f32.vlgmr.msra.gmra.mrb[8].mxu0 %vm825_vm2, %v1462_v27 }
 0xb27   :  { %6936 = vmatprep.mubr.msk.f32.mxu0 %vm8403_vm1, %v8404_v14 }
 0xb29   :  { %v1614_v30 = vpop.f32.mrb[10].mxu1 }
 0xb2a   :  { %v1618_v31 = vmul.f32 0.35355338, %v1614_v30  ;;  %v6933_v32 = vpop.f32.mrb[11].mxu1 }
 0xb2c   :  { %v1619_v33 = vsel %vm825_vm2, %v1618_v31, -inf }
 0xb2d   :  { %1620 = vmax.xlane.f32.xlu1 %v1619_v33 }
 0xbba   :  { %v1621_v34 = vpop.xlane.xlu1 %1620 }
 0xbbb   :  { %v1622_v35 = vsub.f32 %v1618_v31, %v1621_v34 }
 0xbbd   :  { %v1623_v36 = vmul.f32 1.442695, %v1622_v35 }
 0xbbf   :  { %7500 = vpow2.f32 %v1623_v36 }
 0xbc9   :  { %v7501_v37 = vpop.eup %7500 }
 0xbca   :  { %v1625_v38 = vsel %vm825_vm2, %v7501_v37, 0.0 }
 0xbcb   :  { %1626 = vadd.xlane.f32.xlu0 %v1625_v38 }
 0xbe1   :  { %1630 = vrot.lane.b32.xlu0 %v8875_v28, %s8415_s28 }
 0xbf9   :  { %v1535_v40 = vpop.f32.mrb[8].mxu0 }
 0xbfa   :  { %v1539_v41 = vadd.f32 %v1535_v40, %v1297_v6  ;;  %v6928_v42 = vpop.f32.mrb[9].mxu0  ;;  %v587_v6 = vld [vmem:[%s9717_s27] sm:$0x3f] }
 0xc58   :  { %v1627_v43 = vpop.xlane.xlu0 %1626 }
 0xc59   :  { %7502 = vrcp.f32 %v1627_v43 }
 0xc5c   :  { %v1631_v44 = vpop.permute.xlu0 %1630 }
 0xc5d   :  { %6935 = vmatpush3.msra.mxu0 %v1631_v44 }
 0xc5e   :  { %7289 = vmatprep.subr.bf16.mxu0 %v8402_v10 }
 0xc63   :  { %v7503_v45 = vpop.eup %7502 }
 0xc64   :  { %v1629_v46 = vmul.f32 %v7503_v45, %v7501_v37 }
 0xc66   :  { %6937 = vmatmul.mubr.msk.f32.vlgmr.msra.gmra.mrb[10].mxu0 %vm825_vm2, %v1629_v46 }
 0xc67   :  { %6952 = vmatprep.mubr.msk.f32.mxu0 %vm8403_vm1, %v8404_v14 }
 0xd39   :  { %v1702_v28 = vpop.f32.mrb[10].mxu0 }
 0xd3a   :  { %v6938_v47 = vpop.f32.mrb[11].mxu0  ;;  %6942 = vmatmul.mubr.msk.f32.vlgmr.msra.gmra.mrb[12].mxu1 %vm825_vm2, %v1702_v28 }
 0xd3b   :  { %6963 = vmatprep.mubr.msk.f32.mxu1 %vm8403_vm1, %v8404_v14  ;;  %7297 = vmatpush3.bf16.msra.mxu1 %v7296_v62 }
 0xd3c   :  { %7298 = vmatprep.subr.bf16.mxu1 %v8402_v10 }
 0xd3f   :  { %7300 = vmatpush3.bf16.msra.mxu1 %v7299_v3 }
 0xd40   :  { %6971 = vmatprep.subr.mxu1 %v8404_v14 }
 0xd42   :  { %6964 = vmatmul.mubr.msk.f32.vlgmr.msra.gmra.mrb[14].mxu1 %vm707_vm0, %v587_v6 }
 0xd43   :  { %6973 = vmatprep.mubr.msk.f32.mxu1 %vm8403_vm1, %v8404_v14 }
 0xe0d   :  { %v1775_v49 = vpop.f32.mrb[12].mxu1 }
 0xe0e   :  { %v1779_v50 = vadd.f32 %v1775_v49, %v1539_v41  ;;  %v6943_v51 = vpop.f32.mrb[13].mxu1 }
 0xe10   :  { %v1786_v52 = vadd.f32 %v6594_v48, %v1779_v50 }
 0xe12   :  { %v1787_v53 = vadd.f32 %v1786_v52, %v8868_v25  ;;  %v674_v25 = vld [vmem:[%s9716_s7] sm:$0xff]  ;;  %v671_v52 = vld [vmem:[%s9720_s29 + $0x8] sm:$0xff] }
 0xe13   :  { %v7290_v1 = vpack.c.bf16 %v675_v63, %v674_v25 }
 0xe14   :  { %v1788_v54 = vsel %vm707_vm0, %v1787_v53, 0.0 }
 0xe15   :  { %1789 = vadd.xlane.f32.xlu1 %v1788_v54  ;;  %7291 = vmatpush3.bf16.msra.mxu0 %v7290_v1  ;;  %v1969_v20 = vpop.f32.mrb[14].mxu1 }
 0xe16   :  { %7292 = vmatprep.subr.bf16.mxu0 %v8402_v10  ;;  %v8992_v21 = vadd.f32 %v6599_v19, %v1969_v20  ;;  %v6965_v22 = vpop.f32.mrb[15].mxu1 }
 0xe19   :  { %7294 = vmatpush3.bf16.msra.mxu0 %v7293_v7 }
 0xe1a   :  { %6966 = vmatprep.subr.mxu0 %v8404_v14 }
 0xea2   :  { %v1790_v55 = vpop.xlane.xlu1 %1789 }
 0xea3   :  { %v1791_v56 = vmul.f32 0.03125, %v1790_v55 }
 0xea5   :  { %v1792_v57 = vsub.f32 %v1787_v53, %v1791_v56 }
 0xea7   :  { %v1793_v58 = vmul.f32 %v1792_v57, %v1792_v57 }
 0xea9   :  { %v1794_v59 = vsel %vm707_vm0, %v1793_v58, 0.0 }
 0xeaa   :  { %1795 = vadd.xlane.f32.xlu1 %v1794_v59 }
 0xebb   :  { %2142 = vrot.lane.b32.xlu1 %v8992_v21, %s8405_s30 }
 0xf37   :  { %v1796_v8 = vpop.xlane.xlu1 %1795 }
 0xf38   :  { %v1797_v9 = vmul.f32 0.03125, %v1796_v8 }
 0xf3a   :  { %v1798_v11 = vadd.f32 1e-12, %v1797_v9 }
 0xf3b   :  { %v2143_v29 = vpop.permute.xlu1 %2142 }
 0xf3c   :  { %7504 = vrsqrt.f32 %v1798_v11 }
 0xf46   :  { %v7505_v12 = vpop.eup %7504 }
 0xf47   :  { %v1800_v15 = vmul.f32 %v7505_v12, %v1792_v57  ;;  %v670_v57 = vld [vmem:[%s9720_s29] sm:$0xff] }
 0xf49   :  { %v1807_v17 = vmul.f32 %v6595_v13, %v1800_v15 }
 0xf4b   :  { %v8986_v18 = vadd.f32 %v6596_v16, %v1807_v17 }
 0xf4d   :  { %6953 = vmatmul.mubr.msk.f32.vlgmr.msra.gmra.mrb[12].mxu0 %vm707_vm0, %v8986_v18 }
 0xf4e   :  { %6968 = vmatprep.mubr.msk.f32.mxu0 %vm8403_vm1, %v8404_v14  ;;  %6967 = vmatpush3.xpose.msk.msra.mxu0 %vm825_vm2, %v8992_v21 }
 0xf4f   :  { %6976 = vmatprep.subr.mxu0 %v8404_v14 }
0x1020   :  { %v1890_v24 = vpop.f32.mrb[12].mxu0 }
0x1021   :  { %v8999_v26 = vadd.f32 %v6597_v23, %v1890_v24  ;;  %v6954_v27 = vpop.f32.mrb[13].mxu0  ;;  %v672_v23 = vld [vmem:[%s9720_s29 + $0x10] sm:$0xff] }
0x1023   :  { %2140 = vrot.lane.b32.xlu0 %v8999_v26, %s8405_s30  ;;  %6969 = vmatmul.mubr.msk.f32.vlgmr.msra.gmra.mrb[14].mxu0 %vm825_vm2, %v8999_v26 }
0x1024   :  { %6977 = vmatpush3.xpose.msk.msra.mxu0 %vm825_vm2, %v2143_v29  ;;  %6978 = vmatprep.mubr.msk.f32.mxu0 %vm8403_vm1, %v8404_v14 }
0x1025   :  { %6986 = vmatprep.subr.mxu0 %v8404_v14 }
0x1095   :  { %v2141_v30 = vpop.permute.xlu0 %2140 }
0x1096   :  { %6979 = vmatmul.mubr.msk.f32.vlgmr.msra.gmra.mrb[16].mxu0 %vm825_vm2, %v2141_v30 }
0x1097   :  { %6988 = vmatprep.mubr.msk.f32.mxu0 %vm8403_vm1, %v8404_v14  ;;  %6987 = vmatpush3.msra.mxu0 %v671_v52 }
0x1098   :  { %6996 = vmatprep.subr.mxu0 %v8404_v14 }
0x10f6   :  { %v2045_v31 = vpop.f32.mrb[14].mxu0 }
0x10f7   :  { %v2049_v32 = vmul.f32 0.35355338, %v2045_v31  ;;  %v6970_v33 = vpop.f32.mrb[15].mxu0 }
0x10f9   :  { %v2051_v34 = vsel %vm2050_vm3, %v2049_v32, -inf }
0x10fa   :  { %2052 = vmax.xlane.f32.xlu0 %v2051_v34 }
0x1169   :  { %v2214_v35 = vpop.f32.mrb[16].mxu0 }
0x116a   :  { %v2218_v36 = vmul.f32 0.35355338, %v2214_v35  ;;  %v6980_v37 = vpop.f32.mrb[17].mxu0 }
0x116b   :  { %v673_v37 = vld [vmem:[%s9720_s29 + $0x18] sm:$0xff] }
0x116c   :  { %v2219_v38 = vsel %vm2050_vm3, %v2218_v36, -inf }
0x116d   :  { %2220 = vmax.xlane.f32.xlu1 %v2219_v38 }
0x117e   :  { %2062 = vrot.lane.b32.xlu1 %v8992_v21, %s8406_s14 }
0x1182   :  { %2455 = vrot.lane.b32.xlu1 %v8992_v21, %s8411_s6 }
0x1186   :  { %2453 = vrot.lane.b32.xlu1 %v8999_v26, %s8411_s6 }
0x1187   :  { %v2053_v39 = vpop.xlane.xlu0 %2052 }
0x1188   :  { %v2054_v40 = vsub.f32 %v2049_v32, %v2053_v39 }
0x118a   :  { %v2055_v41 = vmul.f32 1.442695, %v2054_v40 }
0x118c   :  { %7506 = vpow2.f32 %v2055_v41 }
0x1196   :  { %v7507_v42 = vpop.eup %7506 }
0x1197   :  { %v2057_v43 = vsel %vm2050_vm3, %v7507_v42, 0.0 }
0x1198   :  { %2058 = vadd.xlane.f32.xlu0 %v2057_v43 }
0x11fa   :  { %v2221_v44 = vpop.xlane.xlu1 %2220 }
0x11fb   :  { %v2222_v45 = vsub.f32 %v2218_v36, %v2221_v44 }
0x11fd   :  { %v2223_v46 = vmul.f32 1.442695, %v2222_v45 }
0x11fe   :  { %v2063_v28 = vpop.permute.xlu1 %2062 }
0x11ff   :  { %7508 = vpow2.f32 %v2223_v46  ;;  %6972 = vmatpush3.msk.msra.mxu1 %vm2067_vm4, %v2063_v28  ;;  %v6621_v46 = vld [vmem:[#allocation34] ss:$0 sm:$0xff] }
0x1200   :  { %6981 = vmatprep.subr.mxu1 %v8404_v14 }
0x1202   :  { %v2456_v60 = vpop.permute.xlu1 %2455 }
0x1206   :  { %v2454_v25 = vpop.permute.xlu1 %2453 }
0x1209   :  { %v7509_v47 = vpop.eup %7508 }
0x120a   :  { %v2225_v48 = vsel %vm2050_vm3, %v7509_v47, 0.0 }
0x120b   :  { %2226 = vadd.xlane.f32.xlu0 %v2225_v48 }
0x1221   :  { %2230 = vrot.lane.b32.xlu0 %v8992_v21, %s8407_s18 }
0x1225   :  { %v2059_v49 = vpop.xlane.xlu0 %2058 }
0x1226   :  { %7510 = vrcp.f32 %v2059_v49 }
0x1230   :  { %v7511_v50 = vpop.eup %7510 }
0x1231   :  { %v2061_v51 = vmul.f32 %v7511_v50, %v7507_v42 }
0x1233   :  { %6974 = vmatmul.mubr.msk.f32.vlgmr.msra.gmra.mrb[16].mxu1 %vm2050_vm3, %v2061_v51 }
0x1234   :  { %6983 = vmatprep.mubr.msk.f32.mxu1 %vm8403_vm1, %v8404_v14 }
0x1298   :  { %v2227_v53 = vpop.xlane.xlu0 %2226 }
0x1299   :  { %7512 = vrcp.f32 %v2227_v53 }
0x129c   :  { %v2231_v54 = vpop.permute.xlu0 %2230 }
0x129d   :  { %6982 = vmatpush3.msk.msra.mxu1 %vm2067_vm4, %v2231_v54 }
0x129e   :  { %6991 = vmatprep.subr.mxu1 %v8404_v14 }
0x12a3   :  { %v7513_v55 = vpop.eup %7512 }
0x12a4   :  { %v2229_v56 = vmul.f32 %v7513_v55, %v7509_v47 }
0x12a6   :  { %6984 = vmatmul.mubr.msk.f32.vlgmr.msra.gmra.mrb[18].mxu1 %vm2050_vm3, %v2229_v56 }
0x12a7   :  { %6992 = vmatpush3.msra.mxu1 %v670_v57  ;;  %6993 = vmatprep.mubr.msk.f32.mxu1 %vm8403_vm1, %v8404_v14  ;;  %v679_v57 = vld [vmem:[#allocation42] sm:$0xff] }
0x12a8   :  { %7001 = vmatprep.subr.mxu1 %v8404_v14 }
0x1306   :  { %v2136_v58 = vpop.f32.mrb[16].mxu1 }
0x1307   :  { %v6975_v59 = vpop.f32.mrb[17].mxu1  ;;  %6994 = vmatmul.mubr.msk.f32.vlgmr.msra.gmra.mrb[20].mxu1 %vm825_vm2, %v2136_v58  ;;  %v680_v58 = vld [vmem:[#allocation42 + $0x8] sm:$0xff] }
0x1308   :  { %7003 = vmatprep.mubr.msk.f32.mxu1 %vm8403_vm1, %v8404_v14  ;;  %v7302_v59 = vpack.c.bf16 %v680_v58, %v679_v57  ;;  %v595_v57 = vld [vmem:[%s9723_s9 + $0x18] sm:$0xff] }
0x1379   :  { %v2303_v61 = vpop.f32.mrb[18].mxu1 }
0x137a   :  { %v6985_v62 = vpop.f32.mrb[19].mxu1  ;;  %6989 = vmatmul.mubr.msk.f32.vlgmr.msra.gmra.mrb[18].mxu0 %vm825_vm2, %v2303_v61  ;;  %v682_v61 = vld [vmem:[#allocation42 + $0x18] sm:$0xff] }
0x137b   :  { %6997 = vmatpush3.xpose.msk.msra.mxu0 %vm825_vm2, %v2456_v60  ;;  %6998 = vmatprep.mubr.msk.f32.mxu0 %vm8403_vm1, %v8404_v14  ;;  %v681_v60 = vld [vmem:[#allocation42 + $0x10] sm:$0xff] }
0x137c   :  { %7006 = vmatprep.subr.mxu0 %v8404_v14 }
0x137e   :  { %6999 = vmatmul.mubr.msk.f32.vlgmr.msra.gmra.mrb[20].mxu0 %vm825_vm2, %v2454_v25 }
0x137f   :  { %7008 = vmatprep.mubr.msk.f32.mxu0 %vm8403_vm1, %v8404_v14  ;;  %7007 = vmatpush3.msra.mxu0 %v672_v23 }
0x1380   :  { %7016 = vmatprep.subr.mxu0 %v8404_v14 }
0x13da   :  { %v2449_v63 = vpop.f32.mrb[20].mxu1 }
0x13db   :  { %v6995_v0 = vpop.f32.mrb[21].mxu1 }
0x144d   :  { %v2376_v1 = vpop.f32.mrb[18].mxu0 }
0x144e   :  { %v2450_v2 = vadd.f32 %v2449_v63, %v2376_v1  ;;  %v6990_v3 = vpop.f32.mrb[19].mxu0  ;;  %v6622_v1 = vld [vmem:[#allocation39] ss:$0 sm:$0xff] }
0x144f   :  { %v6623_v3 = vld [vmem:[#allocation37] ss:$0 sm:$0xff] }
0x1451   :  { %v2527_v4 = vpop.f32.mrb[20].mxu0 }
0x1452   :  { %v2531_v5 = vmul.f32 0.35355338, %v2527_v4  ;;  %v7000_v6 = vpop.f32.mrb[21].mxu0 }
0x1453   :  { %v686_v6 = vld [vmem:[%s9721_s10] sm:$0xff] }
0x1454   :  { %v2532_v7 = vsel %vm2050_vm3, %v2531_v5, -inf }
0x1455   :  { %2533 = vmax.xlane.f32.xlu0 %v2532_v7  ;;  %v687_v7 = vld [vmem:[%s9721_s10 + $0x8] sm:$0xff] }
0x146b   :  { %2543 = vrot.lane.b32.xlu0 %v8992_v21, %s8410_s23 }
0x146f   :  { %2694 = vrot.lane.b32.xlu0 %v8999_v26, %s8413_s26 }
0x14e2   :  { %v2534_v8 = vpop.xlane.xlu0 %2533 }
0x14e3   :  { %v2535_v9 = vsub.f32 %v2531_v5, %v2534_v8  ;;  %v7308_v8 = vpack.c.bf16 %v687_v7, %v686_v6 }
0x14e5   :  { %v2536_v11 = vmul.f32 1.442695, %v2535_v9  ;;  %v688_v9 = vld [vmem:[%s9721_s10 + $0x10] sm:$0xff] }
0x14e6   :  { %v2544_v12 = vpop.permute.xlu0 %2543 }
0x14e7   :  { %7514 = vpow2.f32 %v2536_v11  ;;  %7002 = vmatpush3.msk.msra.mxu1 %vm2067_vm4, %v2544_v12  ;;  %v689_v11 = vld [vmem:[%s9721_s10 + $0x18] sm:$0xff] }
0x14e8   :  { %7011 = vmatprep.subr.mxu1 %v8404_v14  ;;  %v7311_v12 = vpack.c.bf16 %v689_v11, %v688_v9  ;;  %v658_v11 = vld [vmem:[%s9725_s4 + $0x10] sm:$0xff] }
0x14ea   :  { %v2695_v22 = vpop.permute.xlu0 %2694 }
0x14f1   :  { %v7515_v13 = vpop.eup %7514 }
0x14f2   :  { %v2538_v15 = vsel %vm2050_vm3, %v7515_v13, 0.0 }
0x14f3   :  { %2539 = vadd.xlane.f32.xlu1 %v2538_v15  ;;  %v691_v15 = vld [vmem:[%s9721_s10 + $0x28] sm:$0xff] }
0x1504   :  { %2696 = vrot.lane.b32.xlu1 %v8992_v21, %s8413_s26 }
0x1580   :  { %v2540_v16 = vpop.xlane.xlu1 %2539 }
0x1581   :  { %7516 = vrcp.f32 %v2540_v16 }
0x1584   :  { %v2697_v20 = vpop.permute.xlu1 %2696 }
0x158b   :  { %v7517_v17 = vpop.eup %7516 }
0x158c   :  { %v2542_v19 = vmul.f32 %v7517_v17, %v7515_v13  ;;  %v690_v13 = vld [vmem:[%s9721_s10 + $0x20] sm:$0xff]  ;;  %v692_v17 = vld [vmem:[%s9721_s10 + $0x30] sm:$0xff] }
0x158d   :  { %v7314_v16 = vpack.c.bf16 %v691_v15, %v690_v13  ;;  %v7618_v15 = vld [vmem:[#allocation4] ss:$0 sm:$0xff] }
0x158e   :  { %7004 = vmatmul.mubr.msk.f32.vlgmr.msra.gmra.mrb[22].mxu1 %vm2050_vm3, %v2542_v19  ;;  %v693_v19 = vld [vmem:[%s9721_s10 + $0x38] sm:$0xff] }
0x158f   :  { %7012 = vmatpush3.xpose.msk.msra.mxu1 %vm825_vm2, %v2697_v20  ;;  %7013 = vmatprep.mubr.msk.f32.mxu1 %vm8403_vm1, %v8404_v14  ;;  %v7317_v20 = vpack.c.bf16 %v693_v19, %v692_v17  ;;  %v7619_v17 = vld [vmem:[#allocation2] ss:$0 sm:$0xff] }
0x1590   :  { %7021 = vmatprep.subr.mxu1 %v8404_v14 }
0x1592   :  { %7014 = vmatmul.mubr.msk.f32.vlgmr.msra.gmra.mrb[24].mxu1 %vm825_vm2, %v2695_v22  ;;  %v6624_v22 = vld [vmem:[#allocation40] ss:$0 sm:$0xff] }
0x1593   :  { %7023 = vmatprep.mubr.msk.f32.mxu1 %vm8403_vm1, %v8404_v14  ;;  %7022 = vmatpush3.msra.mxu1 %v673_v37  ;;  %v6626_v37 = vld [vmem:[#allocation43] ss:$0 sm:$0xff] }
0x1594   :  { %7307 = vmatprep.subr.bf16.mxu1 %v8402_v10 }
0x1661   :  { %v2616_v24 = vpop.f32.mrb[22].mxu1 }
0x1662   :  { %v7005_v26 = vpop.f32.mrb[23].mxu1  ;;  %7009 = vmatmul.mubr.msk.f32.vlgmr.msra.gmra.mrb[22].mxu0 %vm825_vm2, %v2616_v24 }
0x1663   :  { %7018 = vmatprep.mubr.msk.f32.mxu0 %vm8403_vm1, %v8404_v14 }
0x1665   :  { %v2768_v27 = vpop.f32.mrb[24].mxu1 }
0x1666   :  { %v2772_v29 = vmul.f32 0.35355338, %v2768_v27  ;;  %v7015_v30 = vpop.f32.mrb[25].mxu1 }
0x1668   :  { %v2773_v31 = vsel %vm2050_vm3, %v2772_v29, -inf }
0x1669   :  { %2774 = vmax.xlane.f32.xlu1 %v2773_v31 }
0x16f6   :  { %v2775_v32 = vpop.xlane.xlu1 %2774 }
0x16f7   :  { %v2776_v33 = vsub.f32 %v2772_v29, %v2775_v32 }
0x16f9   :  { %v2777_v34 = vmul.f32 1.442695, %v2776_v33 }
0x16fb   :  { %7518 = vpow2.f32 %v2777_v34 }
0x1705   :  { %v7519_v35 = vpop.eup %7518 }
0x1706   :  { %v2779_v36 = vsel %vm2050_vm3, %v7519_v35, 0.0 }
0x1707   :  { %2780 = vadd.xlane.f32.xlu0 %v2779_v36 }
0x171d   :  { %2784 = vrot.lane.b32.xlu0 %v8992_v21, %s8414_s21 }
0x1735   :  { %v2689_v38 = vpop.f32.mrb[22].mxu0 }
0x1736   :  { %v2693_v39 = vadd.f32 %v2689_v38, %v2450_v2  ;;  %v7010_v40 = vpop.f32.mrb[23].mxu0 }
0x1794   :  { %v2781_v41 = vpop.xlane.xlu0 %2780 }
0x1795   :  { %7520 = vrcp.f32 %v2781_v41 }
0x1798   :  { %v2785_v42 = vpop.permute.xlu0 %2784 }
0x1799   :  { %7017 = vmatpush3.msk.msra.mxu0 %vm2067_vm4, %v2785_v42  ;;  %v660_v42 = vld [vmem:[%s9722_s17] sm:$0x7] }
0x179a   :  { %7301 = vmatprep.subr.bf16.mxu0 %v8402_v10 }
0x179f   :  { %v7521_v43 = vpop.eup %7520 }
0x17a0   :  { %v2783_v44 = vmul.f32 %v7521_v43, %v7519_v35 }
0x17a2   :  { %7019 = vmatmul.mubr.msk.f32.vlgmr.msra.gmra.mrb[24].mxu0 %vm2050_vm3, %v2783_v44  ;;  %v3248_v44 = vsel %vm3247_vm6, %v660_v42, 0.0 }
0x17a3   :  { %7034 = vmatprep.mubr.msk.f32.mxu0 %vm8403_vm1, %v8404_v14  ;;  %7303 = vmatpush3.bf16.msra.mxu0 %v7302_v59 }
0x17a4   :  { %7304 = vmatprep.subr.bf16.mxu0 %v8402_v10 }
0x1875   :  { %v2857_v21 = vpop.f32.mrb[24].mxu0 }
0x1876   :  { %v7020_v45 = vpop.f32.mrb[25].mxu0  ;;  %7024 = vmatmul.mubr.msk.f32.vlgmr.msra.gmra.mrb[26].mxu1 %vm825_vm2, %v2857_v21 }
0x1877   :  { %7053 = vmatprep.mubr.msk.f32.mxu1 %vm8403_vm1, %v8404_v14  ;;  %7309 = vmatpush3.bf16.msra.mxu1 %v7308_v8 }
0x1878   :  { %7310 = vmatprep.subr.bf16.mxu1 %v8402_v10 }
0x187b   :  { %7312 = vmatpush3.bf16.msra.mxu1 %v7311_v12  ;;  %v659_v12 = vld [vmem:[%s9725_s4 + $0x18] sm:$0xff] }
0x187c   :  { %7313 = vmatprep.subr.bf16.mxu1 %v8402_v10  ;;  %v7329_v13 = vpack.c.bf16 %v659_v12, %v658_v11 }
0x187f   :  { %7315 = vmatpush3.bf16.msra.mxu1 %v7314_v16 }
0x1880   :  { %7316 = vmatprep.subr.bf16.mxu1 %v8402_v10 }
0x1883   :  { %7318 = vmatpush3.bf16.msra.mxu1 %v7317_v20  ;;  %v6630_v20 = vld [vmem:[%s9726_s0] ss:$0 sm:$0xff] }
0x1884   :  { %7078 = vmatprep.subr.mxu1 %v8404_v14 }
0x1949   :  { %v2930_v28 = vpop.f32.mrb[26].mxu1 }
0x194a   :  { %v2934_v47 = vadd.f32 %v2930_v28, %v2693_v39  ;;  %v7025_v48 = vpop.f32.mrb[27].mxu1 }
0x194c   :  { %v2941_v49 = vadd.f32 %v6621_v46, %v2934_v47 }
0x194e   :  { %v2942_v50 = vadd.f32 %v2941_v49, %v8986_v18  ;;  %v7305_v18 = vpack.c.bf16 %v682_v61, %v681_v60 }
0x1950   :  { %v2943_v51 = vsel %vm707_vm0, %v2942_v50, 0.0  ;;  %7306 = vmatpush3.bf16.msra.mxu0 %v7305_v18 }
0x1951   :  { %2944 = vadd.xlane.f32.xlu1 %v2943_v51  ;;  %7319 = vmatprep.subr.bf16.mxu0 %v8402_v10 }
0x19de   :  { %v2945_v52 = vpop.xlane.xlu1 %2944 }
0x19df   :  { %v2946_v53 = vmul.f32 0.03125, %v2945_v52 }
0x19e1   :  { %v2947_v54 = vsub.f32 %v2942_v50, %v2946_v53  ;;  %v592_v53 = vld [vmem:[%s9723_s9] sm:$0xff] }
0x19e3   :  { %v2948_v55 = vmul.f32 %v2947_v54, %v2947_v54 }
0x19e5   :  { %v2949_v56 = vsel %vm707_vm0, %v2948_v55, 0.0 }
0x19e6   :  { %2950 = vadd.xlane.f32.xlu1 %v2949_v56  ;;  %v594_v56 = vld [vmem:[%s9723_s9 + $0x10] sm:$0xff] }
0x19e7   :  { %v7323_v58 = vpack.c.bf16 %v595_v57, %v594_v56 }
0x1a73   :  { %v2951_v62 = vpop.xlane.xlu1 %2950 }
0x1a74   :  { %v2952_v25 = vmul.f32 0.03125, %v2951_v62 }
0x1a76   :  { %v2953_v63 = vadd.f32 1e-12, %v2952_v25 }
0x1a78   :  { %7522 = vrsqrt.f32 %v2953_v63 }
0x1a82   :  { %v7523_v0 = vpop.eup %7522 }
0x1a83   :  { %v2955_v2 = vmul.f32 %v7523_v0, %v2947_v54  ;;  %v593_v54 = vld [vmem:[%s9723_s9 + $0x8] sm:$0xff]  ;;  %v6628_v0 = vld [vmem:[%s9724_s11] ss:$0 sm:$0xff] }
0x1a84   :  { %v7320_v55 = vpack.c.bf16 %v593_v54, %v592_v53 }
0x1a85   :  { %v2962_v4 = vmul.f32 %v6622_v1, %v2955_v2  ;;  %v656_v2 = vld [vmem:[%s9725_s4] sm:$0xff] }
0x1a87   :  { %v2969_v5 = vadd.f32 %v6623_v3, %v2962_v4  ;;  %v657_v3 = vld [vmem:[%s9725_s4 + $0x8] sm:$0xff]  ;;  %v6629_v4 = vld [vmem:[#allocation45] ss:$0 sm:$0xff] }
0x1a88   :  { %v7326_v7 = vpack.c.bf16 %v657_v3, %v656_v2 }
0x1a89   :  { %7035 = vmatmul.mubr.msk.f32.vlgmr.msra.gmra.mrb[26].mxu0 %vm707_vm0, %v2969_v5 }
0x1a8a   :  { %7064 = vmatprep.mubr.msk.f32.mxu0 %vm8403_vm1, %v8404_v14  ;;  %7321 = vmatpush3.bf16.msra.mxu0 %v7320_v55 }
0x1a8b   :  { %7322 = vmatprep.subr.bf16.mxu0 %v8402_v10 }
0x1a8e   :  { %7324 = vmatpush3.bf16.msra.mxu0 %v7323_v58 }
0x1a8f   :  { %7325 = vmatprep.subr.bf16.mxu0 %v8402_v10 }
0x1b5c   :  { %v3045_v23 = vpop.f32.mrb[26].mxu0 }
0x1b5d   :  { %v3046_v24 = vadd.f32 %v6624_v22, %v3045_v23  ;;  %v7036_v26 = vpop.f32.mrb[27].mxu0 }
0x1b5e   :  { %v6632_v26 = vld [vmem:[#allocation28] ss:$0 sm:$0xff] }
0x1b5f   :  { %v3049_v27 = vmul.f32 %v3046_v24, %v3046_v24 }
0x1b61   :  { %v3050_v29 = vmul.f32 %v3049_v27, %v3046_v24 }
0x1b63   :  { %v3051_v30 = vmul.f32 0.044715, %v3050_v29 }
0x1b65   :  { %v3052_v31 = vadd.f32 %v3051_v30, %v3046_v24 }
0x1b67   :  { %v3053_v32 = vmul.f32 0.7978846, %v3052_v31 }
0x1b69   :  { %7524 = vtanh.f32 %v3053_v32 }
0x1b73   :  { %v7525_v33 = vpop.eup %7524 }
0x1b74   :  { %v3055_v34 = vadd.f32 1.0, %v7525_v33 }
0x1b76   :  { %v3056_v35 = vmul.f32 0.5, %v3055_v34 }
0x1b78   :  { %v3057_v36 = vmul.f32 %v3056_v35, %v3046_v24 }
0x1b7a   :  { %7054 = vmatmul.mubr.msk.f32.vlgmr.msra.gmra.mrb[28].mxu1 %vm3064_vm5, %v3057_v36 }
0x1b7b   :  { %7080 = vmatprep.mubr.msk.f32.mxu1 %vm8403_vm1, %v8404_v14 }
0x1c4d   :  { %v3134_v38 = vpop.f32.mrb[28].mxu1 }
0x1c4e   :  { %v3135_v39 = vadd.f32 %v6626_v37, %v3134_v38  ;;  %v7055_v40 = vpop.f32.mrb[29].mxu1 }
0x1c50   :  { %v3138_v41 = vadd.f32 %v3135_v39, %v2969_v5 }
0x1c52   :  { %v3139_v43 = vsel %vm707_vm0, %v3138_v41, 0.0 }
0x1c53   :  { %3140 = vadd.xlane.f32.xlu1 %v3139_v43 }
0x1c57   :  { %3249 = vadd.xlane.f32.xlu1 %v3248_v44 }
0x1ce0   :  { %v3141_v21 = vpop.xlane.xlu1 %3140 }
0x1ce1   :  { %v3142_v45 = vmul.f32 0.03125, %v3141_v21 }
0x1ce3   :  { %v3143_v46 = vsub.f32 %v3138_v41, %v3142_v45 }
0x1ce4   :  { %v3250_v28 = vpop.xlane.xlu1 %3249 }
0x1ce5   :  { %v3251_v47 = vmul.f32 0.03125, %v3250_v28  ;;  %v3144_v48 = vmul.f32 %v3143_v46, %v3143_v46 }
0x1ce7   :  { %v3252_v49 = vsub.f32 %v660_v42, %v3251_v47  ;;  %v3145_v50 = vsel %vm707_vm0, %v3144_v48, 0.0 }
0x1ce8   :  { %3146 = vadd.xlane.f32.xlu1 %v3145_v50 }
0x1ce9   :  { %v3253_v51 = vmul.f32 %v3252_v49, %v3252_v49 }
0x1ceb   :  { %v3254_v52 = vsel %vm3247_vm6, %v3253_v51, 0.0 }
0x1cec   :  { %3255 = vadd.xlane.f32.xlu0 %v3254_v52 }
0x1d75   :  { %v3147_v59 = vpop.xlane.xlu1 %3146 }
0x1d76   :  { %v3148_v60 = vmul.f32 0.03125, %v3147_v59 }
0x1d78   :  { %v3149_v61 = vadd.f32 1e-12, %v3148_v60 }
0x1d79   :  { %v3256_v18 = vpop.xlane.xlu0 %3255 }
0x1d7a   :  { %7526 = vrsqrt.f32 %v3149_v61  ;;  %v3257_v62 = vmul.f32 0.03125, %v3256_v18 }
0x1d7c   :  { %v3258_v25 = vadd.f32 1e-12, %v3257_v62 }
0x1d7e   :  { %7528 = vrsqrt.f32 %v3258_v25 }
0x1d84   :  { %v7527_v63 = vpop.eup %7526 }
0x1d85   :  { %v3151_v1 = vmul.f32 %v7527_v63, %v3143_v46 }
0x1d87   :  { %v3158_v5 = vmul.f32 %v6628_v0, %v3151_v1 }
0x1d88   :  { %v7529_v6 = vpop.eup %7528 }
0x1d89   :  { %v3260_v8 = vmul.f32 %v7529_v6, %v3252_v49  ;;  %v9123_v9 = vadd.f32 %v6629_v4, %v3158_v5 }
0x1d8b   :  { %7065 = vmatmul.mubr.msk.f32.vlgmr.msra.gmra.mrb[28].mxu0 %vm707_vm0, %v9123_v9  ;;  %v3261_v16 = vmul.f32 %v7618_v15, %v3260_v8 }
0x1d8c   :  { %7327 = vmatpush3.bf16.msra.mxu0 %v7326_v7  ;;  %7075 = vmatprep.mubr.msk.f32.mxu0 %vm8403_vm1, %v8404_v14 }
0x1d8d   :  { %7328 = vmatprep.subr.bf16.mxu0 %v8402_v10  ;;  %v9132_v19 = vadd.f32 %v7619_v17, %v3261_v16 }
0x1d90   :  { %7330 = vmatpush3.bf16.msra.mxu0 %v7329_v13 }
0x1d91   :  { %7088 = vmatprep.subr.mxu0 %v8404_v14 }
0x1d93   :  { %7076 = vmatmul.mubr.msk.f32.vlgmr.msra.gmra.mrb[30].mxu0 %vm707_vm0, %v9132_v19 }
0x1d94   :  { %7090 = vmatprep.mubr.msk.f32.mxu0 %vm8403_vm1, %v8404_v14 }
0x1e5e   :  { %v3241_v22 = vpop.f32.mrb[28].mxu0 }
0x1e5f   :  { %v3242_v23 = vadd.f32 %v6630_v20, %v3241_v22  ;;  %v7066_v24 = vpop.f32.mrb[29].mxu0 }
0x1e61   :  { %3246 = vst.msk [vmem:[%s8710_s12] sm:$0xff] %vm3245_vm7, %v3242_v23  ;;  %s9727_s12 = sld [smem:[#allocation87_spill]] }
0x1e66   :  { %v3338_v27 = vpop.f32.mrb[30].mxu0 }
0x1e67   :  { %v9142_v29 = vadd.f32 %v6632_v26, %v3338_v27  ;;  %v7077_v30 = vpop.f32.mrb[31].mxu0  ;;  %v653_v50 = vld [vmem:[%s9727_s12 + $0x8] sm:$0xff]  ;;  %v652_v59 = vld [vmem:[%s9727_s12] sm:$0xff]  ;;  %v654_v27 = vld [vmem:[%s9727_s12 + $0x10] sm:$0xff] }
0x1e69   :  { %3343 = vrot.lane.b32.xlu1 %v9142_v29, %s8406_s14 }
0x1e6d   :  { %3512 = vrot.lane.b32.xlu1 %v9142_v29, %s8407_s18 }
0x1e71   :  { %3510 = vrot.lane.b32.xlu1 %v9142_v29, %s8405_s30 }
0x1edb   :  { %v3344_v31 = vpop.permute.xlu1 %3343 }
0x1edc   :  { %7079 = vmatpush3.xpose.msk.msra.mxu1 %vm825_vm2, %v3344_v31 }
0x1edd   :  { %7083 = vmatprep.subr.mxu1 %v8404_v14 }
0x1edf   :  { %7081 = vmatmul.mubr.msk.f32.vlgmr.msra.gmra.mrb[30].mxu1 %vm825_vm2, %v9142_v29  ;;  %v3513_v32 = vpop.permute.xlu1 %3512 }
0x1ee0   :  { %7089 = vmatpush3.xpose.msk.msra.mxu0 %vm825_vm2, %v3513_v32  ;;  %7085 = vmatprep.mubr.msk.f32.mxu1 %vm8403_vm1, %v8404_v14 }
0x1ee1   :  { %7098 = vmatprep.subr.mxu0 %v8404_v14 }
0x1ee3   :  { %v3511_v33 = vpop.permute.xlu1 %3510 }
0x1ee4   :  { %7091 = vmatmul.mubr.msk.f32.vlgmr.msra.gmra.mrb[32].mxu0 %vm825_vm2, %v3511_v33 }
0x1ee5   :  { %7100 = vmatprep.mubr.msk.f32.mxu0 %vm8403_vm1, %v8404_v14  ;;  %7099 = vmatpush3.msra.mxu0 %v653_v50 }
0x1ee6   :  { %7108 = vmatprep.subr.mxu0 %v8404_v14 }
0x1fb2   :  { %v3415_v34 = vpop.f32.mrb[30].mxu1 }
0x1fb3   :  { %v3419_v35 = vmul.f32 0.35355338, %v3415_v34  ;;  %v7082_v36 = vpop.f32.mrb[31].mxu1 }
0x1fb5   :  { %v3421_v37 = vsel %vm3420_vm8, %v3419_v35, -inf }
0x1fb6   :  { %3422 = vmax.xlane.f32.xlu1 %v3421_v37 }
0x1fb7   :  { %v3584_v38 = vpop.f32.mrb[32].mxu0 }
0x1fb8   :  { %v3588_v39 = vmul.f32 0.35355338, %v3584_v38  ;;  %v7092_v40 = vpop.f32.mrb[33].mxu0 }
0x1fba   :  { %v3589_v41 = vsel %vm3420_vm8, %v3588_v39, -inf }
0x1fbb   :  { %3590 = vmax.xlane.f32.xlu0 %v3589_v41 }
0x1fc7   :  { %3600 = vrot.lane.b32.xlu1 %v9142_v29, %s8408_s19  ;;  %s9735_s19 = sld [smem:[#allocation72_spill]] }
0x2043   :  { %v3423_v42 = vpop.xlane.xlu1 %3422 }
0x2044   :  { %v3424_v43 = vsub.f32 %v3419_v35, %v3423_v42  ;;  %v655_v42 = vld [vmem:[%s9727_s12 + $0x18] sm:$0xff] }
0x2046   :  { %v3425_v44 = vmul.f32 1.442695, %v3424_v43 }
0x2047   :  { %v3601_v56 = vpop.permute.xlu1 %3600 }
0x2048   :  { %7530 = vpow2.f32 %v3425_v44  ;;  %v3591_v21 = vpop.xlane.xlu0 %3590 }
0x2049   :  { %v3592_v45 = vsub.f32 %v3588_v39, %v3591_v21 }
0x204b   :  { %v3593_v46 = vmul.f32 1.442695, %v3592_v45 }
0x204d   :  { %7532 = vpow2.f32 %v3593_v46 }
0x2052   :  { %v7531_v28 = vpop.eup %7530 }
0x2053   :  { %v3427_v47 = vsel %vm3420_vm8, %v7531_v28, 0.0 }
0x2054   :  { %3428 = vadd.xlane.f32.xlu0 %v3427_v47 }
0x2057   :  { %v7533_v48 = vpop.eup %7532 }
0x2058   :  { %v3595_v49 = vsel %vm3420_vm8, %v7533_v48, 0.0 }
0x2059   :  { %3596 = vadd.xlane.f32.xlu0 %v3595_v49 }
0x206f   :  { %3432 = vrot.lane.b32.xlu0 %v9142_v29, %s8409_s22 }
0x2073   :  { %3825 = vrot.lane.b32.xlu0 %v9142_v29, %s8410_s23 }
0x2077   :  { %3823 = vrot.lane.b32.xlu0 %v9142_v29, %s8411_s6 }
0x20e1   :  { %v3429_v51 = vpop.xlane.xlu0 %3428 }
0x20e2   :  { %7534 = vrcp.f32 %v3429_v51 }
0x20e6   :  { %v3597_v52 = vpop.xlane.xlu0 %3596 }
0x20e7   :  { %7536 = vrcp.f32 %v3597_v52 }
0x20ea   :  { %v3433_v53 = vpop.permute.xlu0 %3432 }
0x20eb   :  { %7084 = vmatpush3.msk.msra.mxu1 %vm3437_vm9, %v3433_v53 }
0x20ec   :  { %v7535_v54 = vpop.eup %7534  ;;  %7093 = vmatprep.subr.mxu1 %v8404_v14 }
0x20ed   :  { %v3431_v55 = vmul.f32 %v7535_v54, %v7531_v28 }
0x20ee   :  { %v3826_v18 = vpop.permute.xlu0 %3825 }
0x20ef   :  { %7086 = vmatmul.mubr.msk.f32.vlgmr.msra.gmra.mrb[32].mxu1 %vm3245_vm7, %v3431_v55 }
0x20f0   :  { %7094 = vmatpush3.msk.msra.mxu1 %vm3437_vm9, %v3601_v56  ;;  %7095 = vmatprep.mubr.msk.f32.mxu1 %vm8403_vm1, %v8404_v14 }
0x20f1   :  { %v7537_v57 = vpop.eup %7536  ;;  %7103 = vmatprep.subr.mxu1 %v8404_v14 }
0x20f2   :  { %v3599_v58 = vmul.f32 %v7537_v57, %v7533_v48  ;;  %v3824_v63 = vpop.permute.xlu0 %3823  ;;  %v6654_v48 = vld [vmem:[#allocation27] ss:$0 sm:$0xff] }
0x20f4   :  { %7096 = vmatmul.mubr.msk.f32.vlgmr.msra.gmra.mrb[34].mxu1 %vm3245_vm7, %v3599_v58 }
0x20f5   :  { %7105 = vmatprep.mubr.msk.f32.mxu1 %vm8403_vm1, %v8404_v14  ;;  %7104 = vmatpush3.msra.mxu1 %v652_v59 }
0x20f6   :  { %7113 = vmatprep.subr.mxu1 %v8404_v14 }
0x21c2   :  { %v3506_v60 = vpop.f32.mrb[32].mxu1 }
0x21c3   :  { %v7087_v61 = vpop.f32.mrb[33].mxu1  ;;  %7106 = vmatmul.mubr.msk.f32.vlgmr.msra.gmra.mrb[36].mxu1 %vm825_vm2, %v3506_v60  ;;  %v620_v60 = vld [vmem:[%s9728_s15] sm:$0xff] }
0x21c4   :  { %7115 = vmatprep.mubr.msk.f32.mxu1 %vm8403_vm1, %v8404_v14  ;;  %v621_v61 = vld [vmem:[%s9728_s15 + $0x8] sm:$0xff] }
0x21c7   :  { %v3673_v62 = vpop.f32.mrb[34].mxu1 }
0x21c8   :  { %v7097_v25 = vpop.f32.mrb[35].mxu1  ;;  %7101 = vmatmul.mubr.msk.f32.vlgmr.msra.gmra.mrb[34].mxu0 %vm825_vm2, %v3673_v62  ;;  %v629_v62 = vld [vmem:[%s9729_s24 + $0x8] sm:$0xff] }
0x21c9   :  { %7109 = vmatpush3.xpose.msk.msra.mxu0 %vm825_vm2, %v3826_v18  ;;  %7110 = vmatprep.mubr.msk.f32.mxu0 %vm8403_vm1, %v8404_v14  ;;  %v7338_v18 = vpack.c.bf16 %v621_v61, %v620_v60  ;;  %v622_v25 = vld [vmem:[%s9728_s15 + $0x10] sm:$0xff] }
0x21ca   :  { %7118 = vmatprep.subr.mxu0 %v8404_v14 }
0x21cc   :  { %7111 = vmatmul.mubr.msk.f32.vlgmr.msra.gmra.mrb[36].mxu0 %vm825_vm2, %v3824_v63 }
0x21cd   :  { %7120 = vmatprep.mubr.msk.f32.mxu0 %vm8403_vm1, %v8404_v14  ;;  %7119 = vmatpush3.msra.mxu0 %v654_v27 }
0x21ce   :  { %7128 = vmatprep.subr.mxu0 %v8404_v14 }
0x2296   :  { %v3819_v0 = vpop.f32.mrb[36].mxu1 }
0x2297   :  { %v7107_v1 = vpop.f32.mrb[37].mxu1 }
0x229b   :  { %v3746_v2 = vpop.f32.mrb[34].mxu0 }
0x229c   :  { %v3820_v3 = vadd.f32 %v3819_v0, %v3746_v2  ;;  %v7102_v4 = vpop.f32.mrb[35].mxu0  ;;  %v623_v0 = vld [vmem:[%s9728_s15 + $0x18] sm:$0xff]  ;;  %v630_v2 = vld [vmem:[%s9729_s24 + $0x10] sm:$0xff] }
0x229d   :  { %v7341_v1 = vpack.c.bf16 %v623_v0, %v622_v25  ;;  %v706_v4 = vld [vmem:[%s8705_s3] sm:$0x1f]  ;;  %s9730_s3 = sld [smem:[#allocation79_spill]] }
0x229f   :  { %v3897_v5 = vpop.f32.mrb[36].mxu0 }
0x22a0   :  { %v3901_v6 = vmul.f32 0.35355338, %v3897_v5  ;;  %v7112_v7 = vpop.f32.mrb[37].mxu0 }
0x22a2   :  { %v3902_v8 = vsel %vm3420_vm8, %v3901_v6, -inf }
0x22a3   :  { %3903 = vmax.xlane.f32.xlu0 %v3902_v8 }
0x22b9   :  { %3913 = vrot.lane.b32.xlu0 %v9142_v29, %s8412_s8 }
0x22bd   :  { %4064 = vrot.lane.b32.xlu0 %v9142_v29, %s8413_s26 }
0x2330   :  { %v3904_v11 = vpop.xlane.xlu0 %3903 }
0x2331   :  { %v3905_v12 = vsub.f32 %v3901_v6, %v3904_v11 }
0x2333   :  { %v3906_v13 = vmul.f32 1.442695, %v3905_v12  ;;  %v6655_v12 = vld [vmem:[#allocation31] ss:$0 sm:$0xff] }
0x2334   :  { %v3914_v15 = vpop.permute.xlu0 %3913 }
0x2335   :  { %7538 = vpow2.f32 %v3906_v13  ;;  %7114 = vmatpush3.msk.msra.mxu1 %vm3437_vm9, %v3914_v15  ;;  %v6656_v15 = vld [vmem:[#allocation30] ss:$0 sm:$0xff] }
0x2336   :  { %7123 = vmatprep.subr.mxu1 %v8404_v14 }
0x2338   :  { %v4065_v26 = vpop.permute.xlu0 %4064 }
0x233f   :  { %v7539_v16 = vpop.eup %7538 }
0x2340   :  { %v3908_v17 = vsel %vm3420_vm8, %v7539_v16, 0.0 }
0x2341   :  { %3909 = vadd.xlane.f32.xlu1 %v3908_v17 }
0x2352   :  { %4066 = vrot.lane.b32.xlu1 %v9142_v29, %s8414_s21 }
0x23ce   :  { %v3910_v20 = vpop.xlane.xlu1 %3909 }
0x23cf   :  { %7540 = vrcp.f32 %v3910_v20  ;;  %v6659_v20 = vld [vmem:[#allocation13] ss:$0 sm:$0xff] }
0x23d2   :  { %v4067_v24 = vpop.permute.xlu1 %4066 }
0x23d9   :  { %v7541_v22 = vpop.eup %7540 }
0x23da   :  { %v3912_v23 = vmul.f32 %v7541_v22, %v7539_v16 }
0x23dc   :  { %7116 = vmatmul.mubr.msk.f32.vlgmr.msra.gmra.mrb[38].mxu1 %vm3245_vm7, %v3912_v23 }
0x23dd   :  { %7124 = vmatpush3.xpose.msk.msra.mxu1 %vm825_vm2, %v4067_v24  ;;  %7125 = vmatprep.mubr.msk.f32.mxu1 %vm8403_vm1, %v8404_v14 }
0x23de   :  { %7133 = vmatprep.subr.mxu1 %v8404_v14 }
0x23e0   :  { %7126 = vmatmul.mubr.msk.f32.vlgmr.msra.gmra.mrb[40].mxu1 %vm825_vm2, %v4065_v26  ;;  %v6657_v26 = vld [vmem:[#allocation16] ss:$0 sm:$0xff] }
0x23e1   :  { %7135 = vmatprep.mubr.msk.f32.mxu1 %vm8403_vm1, %v8404_v14  ;;  %7134 = vmatpush3.msra.mxu1 %v655_v42 }
0x23e2   :  { %7337 = vmatprep.subr.bf16.mxu1 %v8402_v10 }
0x24af   :  { %v3986_v30 = vpop.f32.mrb[38].mxu1 }
0x24b0   :  { %v7117_v31 = vpop.f32.mrb[39].mxu1  ;;  %7121 = vmatmul.mubr.msk.f32.vlgmr.msra.gmra.mrb[38].mxu0 %vm825_vm2, %v3986_v30 }
0x24b1   :  { %7130 = vmatprep.mubr.msk.f32.mxu0 %vm8403_vm1, %v8404_v14 }
0x24b3   :  { %v4138_v32 = vpop.f32.mrb[40].mxu1 }
0x24b4   :  { %v4142_v33 = vmul.f32 0.35355338, %v4138_v32  ;;  %v7127_v34 = vpop.f32.mrb[41].mxu1 }
0x24b6   :  { %v4143_v35 = vsel %vm3420_vm8, %v4142_v33, -inf }
0x24b7   :  { %4144 = vmax.xlane.f32.xlu0 %v4143_v35 }
0x24cd   :  { %4154 = vrot.lane.b32.xlu0 %v9142_v29, %s8415_s28 }
0x2544   :  { %v4145_v36 = vpop.xlane.xlu0 %4144 }
0x2545   :  { %v4146_v37 = vsub.f32 %v4142_v33, %v4145_v36 }
0x2547   :  { %v4147_v38 = vmul.f32 1.442695, %v4146_v37 }
0x2548   :  { %v4155_v39 = vpop.permute.xlu0 %4154 }
0x2549   :  { %7542 = vpow2.f32 %v4147_v38  ;;  %7129 = vmatpush3.msk.msra.mxu0 %vm3437_vm9, %v4155_v39 }
0x254a   :  { %7331 = vmatprep.subr.bf16.mxu0 %v8402_v10 }
0x2553   :  { %v7543_v40 = vpop.eup %7542 }
0x2554   :  { %v4149_v41 = vsel %vm3420_vm8, %v7543_v40, 0.0 }
0x2555   :  { %4150 = vadd.xlane.f32.xlu1 %v4149_v41 }
0x2583   :  { %v4059_v43 = vpop.f32.mrb[38].mxu0 }
0x2584   :  { %v4063_v44 = vadd.f32 %v4059_v43, %v3820_v3  ;;  %v7122_v29 = vpop.f32.mrb[39].mxu0  ;;  %v631_v3 = vld [vmem:[%s9729_s24 + $0x18] sm:$0xff] }
0x2585   :  { %v7335_v5 = vpack.c.bf16 %v631_v3, %v630_v2 }
0x25e2   :  { %v4151_v21 = vpop.xlane.xlu1 %4150 }
0x25e3   :  { %7544 = vrcp.f32 %v4151_v21 }
0x25ed   :  { %v7545_v45 = vpop.eup %7544 }
0x25ee   :  { %v4153_v46 = vmul.f32 %v7545_v45, %v7543_v40 }
0x25f0   :  { %7131 = vmatmul.mubr.msk.f32.vlgmr.msra.gmra.mrb[40].mxu0 %vm3245_vm7, %v4153_v46 }
0x25f1   :  { %7146 = vmatprep.mubr.msk.f32.mxu0 %vm8403_vm1, %v8404_v14 }
0x26c3   :  { %v4227_v28 = vpop.f32.mrb[40].mxu0 }
0x26c4   :  { %v7132_v47 = vpop.f32.mrb[41].mxu0  ;;  %7136 = vmatmul.mubr.msk.f32.vlgmr.msra.gmra.mrb[42].mxu1 %vm825_vm2, %v4227_v28 }
0x26c5   :  { %7157 = vmatprep.mubr.msk.f32.mxu1 %vm8403_vm1, %v8404_v14  ;;  %7339 = vmatpush3.bf16.msra.mxu1 %v7338_v18 }
0x26c6   :  { %7340 = vmatprep.subr.bf16.mxu1 %v8402_v10 }
0x26c9   :  { %7342 = vmatpush3.bf16.msra.mxu1 %v7341_v1 }
0x26ca   :  { %7165 = vmatprep.subr.mxu1 %v8404_v14 }
0x26cc   :  { %7158 = vmatmul.mubr.msk.f32.vlgmr.msra.gmra.mrb[44].mxu1 %vm707_vm0, %v706_v4 }
0x26cd   :  { %7167 = vmatprep.mubr.msk.f32.mxu1 %vm8403_vm1, %v8404_v14 }
0x2797   :  { %v4300_v49 = vpop.f32.mrb[42].mxu1 }
0x2798   :  { %v4304_v50 = vadd.f32 %v4300_v49, %v4063_v44  ;;  %v7137_v51 = vpop.f32.mrb[43].mxu1 }
0x279a   :  { %v4311_v52 = vadd.f32 %v6654_v48, %v4304_v50 }
0x279c   :  { %v4312_v53 = vadd.f32 %v4311_v52, %v9132_v19  ;;  %v628_v19 = vld [vmem:[%s9729_s24] sm:$0xff] }
0x279d   :  { %v7332_v63 = vpack.c.bf16 %v629_v62, %v628_v19 }
0x279e   :  { %v4313_v54 = vsel %vm3247_vm6, %v4312_v53, 0.0 }
0x279f   :  { %4314 = vadd.xlane.f32.xlu1 %v4313_v54  ;;  %7333 = vmatpush3.bf16.msra.mxu0 %v7332_v63  ;;  %v4494_v22 = vpop.f32.mrb[44].mxu1 }
0x27a0   :  { %7334 = vmatprep.subr.bf16.mxu0 %v8402_v10  ;;  %v9260_v23 = vadd.f32 %v6659_v20, %v4494_v22  ;;  %v7159_v24 = vpop.f32.mrb[45].mxu1 }
0x27a3   :  { %7336 = vmatpush3.bf16.msra.mxu0 %v7335_v5 }
0x27a4   :  { %7160 = vmatprep.subr.mxu0 %v8404_v14 }
0x282c   :  { %v4315_v55 = vpop.xlane.xlu1 %4314 }
0x282d   :  { %v4316_v56 = vmul.f32 0.03125, %v4315_v55 }
0x282f   :  { %v4317_v57 = vsub.f32 %v4312_v53, %v4316_v56 }
0x2831   :  { %v4318_v58 = vmul.f32 %v4317_v57, %v4317_v57 }
0x2833   :  { %v4319_v59 = vsel %vm3247_vm6, %v4318_v58, 0.0  ;;  %v625_v58 = vld [vmem:[%s9730_s3 + $0x8] sm:$0xff] }
0x2834   :  { %4320 = vadd.xlane.f32.xlu1 %v4319_v59 }
0x2845   :  { %4668 = vrot.lane.b32.xlu1 %v9260_v23, %s8405_s30 }
0x28c1   :  { %v4321_v6 = vpop.xlane.xlu1 %4320 }
0x28c2   :  { %v4322_v7 = vmul.f32 0.03125, %v4321_v6 }
0x28c4   :  { %v4323_v8 = vadd.f32 1e-12, %v4322_v7 }
0x28c5   :  { %v4669_v32 = vpop.permute.xlu1 %4668 }
0x28c6   :  { %7546 = vrsqrt.f32 %v4323_v8 }
0x28d0   :  { %v7547_v11 = vpop.eup %7546 }
0x28d1   :  { %v4325_v13 = vmul.f32 %v7547_v11, %v4317_v57  ;;  %v624_v57 = vld [vmem:[%s9730_s3] sm:$0xff] }
0x28d3   :  { %v4332_v16 = vmul.f32 %v6655_v12, %v4325_v13 }
0x28d5   :  { %v9254_v17 = vadd.f32 %v6656_v15, %v4332_v16 }
0x28d7   :  { %7147 = vmatmul.mubr.msk.f32.vlgmr.msra.gmra.mrb[42].mxu0 %vm707_vm0, %v9254_v17 }
0x28d8   :  { %7162 = vmatprep.mubr.msk.f32.mxu0 %vm8403_vm1, %v8404_v14  ;;  %7161 = vmatpush3.xpose.msk.msra.mxu0 %vm825_vm2, %v9260_v23 }
0x28d9   :  { %7170 = vmatprep.subr.mxu0 %v8404_v14 }
0x29aa   :  { %v4415_v27 = vpop.f32.mrb[42].mxu0 }
0x29ab   :  { %v9267_v30 = vadd.f32 %v6657_v26, %v4415_v27  ;;  %v7148_v31 = vpop.f32.mrb[43].mxu0  ;;  %v626_v27 = vld [vmem:[%s9730_s3 + $0x10] sm:$0xff] }
0x29ad   :  { %4666 = vrot.lane.b32.xlu0 %v9267_v30, %s8405_s30  ;;  %7163 = vmatmul.mubr.msk.f32.vlgmr.msra.gmra.mrb[44].mxu0 %vm825_vm2, %v9267_v30  ;;  %s9732_s30 = sld [smem:[#allocation71_spill]] }
0x29ae   :  { %7171 = vmatpush3.xpose.msk.msra.mxu0 %vm825_vm2, %v4669_v32  ;;  %7172 = vmatprep.mubr.msk.f32.mxu0 %vm8403_vm1, %v8404_v14 }
0x29af   :  { %7180 = vmatprep.subr.mxu0 %v8404_v14 }
0x2a1f   :  { %v4667_v33 = vpop.permute.xlu0 %4666 }
0x2a20   :  { %7173 = vmatmul.mubr.msk.f32.vlgmr.msra.gmra.mrb[46].mxu0 %vm825_vm2, %v4667_v33 }
0x2a21   :  { %7182 = vmatprep.mubr.msk.f32.mxu0 %vm8403_vm1, %v8404_v14  ;;  %7181 = vmatpush3.msra.mxu0 %v625_v58 }
0x2a22   :  { %7190 = vmatprep.subr.mxu0 %v8404_v14 }
0x2a80   :  { %v4570_v34 = vpop.f32.mrb[44].mxu0 }
0x2a81   :  { %v4574_v35 = vmul.f32 0.35355338, %v4570_v34  ;;  %v7164_v36 = vpop.f32.mrb[45].mxu0 }
0x2a83   :  { %v4576_v37 = vsel %vm4575_vm10, %v4574_v35, -inf }
0x2a84   :  { %4577 = vmax.xlane.f32.xlu0 %v4576_v37 }
0x2af3   :  { %v4740_v38 = vpop.f32.mrb[46].mxu0 }
0x2af4   :  { %v4744_v39 = vmul.f32 0.35355338, %v4740_v38  ;;  %v7174_v40 = vpop.f32.mrb[47].mxu0 }
0x2af6   :  { %v4745_v41 = vsel %vm4575_vm10, %v4744_v39, -inf }
0x2af7   :  { %4746 = vmax.xlane.f32.xlu1 %v4745_v41 }
0x2b08   :  { %4756 = vrot.lane.b32.xlu1 %v9260_v23, %s8407_s18  ;;  %s9734_s18 = sld [smem:[#allocation74_spill]] }
0x2b0c   :  { %4981 = vrot.lane.b32.xlu1 %v9260_v23, %s8411_s6 }
0x2b11   :  { %v4578_v42 = vpop.xlane.xlu0 %4577 }
0x2b12   :  { %v4579_v43 = vsub.f32 %v4574_v35, %v4578_v42  ;;  %v627_v42 = vld [vmem:[%s9730_s3 + $0x18] sm:$0xff] }
0x2b14   :  { %v4580_v44 = vmul.f32 1.442695, %v4579_v43 }
0x2b16   :  { %7548 = vpow2.f32 %v4580_v44 }
0x2b20   :  { %v7549_v29 = vpop.eup %7548 }
0x2b21   :  { %v4582_v21 = vsel %vm4575_vm10, %v7549_v29, 0.0 }
0x2b22   :  { %4583 = vadd.xlane.f32.xlu0 %v4582_v21 }
0x2b84   :  { %v4747_v45 = vpop.xlane.xlu1 %4746 }
0x2b85   :  { %v4748_v46 = vsub.f32 %v4744_v39, %v4747_v45 }
0x2b87   :  { %v4749_v28 = vmul.f32 1.442695, %v4748_v46 }
0x2b88   :  { %v4757_v54 = vpop.permute.xlu1 %4756 }
0x2b89   :  { %7550 = vpow2.f32 %v4749_v28 }
0x2b8c   :  { %v4982_v18 = vpop.permute.xlu1 %4981 }
0x2b93   :  { %v7551_v47 = vpop.eup %7550 }
0x2b94   :  { %v4751_v48 = vsel %vm4575_vm10, %v7551_v47, 0.0 }
0x2b95   :  { %4752 = vadd.xlane.f32.xlu0 %v4751_v48 }
0x2bab   :  { %4587 = vrot.lane.b32.xlu0 %v9260_v23, %s8406_s14  ;;  %s9733_s14 = sld [smem:[#allocation84_spill]] }
0x2baf   :  { %4979 = vrot.lane.b32.xlu0 %v9267_v30, %s8411_s6  ;;  %v4584_v49 = vpop.xlane.xlu0 %4583 }
0x2bb0   :  { %7552 = vrcp.f32 %v4584_v49 }
0x2bba   :  { %v7553_v51 = vpop.eup %7552 }
0x2bbb   :  { %v4586_v52 = vmul.f32 %v7553_v51, %v7549_v29 }
0x2c22   :  { %v4753_v50 = vpop.xlane.xlu0 %4752 }
0x2c23   :  { %7554 = vrcp.f32 %v4753_v50 }
0x2c26   :  { %v4588_v53 = vpop.permute.xlu0 %4587 }
0x2c27   :  { %7166 = vmatpush3.msk.msra.mxu1 %vm4593_vm11, %v4588_v53 }
0x2c28   :  { %7168 = vmatmul.mubr.msk.f32.vlgmr.msra.gmra.mrb[46].mxu1 %vm4589_vm12, %v4586_v52  ;;  %7175 = vmatprep.subr.mxu1 %v8404_v14 }
0x2c29   :  { %7176 = vmatpush3.msk.msra.mxu1 %vm4593_vm11, %v4757_v54  ;;  %7177 = vmatprep.mubr.msk.f32.mxu1 %vm8403_vm1, %v8404_v14 }
0x2c2a   :  { %7185 = vmatprep.subr.mxu1 %v8404_v14  ;;  %v4980_v62 = vpop.permute.xlu0 %4979 }
0x2c2d   :  { %v7555_v55 = vpop.eup %7554 }
0x2c2e   :  { %v4755_v56 = vmul.f32 %v7555_v55, %v7551_v47  ;;  %v6681_v47 = vld [vmem:[#allocation15] ss:$0 sm:$0xff] }
0x2c30   :  { %7178 = vmatmul.mubr.msk.f32.vlgmr.msra.gmra.mrb[48].mxu1 %vm4589_vm12, %v4755_v56 }
0x2c31   :  { %7187 = vmatprep.mubr.msk.f32.mxu1 %vm8403_vm1, %v8404_v14  ;;  %7186 = vmatpush3.msra.mxu1 %v624_v57 }
0x2c32   :  { %7195 = vmatprep.subr.mxu1 %v8404_v14 }
0x2cfb   :  { %v4662_v59 = vpop.f32.mrb[46].mxu1 }
0x2cfc   :  { %v7169_v60 = vpop.f32.mrb[47].mxu1  ;;  %7188 = vmatmul.mubr.msk.f32.vlgmr.msra.gmra.mrb[50].mxu1 %vm825_vm2, %v4662_v59  ;;  %v633_v59 = vld [vmem:[%s9731_s16] sm:$0xff] }
0x2cfd   :  { %7197 = vmatprep.mubr.msk.f32.mxu1 %vm8403_vm1, %v8404_v14  ;;  %v634_v60 = vld [vmem:[%s9731_s16 + $0x8] sm:$0xff] }
0x2d03   :  { %v4829_v61 = vpop.f32.mrb[48].mxu1 }
0x2d04   :  { %v7179_v19 = vpop.f32.mrb[49].mxu1  ;;  %7183 = vmatmul.mubr.msk.f32.vlgmr.msra.gmra.mrb[48].mxu0 %vm825_vm2, %v4829_v61  ;;  %v7344_v61 = vpack.c.bf16 %v634_v60, %v633_v59  ;;  %v610_v60 = vld [vmem:[%s9734_s18 + $0x8] sm:$0xff] }
0x2d05   :  { %7191 = vmatpush3.xpose.msk.msra.mxu0 %vm825_vm2, %v4982_v18  ;;  %7192 = vmatprep.mubr.msk.f32.mxu0 %vm8403_vm1, %v8404_v14  ;;  %v635_v18 = vld [vmem:[%s9731_s16 + $0x10] sm:$0xff] }
0x2d06   :  { %7200 = vmatprep.subr.mxu0 %v8404_v14 }
0x2d08   :  { %7193 = vmatmul.mubr.msk.f32.vlgmr.msra.gmra.mrb[50].mxu0 %vm825_vm2, %v4980_v62 }
0x2d09   :  { %7202 = vmatprep.mubr.msk.f32.mxu0 %vm8403_vm1, %v8404_v14  ;;  %7201 = vmatpush3.msra.mxu0 %v626_v27  ;;  %v644_v27 = vld [vmem:[%s9733_s14 + $0x20] sm:$0xff] }
0x2d0a   :  { %7210 = vmatprep.subr.mxu0 %v8404_v14 }
0x2dcf   :  { %v4975_v25 = vpop.f32.mrb[50].mxu1 }
0x2dd0   :  { %v7189_v63 = vpop.f32.mrb[51].mxu1 }
0x2dd7   :  { %v4902_v0 = vpop.f32.mrb[48].mxu0 }
0x2dd8   :  { %v4976_v1 = vadd.f32 %v4975_v25, %v4902_v0  ;;  %v7184_v2 = vpop.f32.mrb[49].mxu0 }
0x2ddb   :  { %v5053_v3 = vpop.f32.mrb[50].mxu0 }
0x2ddc   :  { %v5057_v4 = vmul.f32 0.35355338, %v5053_v3  ;;  %v7194_v5 = vpop.f32.mrb[51].mxu0  ;;  %v599_v3 = vld [vmem:[%s9732_s30] sm:$0xff] }
0x2ddd   :  { %v6683_v5 = vld [vmem:[#allocation18] ss:$0 sm:$0xff] }
0x2dde   :  { %v5058_v6 = vsel %vm4575_vm10, %v5057_v4, -inf }
0x2ddf   :  { %5059 = vmax.xlane.f32.xlu1 %v5058_v6 }
0x2df0   :  { %5222 = vrot.lane.b32.xlu1 %v9260_v23, %s8413_s26 }
0x2df4   :  { %5220 = vrot.lane.b32.xlu1 %v9267_v30, %s8413_s26 }
0x2e6c   :  { %v5060_v7 = vpop.xlane.xlu1 %5059 }
0x2e6d   :  { %v5061_v8 = vsub.f32 %v5057_v4, %v5060_v7  ;;  %v600_v4 = vld [vmem:[%s9732_s30 + $0x8] sm:$0xff] }
0x2e6e   :  { %v7362_v7 = vpack.c.bf16 %v600_v4, %v599_v3  ;;  %v589_v4 = vld [vmem:[%s9736_s13 + $0x8] sm:$0x7] }
0x2e6f   :  { %v5062_v11 = vmul.f32 1.442695, %v5061_v8 }
0x2e70   :  { %v5223_v22 = vpop.permute.xlu1 %5222 }
0x2e71   :  { %7556 = vpow2.f32 %v5062_v11  ;;  %v601_v11 = vld [vmem:[%s9732_s30 + $0x10] sm:$0xff] }
0x2e74   :  { %v5221_v26 = vpop.permute.xlu1 %5220 }
0x2e7b   :  { %v7557_v12 = vpop.eup %7556 }
0x2e7c   :  { %v5064_v13 = vsel %vm4575_vm10, %v7557_v12, 0.0 }
0x2e7d   :  { %5065 = vadd.xlane.f32.xlu0 %v5064_v13 }
0x2e93   :  { %5069 = vrot.lane.b32.xlu0 %v9260_v23, %s8410_s23 }
0x2f0a   :  { %v5066_v15 = vpop.xlane.xlu0 %5065 }
0x2f0b   :  { %7558 = vrcp.f32 %v5066_v15  ;;  %v640_v15 = vld [vmem:[%s9733_s14] sm:$0xff] }
0x2f0e   :  { %v5070_v16 = vpop.permute.xlu0 %5069 }
0x2f0f   :  { %7196 = vmatpush3.msk.msra.mxu1 %vm4593_vm11, %v5070_v16  ;;  %v641_v16 = vld [vmem:[%s9733_s14 + $0x8] sm:$0xff] }
0x2f10   :  { %7205 = vmatprep.subr.mxu1 %v8404_v14 }
0x2f15   :  { %v7559_v20 = vpop.eup %7558 }
0x2f16   :  { %v5068_v24 = vmul.f32 %v7559_v20, %v7557_v12  ;;  %v602_v12 = vld [vmem:[%s9732_s30 + $0x18] sm:$0xff]  ;;  %v7350_v20 = vpack.c.bf16 %v641_v16, %v640_v15 }
0x2f17   :  { %v7365_v13 = vpack.c.bf16 %v602_v12, %v601_v11  ;;  %v6689_v12 = vld [vmem:[#allocation24] ss:$0 sm:$0xff] }
0x2f18   :  { %7198 = vmatmul.mubr.msk.f32.vlgmr.msra.gmra.mrb[52].mxu1 %vm4589_vm12, %v5068_v24  ;;  %v643_v24 = vld [vmem:[%s9733_s14 + $0x18] sm:$0xff] }
0x2f19   :  { %7206 = vmatpush3.xpose.msk.msra.mxu1 %vm825_vm2, %v5223_v22  ;;  %7207 = vmatprep.mubr.msk.f32.mxu1 %vm8403_vm1, %v8404_v14  ;;  %v642_v22 = vld [vmem:[%s9733_s14 + $0x10] sm:$0xff] }
0x2f1a   :  { %7215 = vmatprep.subr.mxu1 %v8404_v14 }
0x2f1c   :  { %7208 = vmatmul.mubr.msk.f32.vlgmr.msra.gmra.mrb[54].mxu1 %vm825_vm2, %v5221_v26  ;;  %v7353_v26 = vpack.c.bf16 %v643_v24, %v642_v22  ;;  %v8416_v22 = vmov 1966171168  }
0x2f1d   :  { %7217 = vmatprep.mubr.msk.f32.mxu1 %vm8403_vm1, %v8404_v14  ;;  %7216 = vmatpush3.msra.mxu1 %v627_v42  ;;  %v5935_v24 = vunpack.c.l.s4 %v8416_v22 }
0x2f1e   :  { %7349 = vmatprep.subr.bf16.mxu1 %v8402_v10 }
0x2feb   :  { %v5142_v30 = vpop.f32.mrb[52].mxu1 }
0x2fec   :  { %v7199_v31 = vpop.f32.mrb[53].mxu1  ;;  %7203 = vmatmul.mubr.msk.f32.vlgmr.msra.gmra.mrb[52].mxu0 %vm825_vm2, %v5142_v30  ;;  %v645_v30 = vld [vmem:[%s9733_s14 + $0x28] sm:$0xff] }
0x2fed   :  { %7212 = vmatprep.mubr.msk.f32.mxu0 %vm8403_vm1, %v8404_v14  ;;  %v7356_v31 = vpack.c.bf16 %v645_v30, %v644_v27  ;;  %v5936_v30 = vunpack.c.0.s8 %v5935_v24 }
0x2fef   :  { %v5294_v32 = vpop.f32.mrb[54].mxu1 }
0x2ff0   :  { %v5298_v33 = vmul.f32 0.35355338, %v5294_v32  ;;  %v7209_v34 = vpop.f32.mrb[55].mxu1  ;;  %v5937_v32 = vlaneseq }
0x2ff2   :  { %v5299_v35 = vsel %vm4575_vm10, %v5298_v33, -inf }
0x2ff3   :  { %5300 = vmax.xlane.f32.xlu0 %v5299_v35  ;;  %v9384_v35 = vshrl.u32 %v5937_v32, 7 }
0x3009   :  { %5310 = vrot.lane.b32.xlu0 %v9260_v23, %s8414_s21 }
0x3080   :  { %v5301_v36 = vpop.xlane.xlu0 %5300 }
0x3081   :  { %v5302_v37 = vsub.f32 %v5298_v33, %v5301_v36  ;;  %v647_v33 = vld [vmem:[%s9733_s14 + $0x38] sm:$0xff]  ;;  %v6360_v36 = vand.u32 127, %v5937_v32  ;;  %v5939_v32 = vsub.s32 %v5936_v30, %v9384_v35 }
0x3083   :  { %v5303_v38 = vmul.f32 1.442695, %v5302_v37  ;;  %v9388_v37 = vsub.s32 %v6360_v36, %v9384_v35 }
0x3084   :  { %v5311_v39 = vpop.permute.xlu0 %5310 }
0x3085   :  { %7560 = vpow2.f32 %v5303_v38  ;;  %7211 = vmatpush3.msk.msra.mxu0 %vm4593_vm11, %v5311_v39  ;;  %v6684_v38 = vld [vmem:[#allocation21] ss:$0 sm:$0xff] }
0x3086   :  { %7343 = vmatprep.subr.bf16.mxu0 %v8402_v10 }
0x308f   :  { %v7561_v40 = vpop.eup %7560 }
0x3090   :  { %v5305_v41 = vsel %vm4575_vm10, %v7561_v40, 0.0 }
0x3091   :  { %5306 = vadd.xlane.f32.xlu1 %v5305_v41 }
0x30bf   :  { %v5215_v43 = vpop.f32.mrb[52].mxu0 }
0x30c0   :  { %v5219_v44 = vadd.f32 %v5215_v43, %v4976_v1  ;;  %v7204_v23 = vpop.f32.mrb[53].mxu0  ;;  %v6682_v1 = vld [vmem:[#allocation19] ss:$0 sm:$0xff] }
0x311e   :  { %v5307_v29 = vpop.xlane.xlu1 %5306 }
0x311f   :  { %7562 = vrcp.f32 %v5307_v29 }
0x3129   :  { %v7563_v21 = vpop.eup %7562 }
0x312a   :  { %v5309_v45 = vmul.f32 %v7563_v21, %v7561_v40 }
0x312c   :  { %7213 = vmatmul.mubr.msk.f32.vlgmr.msra.gmra.mrb[54].mxu0 %vm4589_vm12, %v5309_v45 }
0x312d   :  { %7228 = vmatprep.mubr.msk.f32.mxu0 %vm8403_vm1, %v8404_v14  ;;  %7345 = vmatpush3.bf16.msra.mxu0 %v7344_v61 }
0x312e   :  { %7346 = vmatprep.subr.bf16.mxu0 %v8402_v10 }
0x31ff   :  { %v5383_v46 = vpop.f32.mrb[54].mxu0 }
0x3200   :  { %v7214_v28 = vpop.f32.mrb[55].mxu0  ;;  %7218 = vmatmul.mubr.msk.f32.vlgmr.msra.gmra.mrb[56].mxu1 %vm825_vm2, %v5383_v46 }
0x3201   :  { %7247 = vmatprep.mubr.msk.f32.mxu1 %vm8403_vm1, %v8404_v14  ;;  %7351 = vmatpush3.bf16.msra.mxu1 %v7350_v20 }
0x3202   :  { %7352 = vmatprep.subr.bf16.mxu1 %v8402_v10 }
0x3205   :  { %7354 = vmatpush3.bf16.msra.mxu1 %v7353_v26  ;;  %v6690_v26 = vld [vmem:[#allocation6] ss:$0 sm:$0xff] }
0x3206   :  { %7355 = vmatprep.subr.bf16.mxu1 %v8402_v10 }
0x3209   :  { %7357 = vmatpush3.bf16.msra.mxu1 %v7356_v31 }
0x320a   :  { %7358 = vmatprep.subr.bf16.mxu1 %v8402_v10 }
0x32d3   :  { %v5456_v48 = vpop.f32.mrb[56].mxu1 }
0x32d4   :  { %v5460_v49 = vadd.f32 %v5456_v48, %v5219_v44  ;;  %v7219_v50 = vpop.f32.mrb[57].mxu1 }
0x32d6   :  { %v5467_v51 = vadd.f32 %v6681_v47, %v5460_v49  ;;  %v6686_v49 = vld [vmem:[#allocation22] ss:$0 sm:$0xff] }
0x32d8   :  { %v5468_v52 = vadd.f32 %v5467_v51, %v9254_v17  ;;  %v636_v17 = vld [vmem:[%s9731_s16 + $0x18] sm:$0xff] }
0x32d9   :  { %v7347_v19 = vpack.c.bf16 %v636_v17, %v635_v18  ;;  %v611_v18 = vld [vmem:[%s9734_s18 + $0x10] sm:$0xff]  ;;  %v612_v17 = vld [vmem:[%s9734_s18 + $0x18] sm:$0xff] }
0x32da   :  { %v5469_v53 = vsel %vm3247_vm6, %v5468_v52, 0.0 }
0x32db   :  { %5470 = vadd.xlane.f32.xlu1 %v5469_v53  ;;  %7348 = vmatpush3.bf16.msra.mxu0 %v7347_v19  ;;  %v604_v19 = vld [vmem:[%s9735_s19] sm:$0xff] }
0x32dc   :  { %7361 = vmatprep.subr.bf16.mxu0 %v8402_v10 }
0x3368   :  { %v5471_v54 = vpop.xlane.xlu1 %5470 }
0x3369   :  { %v5472_v55 = vmul.f32 0.03125, %v5471_v54 }
0x336b   :  { %v5473_v56 = vsub.f32 %v5468_v52, %v5472_v55 }
0x336d   :  { %v5474_v57 = vmul.f32 %v5473_v56, %v5473_v56 }
0x336f   :  { %v5475_v58 = vsel %vm3247_vm6, %v5474_v57, 0.0 }
0x3370   :  { %5476 = vadd.xlane.f32.xlu1 %v5475_v58 }
0x33fd   :  { %v5477_v62 = vpop.xlane.xlu1 %5476 }
0x33fe   :  { %v5478_v25 = vmul.f32 0.03125, %v5477_v62  ;;  %v7379_v62 = vpack.c.bf16 %v612_v17, %v611_v18 }
0x3400   :  { %v5479_v63 = vadd.f32 1e-12, %v5478_v25  ;;  %v605_v25 = vld [vmem:[%s9735_s19 + $0x8] sm:$0xff] }
0x3402   :  { %7564 = vrsqrt.f32 %v5479_v63  ;;  %v7367_v63 = vpack.c.bf16 %v605_v25, %v604_v19 }
0x340c   :  { %v7565_v0 = vpop.eup %7564 }
0x340d   :  { %v5481_v2 = vmul.f32 %v7565_v0, %v5473_v56  ;;  %v606_v0 = vld [vmem:[%s9735_s19 + $0x10] sm:$0xff] }
0x340f   :  { %v5488_v6 = vmul.f32 %v6682_v1, %v5481_v2  ;;  %v607_v1 = vld [vmem:[%s9735_s19 + $0x18] sm:$0xff]  ;;  %v588_v2 = vld [vmem:[%s9736_s13] sm:$0xff] }
0x3410   :  { %v7371_v3 = vpack.c.bf16 %v607_v1, %v606_v0 }
0x3411   :  { %v5495_v8 = vadd.f32 %v6683_v5, %v5488_v6 }
0x3413   :  { %7229 = vmatmul.mubr.msk.f32.vlgmr.msra.gmra.mrb[56].mxu0 %vm707_vm0, %v5495_v8 }
0x3414   :  { %7363 = vmatpush3.bf16.msra.mxu0 %v7362_v7  ;;  %7258 = vmatprep.mubr.msk.f32.mxu0 %vm8403_vm1, %v8404_v14 }
0x3415   :  { %7364 = vmatprep.subr.bf16.mxu0 %v8402_v10 }
0x3418   :  { %7366 = vmatpush3.bf16.msra.mxu0 %v7365_v13 }
0x3419   :  { %7368 = vmatprep.subr.bf16.mxu0 %v7367_v63 }
0x341b   :  { %7259 = vmatmul.mubr.msk.f32.vlgmr.msra.gmra.mrb[58].mxu0 %vm707_vm0, %v9123_v9  ;;  %v646_v9 = vld [vmem:[%s9733_s14 + $0x30] sm:$0xff] }
0x341c   :  { %v7359_v34 = vpack.c.bf16 %v647_v33, %v646_v9  ;;  %7370 = vmatpush3.bf16.msra.mxu0 %v7367_v63  ;;  %7269 = vmatprep.mubr.msk.f32.mxu0 %vm707_vm0, %v588_v2 }
0x341d   :  { %7372 = vmatprep.subr.bf16.mxu0 %v7371_v3 }
0x341e   :  { %7360 = vmatpush3.bf16.msra.mxu1 %v7359_v34 }
0x341f   :  { %7375 = vmatprep.subr.bf16.mxu1 %v8402_v10 }
0x3420   :  { %7374 = vmatpush3.bf16.msra.mxu0 %v7371_v3 }
0x3423   :  { %7270 = vmatmul.mubr.msk.f32.vlgmr.msra.gmra.mrb[60].mxu0 %vm707_vm0, %v589_v4 }
0x34e6   :  { %v5571_v39 = vpop.f32.mrb[56].mxu0 }
0x34e7   :  { %v5572_v40 = vadd.f32 %v6684_v38, %v5571_v39  ;;  %v7230_v41 = vpop.f32.mrb[57].mxu0  ;;  %v6695_v38 = vld [vmem:[#allocation9] ss:$0 sm:$0xff] }
0x34e9   :  { %v5575_v42 = vmul.f32 %v5572_v40, %v5572_v40 }
0x34eb   :  { %v5576_v43 = vmul.f32 %v5575_v42, %v5572_v40 }
0x34ed   :  { %v5577_v44 = vmul.f32 0.044715, %v5576_v43 }
0x34ee   :  { %v9390_v23 = vpop.f32.mrb[58].mxu0 }
0x34ef   :  { %v5578_v29 = vadd.f32 %v5577_v44, %v5572_v40  ;;  %v7260_v21 = vpop.f32.mrb[59].mxu0  ;;  %v5764_v27 = vadd.f32 %v6690_v26, %v9390_v23  ;;  %v6692_v23 = vld [vmem:[#allocation7] ss:$0 sm:$0xff] }
0x34f1   :  { %v5579_v45 = vmul.f32 0.7978846, %v5578_v29  ;;  %v5933_v31 = vcombine.high %v5764_v27, %v5764_v27  ;;  %v5940_v9 = vrot.slane %v5764_v27, %v5939_v32 }
0x34f3   :  { %7566 = vtanh.f32 %v5579_v45  ;;  %v5947_v33 = vrot.slane %v5933_v31, %v5939_v32  ;;  %v5948_v34 = vcombine.high %v5940_v9, %v5940_v9 }
0x34f5   :  { %v5949_v36 = vcombine.high %v5947_v33, %v5947_v33  ;;  %v9413_v43 = vrot.slane %v5947_v33, %v5939_v32  ;;  %v5970_v44 = vrot.slane %v5948_v34, %v5939_v32 }
0x34f6   :  { %v7271_v16 = vpop.f32.mrb[60].mxu0 }
0x34f7   :  { %v5845_v20 = vpop.f32.mrb[61].mxu0  ;;  %v9415_v29 = vrot.slane %v5949_v36, %v5939_v32 }
0x34fd   :  { %v7567_v46 = vpop.eup %7566 }
0x34fe   :  { %v5581_v28 = vadd.f32 1.0, %v7567_v46  ;;  %v9418_v46 = vsub.s32 0, %v9384_v35 }
0x3500   :  { %v5582_v47 = vmul.f32 0.5, %v5581_v28 }
0x3502   :  { %v5583_v48 = vmul.f32 %v5582_v47, %v5572_v40  ;;  %v5956_v40 = vrot.slane %v5940_v9, %v5939_v32 }
0x3504   :  { %7248 = vmatmul.mubr.msk.f32.vlgmr.msra.gmra.mrb[58].mxu1 %vm3064_vm5, %v5583_v48  ;;  %v5978_v45 = vcombine.high %v5956_v40, %v5956_v40  ;;  %v9422_v48 = vcombine.high %v9413_v43, %v9413_v43 }
0x3505   :  { %7280 = vmatprep.mubr.msk.f32.mxu1 %vm8403_vm1, %v8404_v14  ;;  %v609_v14 = vld [vmem:[%s9734_s18] sm:$0xff] }
0x3506   :  { %v7376_v61 = vpack.c.bf16 %v610_v60, %v609_v14 }
0x3508   :  { %7377 = vmatpush3.bf16.msra.mxu1 %v7376_v61 }
0x3509   :  { %7378 = vmatprep.subr.bf16.mxu1 %v8402_v10 }
0x350c   :  { %7380 = vmatpush3.bf16.msra.mxu1 %v7379_v62 }
0x35d7   :  { %v5659_v50 = vpop.f32.mrb[58].mxu1 }
0x35d8   :  { %v5660_v51 = vadd.f32 %v6686_v49, %v5659_v50  ;;  %v7249_v52 = vpop.f32.mrb[59].mxu1  ;;  %v5980_v49 = vcombine.high %v5970_v44, %v5970_v44  ;;  %v9426_v50 = vcombine.high %v9415_v29, %v9415_v29 }
0x35da   :  { %v5663_v53 = vadd.f32 %v5660_v51, %v5495_v8  ;;  %v6688_v8 = vld [vmem:[#allocation25] ss:$0 sm:$0xff]  ;;  %v9428_v51 = vadd.f32 %v6692_v23, %v5845_v20 }
0x35dc   :  { %v5664_v54 = vsel %vm3247_vm6, %v5663_v53, 0.0 }
0x35dd   :  { %5665 = vadd.xlane.f32.xlu1 %v5664_v54 }
0x366a   :  { %v5666_v55 = vpop.xlane.xlu1 %5665 }
0x366b   :  { %v5667_v56 = vmul.f32 0.03125, %v5666_v55 }
0x366d   :  { %v5668_v57 = vsub.f32 %v5663_v53, %v5667_v56 }
0x366f   :  { %v5669_v58 = vmul.f32 %v5668_v57, %v5668_v57 }
0x3671   :  { %v5670_v59 = vsel %vm3247_vm6, %v5669_v58, 0.0 }
0x3672   :  { %5671 = vadd.xlane.f32.xlu1 %v5670_v59 }
0x36ff   :  { %v5672_v5 = vpop.xlane.xlu1 %5671 }
0x3700   :  { %v5673_v6 = vmul.f32 0.03125, %v5672_v5 }
0x3702   :  { %v5674_v10 = vadd.f32 1e-12, %v5673_v6 }
0x3704   :  { %7568 = vrsqrt.f32 %v5674_v10 }
0x370e   :  { %v7569_v7 = vpop.eup %7568 }
0x370f   :  { %v5676_v11 = vmul.f32 %v7569_v7, %v5668_v57 }
0x3711   :  { %v5683_v13 = vmul.f32 %v6688_v8, %v5676_v11 }
0x3713   :  { %v5690_v15 = vadd.f32 %v6689_v12, %v5683_v13 }
0x3715   :  { %7281 = vmatmul.mubr.msk.f32.vlgmr.msra.gmra.mrb[60].mxu1 %vm707_vm0, %v5690_v15 }
0x37e8   :  { %v5928_v39 = vpop.f32.mrb[60].mxu1 }
0x37e9   :  { %v5929_v41 = vadd.f32 %v6695_v38, %v5928_v39  ;;  %v7282_v42 = vpop.f32.mrb[61].mxu1 }
0x37eb   :  { %v5997_v21 = vrot.slane %v5929_v41, %v5939_v32  ;;  %v9478_v41 = vld [vmem:[#allocation10] ss:$0 sm:$0xff] }
0x37ed   :  { %v5998_v28 = vcombine.high %v5997_v21, %v5997_v21  ;;  %v6005_v47 = vrot.slane %v5997_v21, %v5939_v32 }
0x37ef   :  { %v9430_v52 = vrot.slane %v5998_v28, %v5939_v32  ;;  %v9432_v53 = vcombine.high %v6005_v47, %v6005_v47  ;;  %v6020_v54 = vadd.f32 %v6005_v47, %v5970_v44  ;;  %v6017_v35 = vadd.f32 %v6005_v47, %v5956_v40 }
0x37f0   :  { %v6023_v55 = vadd.f32 %v6005_v47, %v5978_v45  ;;  %v6026_v56 = vadd.f32 %v6005_v47, %v5980_v49  ;;  %v6029_v57 = vadd.f32 %v6005_v47, %v9413_v43  ;;  %v6032_v58 = vadd.f32 %v6005_v47, %v9415_v29 }
0x37f1   :  { %v6080_v59 = vrot.slane %v6020_v54, %v9418_v46  ;;  %v6068_v14 = vrot.slane %v6017_v35, %v9418_v46  ;;  %v6018_v60 = vadd.f32 %v9430_v52, %v5956_v40  ;;  %v6019_v61 = vadd.f32 %v9432_v53, %v5956_v40 }
0x37f2   :  { %v6092_v18 = vrot.slane %v6023_v55, %v9418_v46  ;;  %v6104_v17 = vrot.slane %v6026_v56, %v9418_v46  ;;  %v6116_v19 = vrot.slane %v6029_v57, %v9418_v46  ;;  %v6128_v62 = vrot.slane %v6032_v58, %v9418_v46 }
0x37f3   :  { %v6188_v25 = vadd.f32 %v6080_v59, %v9428_v51  ;;  %v6185_v63 = vadd.f32 %v6068_v14, %v9428_v51  ;;  %v6072_v0 = vrot.slane %v6018_v60, %v9418_v46  ;;  %v6076_v1 = vrot.slane %v6019_v61, %v9418_v46 }
0x37f4   :  { %v6191_v2 = vadd.f32 %v6092_v18, %v9428_v51  ;;  %v6194_v3 = vadd.f32 %v6104_v17, %v9428_v51  ;;  %v6197_v4 = vadd.f32 %v6116_v19, %v9428_v51  ;;  %v6200_v5 = vadd.f32 %v6128_v62, %v9428_v51 }
0x37f5   :  { %7570 = vtanh.f32 %v6188_v25  ;;  %v6186_v6 = vadd.f32 %v6072_v0, %v9428_v51  ;;  %v6187_v10 = vadd.f32 %v6076_v1, %v9428_v51  ;;  %v6035_v7 = vadd.f32 %v6005_v47, %v9422_v48 }
0x37f6   :  { %7572 = vtanh.f32 %v6185_v63  ;;  %v6021_v8 = vadd.f32 %v9430_v52, %v5970_v44  ;;  %v6038_v11 = vadd.f32 %v6005_v47, %v9426_v50  ;;  %v6022_v12 = vadd.f32 %v9432_v53, %v5970_v44 }
0x37f7   :  { %7574 = vtanh.f32 %v6191_v2  ;;  %v6140_v13 = vrot.slane %v6035_v7, %v9418_v46  ;;  %v6028_v15 = vadd.f32 %v9432_v53, %v5980_v49  ;;  %v6024_v16 = vadd.f32 %v9430_v52, %v5978_v45 }
0x37f8   :  { %7576 = vtanh.f32 %v6194_v3  ;;  %v6084_v20 = vrot.slane %v6021_v8, %v9418_v46  ;;  %v6152_v22 = vrot.slane %v6038_v11, %v9418_v46  ;;  %v6088_v24 = vrot.slane %v6022_v12, %v9418_v46 }
0x37f9   :  { %7578 = vtanh.f32 %v6197_v4  ;;  %v6203_v26 = vadd.f32 %v6140_v13, %v9428_v51  ;;  %v6112_v27 = vrot.slane %v6028_v15, %v9418_v46  ;;  %v6096_v30 = vrot.slane %v6024_v16, %v9418_v46 }
0x37fa   :  { %7580 = vtanh.f32 %v6186_v6  ;;  %v6189_v31 = vadd.f32 %v6084_v20, %v9428_v51  ;;  %v6206_v32 = vadd.f32 %v6152_v22, %v9428_v51  ;;  %v6190_v9 = vadd.f32 %v6088_v24, %v9428_v51 }
0x37fb   :  { %v6196_v33 = vadd.f32 %v6112_v27, %v9428_v51  ;;  %v6192_v34 = vadd.f32 %v6096_v30, %v9428_v51  ;;  %v6034_v36 = vadd.f32 %v9432_v53, %v9415_v29  ;;  %v6025_v38 = vadd.f32 %v9432_v53, %v5978_v45 }
0x37fc   :  { %v6040_v39 = vadd.f32 %v9432_v53, %v9426_v50  ;;  %v6027_v40 = vadd.f32 %v9430_v52, %v5980_v49  ;;  %7582 = vtanh.f32 %v6187_v10  ;;  %v6030_v44 = vadd.f32 %v9430_v52, %v9413_v43 }
0x37fd   :  { %v6136_v42 = vrot.slane %v6034_v36, %v9418_v46  ;;  %v6033_v21 = vadd.f32 %v9430_v52, %v9415_v29  ;;  %7584 = vtanh.f32 %v6200_v5  ;;  %v6100_v23 = vrot.slane %v6025_v38, %v9418_v46 }
0x37fe   :  { %v6160_v45 = vrot.slane %v6040_v39, %v9418_v46  ;;  %v6108_v28 = vrot.slane %v6027_v40, %v9418_v46  ;;  %v6120_v54 = vrot.slane %v6030_v44, %v9418_v46  ;;  %7586 = vtanh.f32 %v6189_v31 }
0x37ff   :  { %v7571_v47 = vpop.eup %7570  ;;  %v6202_v49 = vadd.f32 %v6136_v42, %v9428_v51  ;;  %v6132_v35 = vrot.slane %v6033_v21, %v9418_v46  ;;  %v6193_v57 = vadd.f32 %v6100_v23, %v9428_v51  ;;  %7588 = vtanh.f32 %v6203_v26 }
0x3800   :  { %v7573_v55 = vpop.eup %7572  ;;  %v6242_v56 = vmul.f32 %v7571_v47, %v9478_v41  ;;  %v6208_v29 = vadd.f32 %v6160_v45, %v9428_v51  ;;  %v6195_v14 = vadd.f32 %v6108_v28, %v9428_v51  ;;  %v9497_v60 = vadd.f32 %v6120_v54, %v9428_v51 }
0x3801   :  { %v7575_v58 = vpop.eup %7574  ;;  %v6239_v59 = vmul.f32 %v7573_v55, %v9478_v41  ;;  %v9502_v19 = vadd.f32 %v6132_v35, %v9428_v51  ;;  %v6036_v0 = vadd.f32 %v9430_v52, %v9422_v48  ;;  %v6039_v2 = vadd.f32 %v9430_v52, %v9426_v50 }
0x3802   :  { %v7577_v61 = vpop.eup %7576  ;;  %v6272_v18 = vsel %vm707_vm0, %v6242_v56, 0.0  ;;  %v6245_v17 = vmul.f32 %v7575_v58, %v9478_v41  ;;  %7590 = vtanh.f32 %v6190_v9  ;;  %v6031_v52 = vadd.f32 %v9432_v53, %v9413_v43 }
0x3803   :  { %v7579_v62 = vpop.eup %7578  ;;  %6273 = vadd.xlane.f32.xlu1 %v6272_v18  ;;  %v6263_v25 = vsel %vm707_vm0, %v6239_v59, 0.0  ;;  %v6248_v63 = vmul.f32 %v7577_v61, %v9478_v41  ;;  %v6144_v3 = vrot.slane %v6036_v0, %v9418_v46  ;;  %7592 = vtanh.f32 %v6206_v32 }
0x3804   :  { %v7581_v1 = vpop.eup %7580  ;;  %6264 = vadd.xlane.f32.xlu0 %v6263_v25  ;;  %v6281_v4 = vsel %vm707_vm0, %v6245_v17, 0.0  ;;  %v6156_v6 = vrot.slane %v6039_v2, %v9418_v46  ;;  %v6251_v8 = vmul.f32 %v7579_v62, %v9478_v41  ;;  %7594 = vtanh.f32 %v6192_v34 }
0x3805   :  { %v6240_v5 = vmul.f32 %v7581_v1, %v9478_v41  ;;  %v6290_v7 = vsel %vm707_vm0, %v6248_v63, 0.0  ;;  %v6204_v11 = vadd.f32 %v6144_v3, %v9428_v51  ;;  %7596 = vtanh.f32 %v6196_v33 }
0x3806   :  { %v7583_v10 = vpop.eup %7582  ;;  %v6207_v50 = vadd.f32 %v6156_v6, %v9428_v51  ;;  %v6037_v16 = vadd.f32 %v9432_v53, %v9422_v48  ;;  %v6299_v22 = vsel %vm707_vm0, %v6251_v8, 0.0  ;;  %v6124_v26 = vrot.slane %v6031_v52, %v9418_v46 }
0x3807   :  { %6282 = vadd.xlane.f32.xlu1 %v6281_v4  ;;  %v7585_v12 = vpop.eup %7584  ;;  %v6266_v13 = vsel %vm707_vm0, %v6240_v5, 0.0  ;;  %v6241_v15 = vmul.f32 %v7583_v10, %v9478_v41  ;;  %7598 = vtanh.f32 %v6193_v57 }
0x3808   :  { %6291 = vadd.xlane.f32.xlu0 %v6290_v7  ;;  %v7587_v20 = vpop.eup %7586  ;;  %v6254_v24 = vmul.f32 %v7585_v12, %v9478_v41  ;;  %v6148_v43 = vrot.slane %v6037_v16, %v9418_v46  ;;  %v6199_v30 = vadd.f32 %v6124_v26, %v9428_v51  ;;  %7600 = vtanh.f32 %v6202_v49 }
0x3809   :  { %v7589_v27 = vpop.eup %7588  ;;  %v6269_v31 = vsel %vm707_vm0, %v6241_v15, 0.0  ;;  %v6243_v32 = vmul.f32 %v7587_v20, %v9478_v41  ;;  %7602 = vtanh.f32 %v6195_v14 }
0x380a   :  { %v6205_v48 = vadd.f32 %v6148_v43, %v9428_v51  ;;  %v6308_v9 = vsel %vm707_vm0, %v6254_v24, 0.0  ;;  %v6257_v33 = vmul.f32 %v7589_v27, %v9478_v41  ;;  %7604 = vtanh.f32 %v6208_v29 }
0x380b   :  { %6267 = vadd.xlane.f32.xlu1 %v6266_v13  ;;  %v6275_v46 = vsel %vm707_vm0, %v6243_v32, 0.0  ;;  %7606 = vtanh.f32 %v9497_v60 }
0x380c   :  { %6300 = vadd.xlane.f32.xlu0 %v6299_v22  ;;  %v7591_v53 = vpop.eup %7590  ;;  %v6317_v39 = vsel %vm707_vm0, %v6257_v33, 0.0  ;;  %7608 = vtanh.f32 %v9502_v19 }
0x380d   :  { %v7593_v34 = vpop.eup %7592  ;;  %v6244_v36 = vmul.f32 %v7591_v53, %v9478_v41  ;;  %7610 = vtanh.f32 %v6204_v11 }
0x380e   :  { %v7595_v38 = vpop.eup %7594  ;;  %v6260_v51 = vmul.f32 %v7593_v34, %v9478_v41  ;;  %7612 = vtanh.f32 %v6207_v50 }
0x380f   :  { %6270 = vadd.xlane.f32.xlu1 %v6269_v31  ;;  %v7597_v40 = vpop.eup %7596  ;;  %v6278_v42 = vsel %vm707_vm0, %v6244_v36, 0.0  ;;  %v6246_v44 = vmul.f32 %v7595_v38, %v9478_v41  ;;  %7614 = vtanh.f32 %v6199_v30 }
0x3810   :  { %6309 = vadd.xlane.f32.xlu0 %v6308_v9  ;;  %v6326_v23 = vsel %vm707_vm0, %v6260_v51, 0.0  ;;  %v6250_v45 = vmul.f32 %v7597_v40, %v9478_v41  ;;  %7616 = vtanh.f32 %v6205_v48 }
0x3811   :  { %v7599_v21 = vpop.eup %7598  ;;  %v6284_v47 = vsel %vm707_vm0, %v6246_v44, 0.0 }
0x3812   :  { %v7601_v28 = vpop.eup %7600  ;;  %v6247_v49 = vmul.f32 %v7599_v21, %v9478_v41  ;;  %v6296_v35 = vsel %vm707_vm0, %v6250_v45, 0.0 }
0x3813   :  { %6276 = vadd.xlane.f32.xlu1 %v6275_v46  ;;  %v7603_v54 = vpop.eup %7602  ;;  %v6256_v55 = vmul.f32 %v7601_v28, %v9478_v41 }
0x3814   :  { %6318 = vadd.xlane.f32.xlu0 %v6317_v39  ;;  %v7605_v56 = vpop.eup %7604  ;;  %v6287_v57 = vsel %vm707_vm0, %v6247_v49, 0.0  ;;  %v6249_v29 = vmul.f32 %v7603_v54, %v9478_v41 }
0x3815   :  { %v7607_v58 = vpop.eup %7606  ;;  %v6314_v59 = vsel %vm707_vm0, %v6256_v55, 0.0  ;;  %v6262_v14 = vmul.f32 %v7605_v56, %v9478_v41 }
0x3816   :  { %v6293_v60 = vsel %vm707_vm0, %v6249_v29, 0.0  ;;  %v6252_v61 = vmul.f32 %v7607_v58, %v9478_v41  ;;  %v7609_v18 = vpop.eup %7608 }
0x3817   :  { %6279 = vadd.xlane.f32.xlu1 %v6278_v42  ;;  %v6332_v17 = vsel %vm707_vm0, %v6262_v14, 0.0  ;;  %v6255_v62 = vmul.f32 %v7609_v18, %v9478_v41  ;;  %v7611_v25 = vpop.eup %7610 }
0x3818   :  { %6327 = vadd.xlane.f32.xlu0 %v6326_v23  ;;  %v6302_v19 = vsel %vm707_vm0, %v6252_v61, 0.0  ;;  %v6258_v0 = vmul.f32 %v7611_v25, %v9478_v41  ;;  %v7613_v1 = vpop.eup %7612 }
0x3819   :  { %v6311_v63 = vsel %vm707_vm0, %v6255_v62, 0.0  ;;  %v6261_v3 = vmul.f32 %v7613_v1, %v9478_v41  ;;  %v7615_v4 = vpop.eup %7614 }
0x381a   :  { %v6320_v2 = vsel %vm707_vm0, %v6258_v0, 0.0  ;;  %v6253_v6 = vmul.f32 %v7615_v4, %v9478_v41  ;;  %v7617_v10 = vpop.eup %7616 }
0x381b   :  { %6285 = vadd.xlane.f32.xlu1 %v6284_v47  ;;  %v6329_v5 = vsel %vm707_vm0, %v6261_v3, 0.0  ;;  %v6259_v8 = vmul.f32 %v7617_v10, %v9478_v41 }
0x381c   :  { %6297 = vadd.xlane.f32.xlu0 %v6296_v35  ;;  %v6305_v7 = vsel %vm707_vm0, %v6253_v6, 0.0 }
0x381d   :  { %v6323_v11 = vsel %vm707_vm0, %v6259_v8, 0.0 }
0x381f   :  { %6288 = vadd.xlane.f32.xlu1 %v6287_v57 }
0x3820   :  { %6315 = vadd.xlane.f32.xlu0 %v6314_v59 }
0x3823   :  { %6294 = vadd.xlane.f32.xlu1 %v6293_v60 }
0x3824   :  { %6333 = vadd.xlane.f32.xlu0 %v6332_v17 }
0x3827   :  { %6303 = vadd.xlane.f32.xlu1 %v6302_v19 }
0x382b   :  { %6312 = vadd.xlane.f32.xlu1 %v6311_v63 }
0x382f   :  { %6321 = vadd.xlane.f32.xlu1 %v6320_v2 }
0x3833   :  { %6330 = vadd.xlane.f32.xlu1 %v6329_v5 }
0x3837   :  { %6306 = vadd.xlane.f32.xlu1 %v6305_v7 }
0x383b   :  { %6324 = vadd.xlane.f32.xlu1 %v6323_v11 }
0x3890   :  { %v6274_v12 = vpop.xlane.xlu1 %6273 }
0x3891   :  { %v6265_v50 = vpop.xlane.xlu0 %6264  ;;  %v6376_v48 = vrot.slane %v6274_v12, %v9388_v37 }
0x3892   :  { %v6364_v22 = vrot.slane %v6265_v50, %v9388_v37 }
0x3894   :  { %v6283_v52 = vpop.xlane.xlu1 %6282 }
0x3895   :  { %v6292_v13 = vpop.xlane.xlu0 %6291  ;;  %v6388_v39 = vrot.slane %v6283_v52, %v9388_v37 }
0x3896   :  { %v6400_v45 = vrot.slane %v6292_v13, %v9388_v37 }
0x3898   :  { %v6268_v15 = vpop.xlane.xlu1 %6267 }
0x3899   :  { %v6301_v16 = vpop.xlane.xlu0 %6300  ;;  %v6368_v20 = vrot.slane %v6268_v15, %v9388_v37 }
0x389a   :  { %v6412_v0 = vrot.slane %v6301_v16, %v9388_v37 }
0x389b   :  { %v6458_v27 = vsel %vm6457_vm13, %v6368_v20, %v6364_v22 }
0x389c   :  { %v6271_v24 = vpop.xlane.xlu1 %6270 }
0x389d   :  { %v6310_v41 = vpop.xlane.xlu0 %6309  ;;  %v6372_v26 = vrot.slane %v6271_v24, %v9388_v37 }
0x389e   :  { %v6424_v57 = vrot.slane %v6310_v41, %v9388_v37 }
0x389f   :  { %v6460_v43 = vsel %vm6459_vm14, %v6372_v26, %v6458_v27 }
0x38a0   :  { %6483 = vst.msk [vmem:[%s8715_s25] sm:$0x7] %vm4575_vm10, %v6460_v43  ;;  %v6277_v30 = vpop.xlane.xlu1 %6276 }
0x38a1   :  { %v6380_v31 = vrot.slane %v6277_v30, %v9388_v37  ;;  %v6319_v32 = vpop.xlane.xlu0 %6318 }
0x38a2   :  { %v6436_v10 = vrot.slane %v6319_v32, %v9388_v37 }
0x38a3   :  { %v6461_v33 = vsel %vm6457_vm13, %v6380_v31, %v6376_v48 }
0x38a4   :  { %v6280_v53 = vpop.xlane.xlu1 %6279 }
0x38a5   :  { %v6384_v9 = vrot.slane %v6280_v53, %v9388_v37  ;;  %v6328_v36 = vpop.xlane.xlu0 %6327 }
0x38a6   :  { %v6448_v17 = vrot.slane %v6328_v36, %v9388_v37 }
0x38a7   :  { %v6462_v34 = vsel %vm6459_vm14, %v6384_v9, %v6461_v33 }
0x38a8   :  { %6484 = vst.msk [vmem:[%s8715_s25 + $0x4] sm:$0x7] %vm4575_vm10, %v6462_v34  ;;  %v6286_v46 = vpop.xlane.xlu1 %6285 }
0x38a9   :  { %v6392_v38 = vrot.slane %v6286_v46, %v9388_v37  ;;  %v6298_v44 = vpop.xlane.xlu0 %6297 }
0x38aa   :  { %v6408_v47 = vrot.slane %v6298_v44, %v9388_v37 }
0x38ab   :  { %v6463_v42 = vsel %vm6457_vm13, %v6392_v38, %v6388_v39 }
0x38ac   :  { %v6289_v51 = vpop.xlane.xlu1 %6288 }
0x38ad   :  { %v6396_v40 = vrot.slane %v6289_v51, %v9388_v37  ;;  %v6316_v55 = vpop.xlane.xlu0 %6315 }
0x38ae   :  { %v6432_v58 = vrot.slane %v6316_v55, %v9388_v37 }
0x38af   :  { %v6464_v21 = vsel %vm6459_vm14, %v6396_v40, %v6463_v42 }
0x38b0   :  { %6485 = vst.msk [vmem:[%s8715_s25 + $0x8] sm:$0x7] %vm4575_vm10, %v6464_v21  ;;  %v6295_v23 = vpop.xlane.xlu1 %6294 }
0x38b1   :  { %v6404_v28 = vrot.slane %v6295_v23, %v9388_v37  ;;  %v6334_v61 = vpop.xlane.xlu0 %6333 }
0x38b2   :  { %v6456_v62 = vrot.slane %v6334_v61, %v9388_v37 }
0x38b3   :  { %v6465_v49 = vsel %vm6457_vm13, %v6404_v28, %v6400_v45 }
0x38b4   :  { %v6466_v54 = vsel %vm6459_vm14, %v6408_v47, %v6465_v49  ;;  %v6304_v35 = vpop.xlane.xlu1 %6303 }
0x38b5   :  { %6486 = vst.msk [vmem:[%s8715_s25 + $0xc] sm:$0x7] %vm4575_vm10, %v6466_v54  ;;  %v6416_v25 = vrot.slane %v6304_v35, %v9388_v37 }
0x38b7   :  { %v6467_v4 = vsel %vm6457_vm13, %v6416_v25, %v6412_v0 }
0x38b8   :  { %v6313_v56 = vpop.xlane.xlu1 %6312 }
0x38b9   :  { %v6428_v29 = vrot.slane %v6313_v56, %v9388_v37 }
0x38bb   :  { %v6469_v59 = vsel %vm6457_vm13, %v6428_v29, %v6424_v57 }
0x38bc   :  { %v6470_v14 = vsel %vm6459_vm14, %v6432_v58, %v6469_v59  ;;  %v6322_v60 = vpop.xlane.xlu1 %6321 }
0x38bd   :  { %6488 = vst.msk [vmem:[%s8715_s25 + $0x14] sm:$0x7] %vm4575_vm10, %v6470_v14  ;;  %v6440_v5 = vrot.slane %v6322_v60, %v9388_v37 }
0x38bf   :  { %v6471_v11 = vsel %vm6457_vm13, %v6440_v5, %v6436_v10 }
0x38c0   :  { %v6331_v18 = vpop.xlane.xlu1 %6330 }
0x38c1   :  { %v6452_v19 = vrot.slane %v6331_v18, %v9388_v37 }
0x38c3   :  { %v6473_v63 = vsel %vm6457_vm13, %v6452_v19, %v6448_v17 }
0x38c4   :  { %v6474_v1 = vsel %vm6459_vm14, %v6456_v62, %v6473_v63  ;;  %v6307_v2 = vpop.xlane.xlu1 %6306 }
0x38c5   :  { %6490 = vst.msk [vmem:[%s8715_s25 + $0x1c] sm:$0x7] %vm4575_vm10, %v6474_v1  ;;  %v6420_v3 = vrot.slane %v6307_v2, %v9388_v37 }
0x38c7   :  { %v6468_v6 = vsel %vm6459_vm14, %v6420_v3, %v6467_v4 }
0x38c8   :  { %6487 = vst.msk [vmem:[%s8715_s25 + $0x10] sm:$0x7] %vm4575_vm10, %v6468_v6  ;;  %v6325_v7 = vpop.xlane.xlu1 %6324 }
0x38c9   :  { %v6444_v8 = vrot.slane %v6325_v7, %v9388_v37 }
0x38cb   :  { %v6472_v12 = vsel %vm6459_vm14, %v6444_v8, %v6471_v11 }
0x38cc   :  { %6489 = vst.msk [vmem:[%s8715_s25 + $0x18] sm:$0x7] %vm4575_vm10, %v6472_v12 }
0x38cd   :  { %6499 = vsyncpa [#allocation3], 1 }
0x38ce   :  { %6500 = vsyncpa [#allocation5], 1 }
0x38cf   :  { %6501 = vsyncpa [#allocation8], 1 }
0x38d0   :  { %6502 = vsyncpa [#allocation11], 1 }
0x38d1   :  { %6503 = vsyncpa [#allocation14], 1 }
0x38d2   :  { %6504 = vsyncpa [#allocation17], 1 }
0x38d3   :  { %6505 = vsyncpa [#allocation20], 1 }
0x38d4   :  { %6506 = vsyncpa [#allocation23], 1 }
0x38d5   :  { %6507 = vsyncpa [#allocation26], 1 }
0x38d6   :  { %6508 = vsyncpa [#allocation29], 1 }
0x38d7   :  { %6509 = vsyncpa [#allocation32], 1 }
0x38d8   :  { %6510 = vsyncpa [#allocation35], 1 }
0x38d9   :  { %6511 = vsyncpa [#allocation38], 1 }
0x38da   :  { %6512 = vsyncpa [#allocation41], 1 }
0x38db   :  { %6513 = vsyncpa [#allocation44], 1 }
0x38dc   :  { %6514 = vsyncpa [#allocation47], 1 }

</bundles_post_ra>
